<compile_context>
chip_gen: v6e
topology: v6e:2x2x1
jax: 0.10.0
libtpu: 0.0.40
codegen_flags: <defaults>
</compile_context>

<pallas_src>
import jax
import jax.numpy as jnp
from jax.experimental import pallas as pl
from jax.experimental.pallas import tpu as pltpu
import numpy as np


def _lora_embedding_kernel(ids_ref,   # SMEM (Np,) int32 token ids (scalar prefetch)
                           w_hbm,     # ANY  (V, Dp)  embedding table (stays in HBM)
                           a_ref,     # VMEM (V, rp)  full LoRA A table (tiny)
                           b_ref,     # VMEM (rp, Dp) LoRA B, pre-scaled
                           o_ref,     # VMEM (blk, Dp) output tile
                           w_buf,     # VMEM (2, blk, Dp) gathered W rows (double buffer)
                           a_tile,    # VMEM (blk, rp) gathered A rows (single buffer)
                           w_sems):   # DMA sems (2, blk)
    blk = o_ref.shape[0]
    i = pl.program_id(0)
    n_steps = pl.num_programs(0)
    slot = i % 2

    def issue(tile_idx, slot_idx):
        # Gather `blk` rows of W0 for tile `tile_idx` into buffer `slot_idx`.
        base = tile_idx * blk
        for j in range(blk):
            tok = ids_ref[base + j]
            pltpu.make_async_copy(w_hbm.at[pl.ds(tok, 1), :],
                                  w_buf.at[slot_idx, pl.ds(j, 1), :],
                                  w_sems.at[slot_idx, j]).start()

    # Prime the pipeline on the first step.
    @pl.when(i == 0)
    def _():
        issue(0, 0)

    # Issue the NEXT tile's row gather into the other buffer before waiting on
    # the current tile, so those DMAs overlap the wait + compute below.
    @pl.when(i + 1 < n_steps)
    def _():
        issue(i + 1, 1 - slot)

    # Gather this tile's LoRA-A rows from the VMEM-resident table while the
    # W-row DMAs are still in flight (pure VMEM loads/stores, no DMA).
    base = i * blk
    for j in range(blk):
        tok = ids_ref[base + j]
        a_tile[pl.ds(j, 1), :] = a_ref[pl.ds(tok, 1), :]

    # LoRA delta on the MXU: (blk, rp) @ (rp, Dp), f32 accumulation.
    delta = jnp.dot(a_tile[...].astype(jnp.float32),
                    b_ref[...].astype(jnp.float32),
                    preferred_element_type=jnp.float32)

    # Wait for this tile's W rows (descriptors match the issuing copies' shape).
    for j in range(blk):
        pltpu.make_async_copy(w_hbm.at[pl.ds(0, 1), :],
                              w_buf.at[slot, pl.ds(j, 1), :],
                              w_sems.at[slot, j]).wait()

    o_ref[...] = (w_buf[slot].astype(jnp.float32) + delta).astype(o_ref.dtype)


def _round_up(x, m):
    return (x + m - 1) // m * m


def lora_embedding(x, weight, lora_a, lora_b, scaling, *, blk=32):
    """x: (batch, seq) int ids -> (batch, seq, D) = W0[x] + (A[x] @ B) * scaling."""
    assert blk % 8 == 0, "blk must be a multiple of 8 (sublane alignment)"
    B, S = x.shape
    V, D = weight.shape
    r = lora_a.shape[1]

    # Fold the LoRA scaling into B once (removes a per-element multiply per tile).
    b_scaled = lora_b * jnp.asarray(scaling, dtype=lora_b.dtype)

    # Pad the embedding dim to a multiple of 128 -> lane-dense output stores.
    Dp = _round_up(D, 128)
    if Dp != D:
        weight = jnp.pad(weight, ((0, 0), (0, Dp - D)))
        b_scaled = jnp.pad(b_scaled, ((0, 0), (0, Dp - D)))

    # Pad the rank to a multiple of 8 (zero rows/cols: math unchanged).
    rp = _round_up(r, 8)
    if rp != r:
        lora_a = jnp.pad(lora_a, ((0, 0), (0, rp - r)))
        b_scaled = jnp.pad(b_scaled, ((0, rp - r), (0, 0)))

    # Flatten ids, clamp (guards the HBM row-gather against OOB ids) and pad
    # the token count to a multiple of the tile size.
    # TODO(synk): PyTorch nn.Embedding raises on out-of-range ids; here they are clamped.
    N = B * S
    Np = _round_up(N, blk)
    ids = jnp.clip(x.reshape(N).astype(jnp.int32), 0, V - 1)
    if Np != N:
        ids = jnp.pad(ids, (0, Np - N))   # padded slots gather row 0; sliced off below

    out_flat = pl.pallas_call(
        _lora_embedding_kernel,
        out_shape=jax.ShapeDtypeStruct((Np, Dp), weight.dtype),
        grid_spec=pltpu.PrefetchScalarGridSpec(
            num_scalar_prefetch=1,
            grid=(Np // blk,),
            in_specs=[
                pl.BlockSpec(memory_space=pl.ANY),                 # W0 stays in HBM
                pl.BlockSpec((V, rp), lambda i, ids: (0, 0)),      # full LoRA A in VMEM
                pl.BlockSpec((rp, Dp), lambda i, ids: (0, 0)),     # pre-scaled B in VMEM
            ],
            out_specs=pl.BlockSpec((blk, Dp), lambda i, ids: (i, 0)),
            scratch_shapes=[
                pltpu.VMEM((2, blk, Dp), weight.dtype),            # W row double buffer
                pltpu.VMEM((blk, rp), lora_a.dtype),               # gathered A tile
                pltpu.SemaphoreType.DMA((2, blk)),
            ],
        ),
        compiler_params=pltpu.CompilerParams(
            # The token-tile axis carries the manual double-buffer priming
            # (step 0 primes slot 0), so it must execute in order on one core.
            dimension_semantics=("arbitrary",),
        ),
    )(ids, weight, lora_a, b_scaled)

    return out_flat[:N, :D].reshape(B, S, D)


if __name__ == "__main__":
    # Module config (small shapes).  PyTorch init: weight/lora_a ~ normal,
    # lora_b = zeros; use a small nonzero lora_b so the LoRA path is exercised.
    num_embeddings = 256    # vocab V
    embedding_dim = 128     # D (lane-dense)
    r = 4
    alpha = 8
    scaling = alpha / r

    key = jax.random.PRNGKey(0)
    k_w, k_a, k_b, k_x = jax.random.split(key, 4)
    weight = jax.random.normal(k_w, (num_embeddings, embedding_dim), jnp.float32)
    lora_a = jax.random.normal(k_a, (num_embeddings, r), jnp.float32)
    lora_b = 0.01 * jax.random.normal(k_b, (r, embedding_dim), jnp.float32)

    # batch*seq = 60 tokens -> exercises the tile-padding path and the
    # double-buffered prefetch (blk=32 -> 2 grid steps).
    batch, seq = 2, 30
    x = jax.random.randint(k_x, (batch, seq), 0, num_embeddings, jnp.int32)

    out = lora_embedding(x, weight, lora_a, lora_b, scaling, blk=32)
    out = jax.block_until_ready(out)

    # Pure-JAX reference for correctness check.
    ref = weight[x] + (lora_a[x] @ lora_b) * scaling
    np.testing.assert_allclose(np.asarray(out), np.asarray(ref), rtol=1e-5, atol=1e-5)

    print("KERNEL_OK")
</pallas_src>

<mosaic_0001>
module attributes {stable_mosaic.version = 11 : i64} {
  func.func @_lora_embedding_kernel(%arg0: i32, %arg1: memref<64xi32, #tpu.memory_space<smem>>, %arg2: memref<256x128xf32, #tpu.memory_space<any>>, %arg3: memref<256x8xf32, #tpu.memory_space<vmem>>, %arg4: memref<8x128xf32, #tpu.memory_space<vmem>>, %arg5: memref<32x128xf32, #tpu.memory_space<vmem>>, %arg6: memref<2x32x128xf32, #tpu.memory_space<vmem>>, %arg7: memref<32x8xf32, #tpu.memory_space<vmem>>, %arg8: memref<2x32x!tpu.dma_semaphore, #tpu.memory_space<semaphore_mem>>) attributes {dimension_semantics = [#tpu.dimension_semantics<arbitrary>], iteration_bounds = array<i64: 2>, scalar_prefetch = 1 : i64, scratch_operands = 3 : i64, tpu.core_type = #tpu.core_type<tc>, window_params = [{}, {pipeline_mode = #tpu.pipeline_mode<synchronous>, transform_indices = @transform_1, window_bounds = array<i64: 256, 8>}, {pipeline_mode = #tpu.pipeline_mode<synchronous>, transform_indices = @transform_2, window_bounds = array<i64: 8, 128>}, {transform_indices = @transform_3, window_bounds = array<i64: 32, 128>}]} {
    %c2_i32 = arith.constant 2 : i32
    %c0_i32 = arith.constant 0 : i32
    %0 = arith.cmpi eq, %c2_i32, %c0_i32 : i32
    %c1_i32 = arith.constant 1 : i32
    %1 = arith.select %0, %c1_i32, %c2_i32 : i32
    %2 = arith.remsi %arg0, %1 : i32
    %c0_i32_0 = arith.constant 0 : i32
    %3 = arith.cmpi ne, %2, %c0_i32_0 : i32
    %c0_i32_1 = arith.constant 0 : i32
    %4 = arith.cmpi slt, %2, %c0_i32_1 : i32
    %c0_i32_2 = arith.constant 0 : i32
    %5 = arith.cmpi slt, %1, %c0_i32_2 : i32
    %6 = arith.xori %4, %5 : i1
    %7 = arith.andi %6, %3 : i1
    %8 = arith.addi %2, %1 : i32
    %9 = arith.select %7, %8, %2 : i32
    %c0_i32_3 = arith.constant 0 : i32
    %10 = arith.cmpi eq, %arg0, %c0_i32_3 : i32
    %11 = arith.extui %10 : i1 to i32
    %c0_i32_4 = arith.constant 0 : i32
    %12 = arith.cmpi ne, %11, %c0_i32_4 : i32
    scf.if %12 {
      %c0_243 = arith.constant 0 : index
      %378 = memref.load %arg1[%c0_243] : memref<64xi32, #tpu.memory_space<smem>>
      %c0_i32_244 = arith.constant 0 : i32
      %c0_i32_245 = arith.constant 0 : i32
      %c0_i32_246 = arith.constant 0 : i32
      %c0_i32_247 = arith.constant 0 : i32
      %379 = tpu.memref_slice %arg2[%378, %c0_i32_247] : memref<256x128xf32, #tpu.memory_space<any>> -> memref<1x128xf32, #tpu.memory_space<any>>
      %c0_i32_248 = arith.constant 0 : i32
      %c0_i32_249 = arith.constant 0 : i32
      %380 = tpu.memref_slice %arg6[%c0_i32_244, %c0_i32_248, %c0_i32_249] : memref<2x32x128xf32, #tpu.memory_space<vmem>> -> memref<1x1x128xf32, #tpu.memory_space<vmem>>
      %381 = tpu.memref_squeeze %380 : memref<1x1x128xf32, #tpu.memory_space<vmem>> -> memref<1x128xf32, #tpu.memory_space<vmem>>
      %382 = tpu.memref_slice %arg8[%c0_i32_245, %c0_i32_246] : memref<2x32x!tpu.dma_semaphore, #tpu.memory_space<semaphore_mem>> -> memref<1x1x!tpu.dma_semaphore, #tpu.memory_space<semaphore_mem>>
      %383 = tpu.memref_squeeze %382 : memref<1x1x!tpu.dma_semaphore, #tpu.memory_space<semaphore_mem>> -> memref<!tpu.dma_semaphore, #tpu.memory_space<semaphore_mem>>
      tpu.enqueue_dma source(%379 : memref<1x128xf32, #tpu.memory_space<any>>) target(%381 : memref<1x128xf32, #tpu.memory_space<vmem>>) target_semaphore(%383 : memref<!tpu.dma_semaphore, #tpu.memory_space<semaphore_mem>>)
      %c1_250 = arith.constant 1 : index
      %384 = memref.load %arg1[%c1_250] : memref<64xi32, #tpu.memory_space<smem>>
      %c0_i32_251 = arith.constant 0 : i32
      %c0_i32_252 = arith.constant 0 : i32
      %c1_i32_253 = arith.constant 1 : i32
      %c0_i32_254 = arith.constant 0 : i32
      %385 = tpu.memref_slice %arg2[%384, %c0_i32_254] : memref<256x128xf32, #tpu.memory_space<any>> -> memref<1x128xf32, #tpu.memory_space<any>>
      %c1_i32_255 = arith.constant 1 : i32
      %c0_i32_256 = arith.constant 0 : i32
      %386 = tpu.memref_slice %arg6[%c0_i32_251, %c1_i32_255, %c0_i32_256] : memref<2x32x128xf32, #tpu.memory_space<vmem>> -> memref<1x1x128xf32, #tpu.memory_space<vmem>>
      %387 = tpu.memref_squeeze %386 : memref<1x1x128xf32, #tpu.memory_space<vmem>> -> memref<1x128xf32, #tpu.memory_space<vmem>>
      %388 = tpu.memref_slice %arg8[%c0_i32_252, %c1_i32_253] : memref<2x32x!tpu.dma_semaphore, #tpu.memory_space<semaphore_mem>> -> memref<1x1x!tpu.dma_semaphore, #tpu.memory_space<semaphore_mem>>
      %389 = tpu.memref_squeeze %388 : memref<1x1x!tpu.dma_semaphore, #tpu.memory_space<semaphore_mem>> -> memref<!tpu.dma_semaphore, #tpu.memory_space<semaphore_mem>>
      tpu.enqueue_dma source(%385 : memref<1x128xf32, #tpu.memory_space<any>>) target(%387 : memref<1x128xf32, #tpu.memory_space<vmem>>) target_semaphore(%389 : memref<!tpu.dma_semaphore, #tpu.memory_space<semaphore_mem>>)
      %c2_257 = arith.constant 2 : index
      %390 = memref.load %arg1[%c2_257] : memref<64xi32, #tpu.memory_space<smem>>
      %c0_i32_258 = arith.constant 0 : i32
      %c0_i32_259 = arith.constant 0 : i32
      %c2_i32_260 = arith.constant 2 : i32
      %c0_i32_261 = arith.constant 0 : i32
      %391 = tpu.memref_slice %arg2[%390, %c0_i32_261] : memref<256x128xf32, #tpu.memory_space<any>> -> memref<1x128xf32, #tpu.memory_space<any>>
      %c2_i32_262 = arith.constant 2 : i32
      %c0_i32_263 = arith.constant 0 : i32
      %392 = tpu.memref_slice %arg6[%c0_i32_258, %c2_i32_262, %c0_i32_263] : memref<2x32x128xf32, #tpu.memory_space<vmem>> -> memref<1x1x128xf32, #tpu.memory_space<vmem>>
      %393 = tpu.memref_squeeze %392 : memref<1x1x128xf32, #tpu.memory_space<vmem>> -> memref<1x128xf32, #tpu.memory_space<vmem>>
      %394 = tpu.memref_slice %arg8[%c0_i32_259, %c2_i32_260] : memref<2x32x!tpu.dma_semaphore, #tpu.memory_space<semaphore_mem>> -> memref<1x1x!tpu.dma_semaphore, #tpu.memory_space<semaphore_mem>>
      %395 = tpu.memref_squeeze %394 : memref<1x1x!tpu.dma_semaphore, #tpu.memory_space<semaphore_mem>> -> memref<!tpu.dma_semaphore, #tpu.memory_space<semaphore_mem>>
      tpu.enqueue_dma source(%391 : memref<1x128xf32, #tpu.memory_space<any>>) target(%393 : memref<1x128xf32, #tpu.memory_space<vmem>>) target_semaphore(%395 : memref<!tpu.dma_semaphore, #tpu.memory_space<semaphore_mem>>)
      %c3_264 = arith.constant 3 : index
      %396 = memref.load %arg1[%c3_264] : memref<64xi32, #tpu.memory_space<smem>>
      %c0_i32_265 = arith.constant 0 : i32
      %c0_i32_266 = arith.constant 0 : i32
      %c3_i32_267 = arith.constant 3 : i32
      %c0_i32_268 = arith.constant 0 : i32
      %397 = tpu.memref_slice %arg2[%396, %c0_i32_268] : memref<256x128xf32, #tpu.memory_space<any>> -> memref<1x128xf32, #tpu.memory_space<any>>
      %c3_i32_269 = arith.constant 3 : i32
      %c0_i32_270 = arith.constant 0 : i32
      %398 = tpu.memref_slice %arg6[%c0_i32_265, %c3_i32_269, %c0_i32_270] : memref<2x32x128xf32, #tpu.memory_space<vmem>> -> memref<1x1x128xf32, #tpu.memory_space<vmem>>
      %399 = tpu.memref_squeeze %398 : memref<1x1x128xf32, #tpu.memory_space<vmem>> -> memref<1x128xf32, #tpu.memory_space<vmem>>
      %400 = tpu.memref_slice %arg8[%c0_i32_266, %c3_i32_267] : memref<2x32x!tpu.dma_semaphore, #tpu.memory_space<semaphore_mem>> -> memref<1x1x!tpu.dma_semaphore, #tpu.memory_space<semaphore_mem>>
      %401 = tpu.memref_squeeze %400 : memref<1x1x!tpu.dma_semaphore, #tpu.memory_space<semaphore_mem>> -> memref<!tpu.dma_semaphore, #tpu.memory_space<semaphore_mem>>
      tpu.enqueue_dma source(%397 : memref<1x128xf32, #tpu.memory_space<any>>) target(%399 : memref<1x128xf32, #tpu.memory_space<vmem>>) target_semaphore(%401 : memref<!tpu.dma_semaphore, #tpu.memory_space<semaphore_mem>>)
      %c4_271 = arith.constant 4 : index
      %402 = memref.load %arg1[%c4_271] : memref<64xi32, #tpu.memory_space<smem>>
      %c0_i32_272 = arith.constant 0 : i32
      %c0_i32_273 = arith.constant 0 : i32
      %c4_i32_274 = arith.constant 4 : i32
      %c0_i32_275 = arith.constant 0 : i32
      %403 = tpu.memref_slice %arg2[%402, %c0_i32_275] : memref<256x128xf32, #tpu.memory_space<any>> -> memref<1x128xf32, #tpu.memory_space<any>>
      %c4_i32_276 = arith.constant 4 : i32
      %c0_i32_277 = arith.constant 0 : i32
      %404 = tpu.memref_slice %arg6[%c0_i32_272, %c4_i32_276, %c0_i32_277] : memref<2x32x128xf32, #tpu.memory_space<vmem>> -> memref<1x1x128xf32, #tpu.memory_space<vmem>>
      %405 = tpu.memref_squeeze %404 : memref<1x1x128xf32, #tpu.memory_space<vmem>> -> memref<1x128xf32, #tpu.memory_space<vmem>>
      %406 = tpu.memref_slice %arg8[%c0_i32_273, %c4_i32_274] : memref<2x32x!tpu.dma_semaphore, #tpu.memory_space<semaphore_mem>> -> memref<1x1x!tpu.dma_semaphore, #tpu.memory_space<semaphore_mem>>
      %407 = tpu.memref_squeeze %406 : memref<1x1x!tpu.dma_semaphore, #tpu.memory_space<semaphore_mem>> -> memref<!tpu.dma_semaphore, #tpu.memory_space<semaphore_mem>>
      tpu.enqueue_dma source(%403 : memref<1x128xf32, #tpu.memory_space<any>>) target(%405 : memref<1x128xf32, #tpu.memory_space<vmem>>) target_semaphore(%407 : memref<!tpu.dma_semaphore, #tpu.memory_space<semaphore_mem>>)
      %c5_278 = arith.constant 5 : index
      %408 = memref.load %arg1[%c5_278] : memref<64xi32, #tpu.memory_space<smem>>
      %c0_i32_279 = arith.constant 0 : i32
      %c0_i32_280 = arith.constant 0 : i32
      %c5_i32_281 = arith.constant 5 : i32
      %c0_i32_282 = arith.constant 0 : i32
      %409 = tpu.memref_slice %arg2[%408, %c0_i32_282] : memref<256x128xf32, #tpu.memory_space<any>> -> memref<1x128xf32, #tpu.memory_space<any>>
      %c5_i32_283 = arith.constant 5 : i32
      %c0_i32_284 = arith.constant 0 : i32
      %410 = tpu.memref_slice %arg6[%c0_i32_279, %c5_i32_283, %c0_i32_284] : memref<2x32x128xf32, #tpu.memory_space<vmem>> -> memref<1x1x128xf32, #tpu.memory_space<vmem>>
      %411 = tpu.memref_squeeze %410 : memref<1x1x128xf32, #tpu.memory_space<vmem>> -> memref<1x128xf32, #tpu.memory_space<vmem>>
      %412 = tpu.memref_slice %arg8[%c0_i32_280, %c5_i32_281] : memref<2x32x!tpu.dma_semaphore, #tpu.memory_space<semaphore_mem>> -> memref<1x1x!tpu.dma_semaphore, #tpu.memory_space<semaphore_mem>>
      %413 = tpu.memref_squeeze %412 : memref<1x1x!tpu.dma_semaphore, #tpu.memory_space<semaphore_mem>> -> memref<!tpu.dma_semaphore, #tpu.memory_space<semaphore_mem>>
      tpu.enqueue_dma source(%409 : memref<1x128xf32, #tpu.memory_space<any>>) target(%411 : memref<1x128xf32, #tpu.memory_space<vmem>>) target_semaphore(%413 : memref<!tpu.dma_semaphore, #tpu.memory_space<semaphore_mem>>)
      %c6_285 = arith.constant 6 : index
      %414 = memref.load %arg1[%c6_285] : memref<64xi32, #tpu.memory_space<smem>>
      %c0_i32_286 = arith.constant 0 : i32
      %c0_i32_287 = arith.constant 0 : i32
      %c6_i32_288 = arith.constant 6 : i32
      %c0_i32_289 = arith.constant 0 : i32
      %415 = tpu.memref_slice %arg2[%414, %c0_i32_289] : memref<256x128xf32, #tpu.memory_space<any>> -> memref<1x128xf32, #tpu.memory_space<any>>
      %c6_i32_290 = arith.constant 6 : i32
      %c0_i32_291 = arith.constant 0 : i32
      %416 = tpu.memref_slice %arg6[%c0_i32_286, %c6_i32_290, %c0_i32_291] : memref<2x32x128xf32, #tpu.memory_space<vmem>> -> memref<1x1x128xf32, #tpu.memory_space<vmem>>
      %417 = tpu.memref_squeeze %416 : memref<1x1x128xf32, #tpu.memory_space<vmem>> -> memref<1x128xf32, #tpu.memory_space<vmem>>
      %418 = tpu.memref_slice %arg8[%c0_i32_287, %c6_i32_288] : memref<2x32x!tpu.dma_semaphore, #tpu.memory_space<semaphore_mem>> -> memref<1x1x!tpu.dma_semaphore, #tpu.memory_space<semaphore_mem>>
      %419 = tpu.memref_squeeze %418 : memref<1x1x!tpu.dma_semaphore, #tpu.memory_space<semaphore_mem>> -> memref<!tpu.dma_semaphore, #tpu.memory_space<semaphore_mem>>
      tpu.enqueue_dma source(%415 : memref<1x128xf32, #tpu.memory_space<any>>) target(%417 : memref<1x128xf32, #tpu.memory_space<vmem>>) target_semaphore(%419 : memref<!tpu.dma_semaphore, #tpu.memory_space<semaphore_mem>>)
      %c7_292 = arith.constant 7 : index
      %420 = memref.load %arg1[%c7_292] : memref<64xi32, #tpu.memory_space<smem>>
      %c0_i32_293 = arith.constant 0 : i32
      %c0_i32_294 = arith.constant 0 : i32
      %c7_i32_295 = arith.constant 7 : i32
      %c0_i32_296 = arith.constant 0 : i32
      %421 = tpu.memref_slice %arg2[%420, %c0_i32_296] : memref<256x128xf32, #tpu.memory_space<any>> -> memref<1x128xf32, #tpu.memory_space<any>>
      %c7_i32_297 = arith.constant 7 : i32
      %c0_i32_298 = arith.constant 0 : i32
      %422 = tpu.memref_slice %arg6[%c0_i32_293, %c7_i32_297, %c0_i32_298] : memref<2x32x128xf32, #tpu.memory_space<vmem>> -> memref<1x1x128xf32, #tpu.memory_space<vmem>>
      %423 = tpu.memref_squeeze %422 : memref<1x1x128xf32, #tpu.memory_space<vmem>> -> memref<1x128xf32, #tpu.memory_space<vmem>>
      %424 = tpu.memref_slice %arg8[%c0_i32_294, %c7_i32_295] : memref<2x32x!tpu.dma_semaphore, #tpu.memory_space<semaphore_mem>> -> memref<1x1x!tpu.dma_semaphore, #tpu.memory_space<semaphore_mem>>
      %425 = tpu.memref_squeeze %424 : memref<1x1x!tpu.dma_semaphore, #tpu.memory_space<semaphore_mem>> -> memref<!tpu.dma_semaphore, #tpu.memory_space<semaphore_mem>>
      tpu.enqueue_dma source(%421 : memref<1x128xf32, #tpu.memory_space<any>>) target(%423 : memref<1x128xf32, #tpu.memory_space<vmem>>) target_semaphore(%425 : memref<!tpu.dma_semaphore, #tpu.memory_space<semaphore_mem>>)
      %c8_299 = arith.constant 8 : index
      %426 = memref.load %arg1[%c8_299] : memref<64xi32, #tpu.memory_space<smem>>
      %c0_i32_300 = arith.constant 0 : i32
      %c0_i32_301 = arith.constant 0 : i32
      %c8_i32_302 = arith.constant 8 : i32
      %c0_i32_303 = arith.constant 0 : i32
      %427 = tpu.memref_slice %arg2[%426, %c0_i32_303] : memref<256x128xf32, #tpu.memory_space<any>> -> memref<1x128xf32, #tpu.memory_space<any>>
      %c8_i32_304 = arith.constant 8 : i32
      %c0_i32_305 = arith.constant 0 : i32
      %428 = tpu.memref_slice %arg6[%c0_i32_300, %c8_i32_304, %c0_i32_305] : memref<2x32x128xf32, #tpu.memory_space<vmem>> -> memref<1x1x128xf32, #tpu.memory_space<vmem>>
      %429 = tpu.memref_squeeze %428 : memref<1x1x128xf32, #tpu.memory_space<vmem>> -> memref<1x128xf32, #tpu.memory_space<vmem>>
      %430 = tpu.memref_slice %arg8[%c0_i32_301, %c8_i32_302] : memref<2x32x!tpu.dma_semaphore, #tpu.memory_space<semaphore_mem>> -> memref<1x1x!tpu.dma_semaphore, #tpu.memory_space<semaphore_mem>>
      %431 = tpu.memref_squeeze %430 : memref<1x1x!tpu.dma_semaphore, #tpu.memory_space<semaphore_mem>> -> memref<!tpu.dma_semaphore, #tpu.memory_space<semaphore_mem>>
      tpu.enqueue_dma source(%427 : memref<1x128xf32, #tpu.memory_space<any>>) target(%429 : memref<1x128xf32, #tpu.memory_space<vmem>>) target_semaphore(%431 : memref<!tpu.dma_semaphore, #tpu.memory_space<semaphore_mem>>)
      %c9_306 = arith.constant 9 : index
      %432 = memref.load %arg1[%c9_306] : memref<64xi32, #tpu.memory_space<smem>>
      %c0_i32_307 = arith.constant 0 : i32
      %c0_i32_308 = arith.constant 0 : i32
      %c9_i32_309 = arith.constant 9 : i32
      %c0_i32_310 = arith.constant 0 : i32
      %433 = tpu.memref_slice %arg2[%432, %c0_i32_310] : memref<256x128xf32, #tpu.memory_space<any>> -> memref<1x128xf32, #tpu.memory_space<any>>
      %c9_i32_311 = arith.constant 9 : i32
      %c0_i32_312 = arith.constant 0 : i32
      %434 = tpu.memref_slice %arg6[%c0_i32_307, %c9_i32_311, %c0_i32_312] : memref<2x32x128xf32, #tpu.memory_space<vmem>> -> memref<1x1x128xf32, #tpu.memory_space<vmem>>
      %435 = tpu.memref_squeeze %434 : memref<1x1x128xf32, #tpu.memory_space<vmem>> -> memref<1x128xf32, #tpu.memory_space<vmem>>
      %436 = tpu.memref_slice %arg8[%c0_i32_308, %c9_i32_309] : memref<2x32x!tpu.dma_semaphore, #tpu.memory_space<semaphore_mem>> -> memref<1x1x!tpu.dma_semaphore, #tpu.memory_space<semaphore_mem>>
      %437 = tpu.memref_squeeze %436 : memref<1x1x!tpu.dma_semaphore, #tpu.memory_space<semaphore_mem>> -> memref<!tpu.dma_semaphore, #tpu.memory_space<semaphore_mem>>
      tpu.enqueue_dma source(%433 : memref<1x128xf32, #tpu.memory_space<any>>) target(%435 : memref<1x128xf32, #tpu.memory_space<vmem>>) target_semaphore(%437 : memref<!tpu.dma_semaphore, #tpu.memory_space<semaphore_mem>>)
      %c10_313 = arith.constant 10 : index
      %438 = memref.load %arg1[%c10_313] : memref<64xi32, #tpu.memory_space<smem>>
      %c0_i32_314 = arith.constant 0 : i32
      %c0_i32_315 = arith.constant 0 : i32
      %c10_i32_316 = arith.constant 10 : i32
      %c0_i32_317 = arith.constant 0 : i32
      %439 = tpu.memref_slice %arg2[%438, %c0_i32_317] : memref<256x128xf32, #tpu.memory_space<any>> -> memref<1x128xf32, #tpu.memory_space<any>>
      %c10_i32_318 = arith.constant 10 : i32
      %c0_i32_319 = arith.constant 0 : i32
      %440 = tpu.memref_slice %arg6[%c0_i32_314, %c10_i32_318, %c0_i32_319] : memref<2x32x128xf32, #tpu.memory_space<vmem>> -> memref<1x1x128xf32, #tpu.memory_space<vmem>>
      %441 = tpu.memref_squeeze %440 : memref<1x1x128xf32, #tpu.memory_space<vmem>> -> memref<1x128xf32, #tpu.memory_space<vmem>>
      %442 = tpu.memref_slice %arg8[%c0_i32_315, %c10_i32_316] : memref<2x32x!tpu.dma_semaphore, #tpu.memory_space<semaphore_mem>> -> memref<1x1x!tpu.dma_semaphore, #tpu.memory_space<semaphore_mem>>
      %443 = tpu.memref_squeeze %442 : memref<1x1x!tpu.dma_semaphore, #tpu.memory_space<semaphore_mem>> -> memref<!tpu.dma_semaphore, #tpu.memory_space<semaphore_mem>>
      tpu.enqueue_dma source(%439 : memref<1x128xf32, #tpu.memory_space<any>>) target(%441 : memref<1x128xf32, #tpu.memory_space<vmem>>) target_semaphore(%443 : memref<!tpu.dma_semaphore, #tpu.memory_space<semaphore_mem>>)
      %c11_320 = arith.constant 11 : index
      %444 = memref.load %arg1[%c11_320] : memref<64xi32, #tpu.memory_space<smem>>
      %c0_i32_321 = arith.constant 0 : i32
      %c0_i32_322 = arith.constant 0 : i32
      %c11_i32_323 = arith.constant 11 : i32
      %c0_i32_324 = arith.constant 0 : i32
      %445 = tpu.memref_slice %arg2[%444, %c0_i32_324] : memref<256x128xf32, #tpu.memory_space<any>> -> memref<1x128xf32, #tpu.memory_space<any>>
      %c11_i32_325 = arith.constant 11 : i32
      %c0_i32_326 = arith.constant 0 : i32
      %446 = tpu.memref_slice %arg6[%c0_i32_321, %c11_i32_325, %c0_i32_326] : memref<2x32x128xf32, #tpu.memory_space<vmem>> -> memref<1x1x128xf32, #tpu.memory_space<vmem>>
      %447 = tpu.memref_squeeze %446 : memref<1x1x128xf32, #tpu.memory_space<vmem>> -> memref<1x128xf32, #tpu.memory_space<vmem>>
      %448 = tpu.memref_slice %arg8[%c0_i32_322, %c11_i32_323] : memref<2x32x!tpu.dma_semaphore, #tpu.memory_space<semaphore_mem>> -> memref<1x1x!tpu.dma_semaphore, #tpu.memory_space<semaphore_mem>>
      %449 = tpu.memref_squeeze %448 : memref<1x1x!tpu.dma_semaphore, #tpu.memory_space<semaphore_mem>> -> memref<!tpu.dma_semaphore, #tpu.memory_space<semaphore_mem>>
      tpu.enqueue_dma source(%445 : memref<1x128xf32, #tpu.memory_space<any>>) target(%447 : memref<1x128xf32, #tpu.memory_space<vmem>>) target_semaphore(%449 : memref<!tpu.dma_semaphore, #tpu.memory_space<semaphore_mem>>)
      %c12_327 = arith.constant 12 : index
      %450 = memref.load %arg1[%c12_327] : memref<64xi32, #tpu.memory_space<smem>>
      %c0_i32_328 = arith.constant 0 : i32
      %c0_i32_329 = arith.constant 0 : i32
      %c12_i32_330 = arith.constant 12 : i32
      %c0_i32_331 = arith.constant 0 : i32
      %451 = tpu.memref_slice %arg2[%450, %c0_i32_331] : memref<256x128xf32, #tpu.memory_space<any>> -> memref<1x128xf32, #tpu.memory_space<any>>
      %c12_i32_332 = arith.constant 12 : i32
      %c0_i32_333 = arith.constant 0 : i32
      %452 = tpu.memref_slice %arg6[%c0_i32_328, %c12_i32_332, %c0_i32_333] : memref<2x32x128xf32, #tpu.memory_space<vmem>> -> memref<1x1x128xf32, #tpu.memory_space<vmem>>
      %453 = tpu.memref_squeeze %452 : memref<1x1x128xf32, #tpu.memory_space<vmem>> -> memref<1x128xf32, #tpu.memory_space<vmem>>
      %454 = tpu.memref_slice %arg8[%c0_i32_329, %c12_i32_330] : memref<2x32x!tpu.dma_semaphore, #tpu.memory_space<semaphore_mem>> -> memref<1x1x!tpu.dma_semaphore, #tpu.memory_space<semaphore_mem>>
      %455 = tpu.memref_squeeze %454 : memref<1x1x!tpu.dma_semaphore, #tpu.memory_space<semaphore_mem>> -> memref<!tpu.dma_semaphore, #tpu.memory_space<semaphore_mem>>
      tpu.enqueue_dma source(%451 : memref<1x128xf32, #tpu.memory_space<any>>) target(%453 : memref<1x128xf32, #tpu.memory_space<vmem>>) target_semaphore(%455 : memref<!tpu.dma_semaphore, #tpu.memory_space<semaphore_mem>>)
      %c13_334 = arith.constant 13 : index
      %456 = memref.load %arg1[%c13_334] : memref<64xi32, #tpu.memory_space<smem>>
      %c0_i32_335 = arith.constant 0 : i32
      %c0_i32_336 = arith.constant 0 : i32
      %c13_i32_337 = arith.constant 13 : i32
      %c0_i32_338 = arith.constant 0 : i32
      %457 = tpu.memref_slice %arg2[%456, %c0_i32_338] : memref<256x128xf32, #tpu.memory_space<any>> -> memref<1x128xf32, #tpu.memory_space<any>>
      %c13_i32_339 = arith.constant 13 : i32
      %c0_i32_340 = arith.constant 0 : i32
      %458 = tpu.memref_slice %arg6[%c0_i32_335, %c13_i32_339, %c0_i32_340] : memref<2x32x128xf32, #tpu.memory_space<vmem>> -> memref<1x1x128xf32, #tpu.memory_space<vmem>>
      %459 = tpu.memref_squeeze %458 : memref<1x1x128xf32, #tpu.memory_space<vmem>> -> memref<1x128xf32, #tpu.memory_space<vmem>>
      %460 = tpu.memref_slice %arg8[%c0_i32_336, %c13_i32_337] : memref<2x32x!tpu.dma_semaphore, #tpu.memory_space<semaphore_mem>> -> memref<1x1x!tpu.dma_semaphore, #tpu.memory_space<semaphore_mem>>
      %461 = tpu.memref_squeeze %460 : memref<1x1x!tpu.dma_semaphore, #tpu.memory_space<semaphore_mem>> -> memref<!tpu.dma_semaphore, #tpu.memory_space<semaphore_mem>>
      tpu.enqueue_dma source(%457 : memref<1x128xf32, #tpu.memory_space<any>>) target(%459 : memref<1x128xf32, #tpu.memory_space<vmem>>) target_semaphore(%461 : memref<!tpu.dma_semaphore, #tpu.memory_space<semaphore_mem>>)
      %c14_341 = arith.constant 14 : index
      %462 = memref.load %arg1[%c14_341] : memref<64xi32, #tpu.memory_space<smem>>
      %c0_i32_342 = arith.constant 0 : i32
      %c0_i32_343 = arith.constant 0 : i32
      %c14_i32_344 = arith.constant 14 : i32
      %c0_i32_345 = arith.constant 0 : i32
      %463 = tpu.memref_slice %arg2[%462, %c0_i32_345] : memref<256x128xf32, #tpu.memory_space<any>> -> memref<1x128xf32, #tpu.memory_space<any>>
      %c14_i32_346 = arith.constant 14 : i32
      %c0_i32_347 = arith.constant 0 : i32
      %464 = tpu.memref_slice %arg6[%c0_i32_342, %c14_i32_346, %c0_i32_347] : memref<2x32x128xf32, #tpu.memory_space<vmem>> -> memref<1x1x128xf32, #tpu.memory_space<vmem>>
      %465 = tpu.memref_squeeze %464 : memref<1x1x128xf32, #tpu.memory_space<vmem>> -> memref<1x128xf32, #tpu.memory_space<vmem>>
      %466 = tpu.memref_slice %arg8[%c0_i32_343, %c14_i32_344] : memref<2x32x!tpu.dma_semaphore, #tpu.memory_space<semaphore_mem>> -> memref<1x1x!tpu.dma_semaphore, #tpu.memory_space<semaphore_mem>>
      %467 = tpu.memref_squeeze %466 : memref<1x1x!tpu.dma_semaphore, #tpu.memory_space<semaphore_mem>> -> memref<!tpu.dma_semaphore, #tpu.memory_space<semaphore_mem>>
      tpu.enqueue_dma source(%463 : memref<1x128xf32, #tpu.memory_space<any>>) target(%465 : memref<1x128xf32, #tpu.memory_space<vmem>>) target_semaphore(%467 : memref<!tpu.dma_semaphore, #tpu.memory_space<semaphore_mem>>)
      %c15_348 = arith.constant 15 : index
      %468 = memref.load %arg1[%c15_348] : memref<64xi32, #tpu.memory_space<smem>>
      %c0_i32_349 = arith.constant 0 : i32
      %c0_i32_350 = arith.constant 0 : i32
      %c15_i32_351 = arith.constant 15 : i32
      %c0_i32_352 = arith.constant 0 : i32
      %469 = tpu.memref_slice %arg2[%468, %c0_i32_352] : memref<256x128xf32, #tpu.memory_space<any>> -> memref<1x128xf32, #tpu.memory_space<any>>
      %c15_i32_353 = arith.constant 15 : i32
      %c0_i32_354 = arith.constant 0 : i32
      %470 = tpu.memref_slice %arg6[%c0_i32_349, %c15_i32_353, %c0_i32_354] : memref<2x32x128xf32, #tpu.memory_space<vmem>> -> memref<1x1x128xf32, #tpu.memory_space<vmem>>
      %471 = tpu.memref_squeeze %470 : memref<1x1x128xf32, #tpu.memory_space<vmem>> -> memref<1x128xf32, #tpu.memory_space<vmem>>
      %472 = tpu.memref_slice %arg8[%c0_i32_350, %c15_i32_351] : memref<2x32x!tpu.dma_semaphore, #tpu.memory_space<semaphore_mem>> -> memref<1x1x!tpu.dma_semaphore, #tpu.memory_space<semaphore_mem>>
      %473 = tpu.memref_squeeze %472 : memref<1x1x!tpu.dma_semaphore, #tpu.memory_space<semaphore_mem>> -> memref<!tpu.dma_semaphore, #tpu.memory_space<semaphore_mem>>
      tpu.enqueue_dma source(%469 : memref<1x128xf32, #tpu.memory_space<any>>) target(%471 : memref<1x128xf32, #tpu.memory_space<vmem>>) target_semaphore(%473 : memref<!tpu.dma_semaphore, #tpu.memory_space<semaphore_mem>>)
      %c16_355 = arith.constant 16 : index
      %474 = memref.load %arg1[%c16_355] : memref<64xi32, #tpu.memory_space<smem>>
      %c0_i32_356 = arith.constant 0 : i32
      %c0_i32_357 = arith.constant 0 : i32
      %c16_i32_358 = arith.constant 16 : i32
      %c0_i32_359 = arith.constant 0 : i32
      %475 = tpu.memref_slice %arg2[%474, %c0_i32_359] : memref<256x128xf32, #tpu.memory_space<any>> -> memref<1x128xf32, #tpu.memory_space<any>>
      %c16_i32_360 = arith.constant 16 : i32
      %c0_i32_361 = arith.constant 0 : i32
      %476 = tpu.memref_slice %arg6[%c0_i32_356, %c16_i32_360, %c0_i32_361] : memref<2x32x128xf32, #tpu.memory_space<vmem>> -> memref<1x1x128xf32, #tpu.memory_space<vmem>>
      %477 = tpu.memref_squeeze %476 : memref<1x1x128xf32, #tpu.memory_space<vmem>> -> memref<1x128xf32, #tpu.memory_space<vmem>>
      %478 = tpu.memref_slice %arg8[%c0_i32_357, %c16_i32_358] : memref<2x32x!tpu.dma_semaphore, #tpu.memory_space<semaphore_mem>> -> memref<1x1x!tpu.dma_semaphore, #tpu.memory_space<semaphore_mem>>
      %479 = tpu.memref_squeeze %478 : memref<1x1x!tpu.dma_semaphore, #tpu.memory_space<semaphore_mem>> -> memref<!tpu.dma_semaphore, #tpu.memory_space<semaphore_mem>>
      tpu.enqueue_dma source(%475 : memref<1x128xf32, #tpu.memory_space<any>>) target(%477 : memref<1x128xf32, #tpu.memory_space<vmem>>) target_semaphore(%479 : memref<!tpu.dma_semaphore, #tpu.memory_space<semaphore_mem>>)
      %c17_362 = arith.constant 17 : index
      %480 = memref.load %arg1[%c17_362] : memref<64xi32, #tpu.memory_space<smem>>
      %c0_i32_363 = arith.constant 0 : i32
      %c0_i32_364 = arith.constant 0 : i32
      %c17_i32_365 = arith.constant 17 : i32
      %c0_i32_366 = arith.constant 0 : i32
      %481 = tpu.memref_slice %arg2[%480, %c0_i32_366] : memref<256x128xf32, #tpu.memory_space<any>> -> memref<1x128xf32, #tpu.memory_space<any>>
      %c17_i32_367 = arith.constant 17 : i32
      %c0_i32_368 = arith.constant 0 : i32
      %482 = tpu.memref_slice %arg6[%c0_i32_363, %c17_i32_367, %c0_i32_368] : memref<2x32x128xf32, #tpu.memory_space<vmem>> -> memref<1x1x128xf32, #tpu.memory_space<vmem>>
      %483 = tpu.memref_squeeze %482 : memref<1x1x128xf32, #tpu.memory_space<vmem>> -> memref<1x128xf32, #tpu.memory_space<vmem>>
      %484 = tpu.memref_slice %arg8[%c0_i32_364, %c17_i32_365] : memref<2x32x!tpu.dma_semaphore, #tpu.memory_space<semaphore_mem>> -> memref<1x1x!tpu.dma_semaphore, #tpu.memory_space<semaphore_mem>>
      %485 = tpu.memref_squeeze %484 : memref<1x1x!tpu.dma_semaphore, #tpu.memory_space<semaphore_mem>> -> memref<!tpu.dma_semaphore, #tpu.memory_space<semaphore_mem>>
      tpu.enqueue_dma source(%481 : memref<1x128xf32, #tpu.memory_space<any>>) target(%483 : memref<1x128xf32, #tpu.memory_space<vmem>>) target_semaphore(%485 : memref<!tpu.dma_semaphore, #tpu.memory_space<semaphore_mem>>)
      %c18_369 = arith.constant 18 : index
      %486 = memref.load %arg1[%c18_369] : memref<64xi32, #tpu.memory_space<smem>>
      %c0_i32_370 = arith.constant 0 : i32
      %c0_i32_371 = arith.constant 0 : i32
      %c18_i32_372 = arith.constant 18 : i32
      %c0_i32_373 = arith.constant 0 : i32
      %487 = tpu.memref_slice %arg2[%486, %c0_i32_373] : memref<256x128xf32, #tpu.memory_space<any>> -> memref<1x128xf32, #tpu.memory_space<any>>
      %c18_i32_374 = arith.constant 18 : i32
      %c0_i32_375 = arith.constant 0 : i32
      %488 = tpu.memref_slice %arg6[%c0_i32_370, %c18_i32_374, %c0_i32_375] : memref<2x32x128xf32, #tpu.memory_space<vmem>> -> memref<1x1x128xf32, #tpu.memory_space<vmem>>
      %489 = tpu.memref_squeeze %488 : memref<1x1x128xf32, #tpu.memory_space<vmem>> -> memref<1x128xf32, #tpu.memory_space<vmem>>
      %490 = tpu.memref_slice %arg8[%c0_i32_371, %c18_i32_372] : memref<2x32x!tpu.dma_semaphore, #tpu.memory_space<semaphore_mem>> -> memref<1x1x!tpu.dma_semaphore, #tpu.memory_space<semaphore_mem>>
      %491 = tpu.memref_squeeze %490 : memref<1x1x!tpu.dma_semaphore, #tpu.memory_space<semaphore_mem>> -> memref<!tpu.dma_semaphore, #tpu.memory_space<semaphore_mem>>
      tpu.enqueue_dma source(%487 : memref<1x128xf32, #tpu.memory_space<any>>) target(%489 : memref<1x128xf32, #tpu.memory_space<vmem>>) target_semaphore(%491 : memref<!tpu.dma_semaphore, #tpu.memory_space<semaphore_mem>>)
      %c19_376 = arith.constant 19 : index
      %492 = memref.load %arg1[%c19_376] : memref<64xi32, #tpu.memory_space<smem>>
      %c0_i32_377 = arith.constant 0 : i32
      %c0_i32_378 = arith.constant 0 : i32
      %c19_i32_379 = arith.constant 19 : i32
      %c0_i32_380 = arith.constant 0 : i32
      %493 = tpu.memref_slice %arg2[%492, %c0_i32_380] : memref<256x128xf32, #tpu.memory_space<any>> -> memref<1x128xf32, #tpu.memory_space<any>>
      %c19_i32_381 = arith.constant 19 : i32
      %c0_i32_382 = arith.constant 0 : i32
      %494 = tpu.memref_slice %arg6[%c0_i32_377, %c19_i32_381, %c0_i32_382] : memref<2x32x128xf32, #tpu.memory_space<vmem>> -> memref<1x1x128xf32, #tpu.memory_space<vmem>>
      %495 = tpu.memref_squeeze %494 : memref<1x1x128xf32, #tpu.memory_space<vmem>> -> memref<1x128xf32, #tpu.memory_space<vmem>>
      %496 = tpu.memref_slice %arg8[%c0_i32_378, %c19_i32_379] : memref<2x32x!tpu.dma_semaphore, #tpu.memory_space<semaphore_mem>> -> memref<1x1x!tpu.dma_semaphore, #tpu.memory_space<semaphore_mem>>
      %497 = tpu.memref_squeeze %496 : memref<1x1x!tpu.dma_semaphore, #tpu.memory_space<semaphore_mem>> -> memref<!tpu.dma_semaphore, #tpu.memory_space<semaphore_mem>>
      tpu.enqueue_dma source(%493 : memref<1x128xf32, #tpu.memory_space<any>>) target(%495 : memref<1x128xf32, #tpu.memory_space<vmem>>) target_semaphore(%497 : memref<!tpu.dma_semaphore, #tpu.memory_space<semaphore_mem>>)
      %c20_383 = arith.constant 20 : index
      %498 = memref.load %arg1[%c20_383] : memref<64xi32, #tpu.memory_space<smem>>
      %c0_i32_384 = arith.constant 0 : i32
      %c0_i32_385 = arith.constant 0 : i32
      %c20_i32_386 = arith.constant 20 : i32
      %c0_i32_387 = arith.constant 0 : i32
      %499 = tpu.memref_slice %arg2[%498, %c0_i32_387] : memref<256x128xf32, #tpu.memory_space<any>> -> memref<1x128xf32, #tpu.memory_space<any>>
      %c20_i32_388 = arith.constant 20 : i32
      %c0_i32_389 = arith.constant 0 : i32
      %500 = tpu.memref_slice %arg6[%c0_i32_384, %c20_i32_388, %c0_i32_389] : memref<2x32x128xf32, #tpu.memory_space<vmem>> -> memref<1x1x128xf32, #tpu.memory_space<vmem>>
      %501 = tpu.memref_squeeze %500 : memref<1x1x128xf32, #tpu.memory_space<vmem>> -> memref<1x128xf32, #tpu.memory_space<vmem>>
      %502 = tpu.memref_slice %arg8[%c0_i32_385, %c20_i32_386] : memref<2x32x!tpu.dma_semaphore, #tpu.memory_space<semaphore_mem>> -> memref<1x1x!tpu.dma_semaphore, #tpu.memory_space<semaphore_mem>>
      %503 = tpu.memref_squeeze %502 : memref<1x1x!tpu.dma_semaphore, #tpu.memory_space<semaphore_mem>> -> memref<!tpu.dma_semaphore, #tpu.memory_space<semaphore_mem>>
      tpu.enqueue_dma source(%499 : memref<1x128xf32, #tpu.memory_space<any>>) target(%501 : memref<1x128xf32, #tpu.memory_space<vmem>>) target_semaphore(%503 : memref<!tpu.dma_semaphore, #tpu.memory_space<semaphore_mem>>)
      %c21_390 = arith.constant 21 : index
      %504 = memref.load %arg1[%c21_390] : memref<64xi32, #tpu.memory_space<smem>>
      %c0_i32_391 = arith.constant 0 : i32
      %c0_i32_392 = arith.constant 0 : i32
      %c21_i32_393 = arith.constant 21 : i32
      %c0_i32_394 = arith.constant 0 : i32
      %505 = tpu.memref_slice %arg2[%504, %c0_i32_394] : memref<256x128xf32, #tpu.memory_space<any>> -> memref<1x128xf32, #tpu.memory_space<any>>
      %c21_i32_395 = arith.constant 21 : i32
      %c0_i32_396 = arith.constant 0 : i32
      %506 = tpu.memref_slice %arg6[%c0_i32_391, %c21_i32_395, %c0_i32_396] : memref<2x32x128xf32, #tpu.memory_space<vmem>> -> memref<1x1x128xf32, #tpu.memory_space<vmem>>
      %507 = tpu.memref_squeeze %506 : memref<1x1x128xf32, #tpu.memory_space<vmem>> -> memref<1x128xf32, #tpu.memory_space<vmem>>
      %508 = tpu.memref_slice %arg8[%c0_i32_392, %c21_i32_393] : memref<2x32x!tpu.dma_semaphore, #tpu.memory_space<semaphore_mem>> -> memref<1x1x!tpu.dma_semaphore, #tpu.memory_space<semaphore_mem>>
      %509 = tpu.memref_squeeze %508 : memref<1x1x!tpu.dma_semaphore, #tpu.memory_space<semaphore_mem>> -> memref<!tpu.dma_semaphore, #tpu.memory_space<semaphore_mem>>
      tpu.enqueue_dma source(%505 : memref<1x128xf32, #tpu.memory_space<any>>) target(%507 : memref<1x128xf32, #tpu.memory_space<vmem>>) target_semaphore(%509 : memref<!tpu.dma_semaphore, #tpu.memory_space<semaphore_mem>>)
      %c22_397 = arith.constant 22 : index
      %510 = memref.load %arg1[%c22_397] : memref<64xi32, #tpu.memory_space<smem>>
      %c0_i32_398 = arith.constant 0 : i32
      %c0_i32_399 = arith.constant 0 : i32
      %c22_i32_400 = arith.constant 22 : i32
      %c0_i32_401 = arith.constant 0 : i32
      %511 = tpu.memref_slice %arg2[%510, %c0_i32_401] : memref<256x128xf32, #tpu.memory_space<any>> -> memref<1x128xf32, #tpu.memory_space<any>>
      %c22_i32_402 = arith.constant 22 : i32
      %c0_i32_403 = arith.constant 0 : i32
      %512 = tpu.memref_slice %arg6[%c0_i32_398, %c22_i32_402, %c0_i32_403] : memref<2x32x128xf32, #tpu.memory_space<vmem>> -> memref<1x1x128xf32, #tpu.memory_space<vmem>>
      %513 = tpu.memref_squeeze %512 : memref<1x1x128xf32, #tpu.memory_space<vmem>> -> memref<1x128xf32, #tpu.memory_space<vmem>>
      %514 = tpu.memref_slice %arg8[%c0_i32_399, %c22_i32_400] : memref<2x32x!tpu.dma_semaphore, #tpu.memory_space<semaphore_mem>> -> memref<1x1x!tpu.dma_semaphore, #tpu.memory_space<semaphore_mem>>
      %515 = tpu.memref_squeeze %514 : memref<1x1x!tpu.dma_semaphore, #tpu.memory_space<semaphore_mem>> -> memref<!tpu.dma_semaphore, #tpu.memory_space<semaphore_mem>>
      tpu.enqueue_dma source(%511 : memref<1x128xf32, #tpu.memory_space<any>>) target(%513 : memref<1x128xf32, #tpu.memory_space<vmem>>) target_semaphore(%515 : memref<!tpu.dma_semaphore, #tpu.memory_space<semaphore_mem>>)
      %c23_404 = arith.constant 23 : index
      %516 = memref.load %arg1[%c23_404] : memref<64xi32, #tpu.memory_space<smem>>
      %c0_i32_405 = arith.constant 0 : i32
      %c0_i32_406 = arith.constant 0 : i32
      %c23_i32_407 = arith.constant 23 : i32
      %c0_i32_408 = arith.constant 0 : i32
      %517 = tpu.memref_slice %arg2[%516, %c0_i32_408] : memref<256x128xf32, #tpu.memory_space<any>> -> memref<1x128xf32, #tpu.memory_space<any>>
      %c23_i32_409 = arith.constant 23 : i32
      %c0_i32_410 = arith.constant 0 : i32
      %518 = tpu.memref_slice %arg6[%c0_i32_405, %c23_i32_409, %c0_i32_410] : memref<2x32x128xf32, #tpu.memory_space<vmem>> -> memref<1x1x128xf32, #tpu.memory_space<vmem>>
      %519 = tpu.memref_squeeze %518 : memref<1x1x128xf32, #tpu.memory_space<vmem>> -> memref<1x128xf32, #tpu.memory_space<vmem>>
      %520 = tpu.memref_slice %arg8[%c0_i32_406, %c23_i32_407] : memref<2x32x!tpu.dma_semaphore, #tpu.memory_space<semaphore_mem>> -> memref<1x1x!tpu.dma_semaphore, #tpu.memory_space<semaphore_mem>>
      %521 = tpu.memref_squeeze %520 : memref<1x1x!tpu.dma_semaphore, #tpu.memory_space<semaphore_mem>> -> memref<!tpu.dma_semaphore, #tpu.memory_space<semaphore_mem>>
      tpu.enqueue_dma source(%517 : memref<1x128xf32, #tpu.memory_space<any>>) target(%519 : memref<1x128xf32, #tpu.memory_space<vmem>>) target_semaphore(%521 : memref<!tpu.dma_semaphore, #tpu.memory_space<semaphore_mem>>)
      %c24_411 = arith.constant 24 : index
      %522 = memref.load %arg1[%c24_411] : memref<64xi32, #tpu.memory_space<smem>>
      %c0_i32_412 = arith.constant 0 : i32
      %c0_i32_413 = arith.constant 0 : i32
      %c24_i32_414 = arith.constant 24 : i32
      %c0_i32_415 = arith.constant 0 : i32
      %523 = tpu.memref_slice %arg2[%522, %c0_i32_415] : memref<256x128xf32, #tpu.memory_space<any>> -> memref<1x128xf32, #tpu.memory_space<any>>
      %c24_i32_416 = arith.constant 24 : i32
      %c0_i32_417 = arith.constant 0 : i32
      %524 = tpu.memref_slice %arg6[%c0_i32_412, %c24_i32_416, %c0_i32_417] : memref<2x32x128xf32, #tpu.memory_space<vmem>> -> memref<1x1x128xf32, #tpu.memory_space<vmem>>
      %525 = tpu.memref_squeeze %524 : memref<1x1x128xf32, #tpu.memory_space<vmem>> -> memref<1x128xf32, #tpu.memory_space<vmem>>
      %526 = tpu.memref_slice %arg8[%c0_i32_413, %c24_i32_414] : memref<2x32x!tpu.dma_semaphore, #tpu.memory_space<semaphore_mem>> -> memref<1x1x!tpu.dma_semaphore, #tpu.memory_space<semaphore_mem>>
      %527 = tpu.memref_squeeze %526 : memref<1x1x!tpu.dma_semaphore, #tpu.memory_space<semaphore_mem>> -> memref<!tpu.dma_semaphore, #tpu.memory_space<semaphore_mem>>
      tpu.enqueue_dma source(%523 : memref<1x128xf32, #tpu.memory_space<any>>) target(%525 : memref<1x128xf32, #tpu.memory_space<vmem>>) target_semaphore(%527 : memref<!tpu.dma_semaphore, #tpu.memory_space<semaphore_mem>>)
      %c25_418 = arith.constant 25 : index
      %528 = memref.load %arg1[%c25_418] : memref<64xi32, #tpu.memory_space<smem>>
      %c0_i32_419 = arith.constant 0 : i32
      %c0_i32_420 = arith.constant 0 : i32
      %c25_i32_421 = arith.constant 25 : i32
      %c0_i32_422 = arith.constant 0 : i32
      %529 = tpu.memref_slice %arg2[%528, %c0_i32_422] : memref<256x128xf32, #tpu.memory_space<any>> -> memref<1x128xf32, #tpu.memory_space<any>>
      %c25_i32_423 = arith.constant 25 : i32
      %c0_i32_424 = arith.constant 0 : i32
      %530 = tpu.memref_slice %arg6[%c0_i32_419, %c25_i32_423, %c0_i32_424] : memref<2x32x128xf32, #tpu.memory_space<vmem>> -> memref<1x1x128xf32, #tpu.memory_space<vmem>>
      %531 = tpu.memref_squeeze %530 : memref<1x1x128xf32, #tpu.memory_space<vmem>> -> memref<1x128xf32, #tpu.memory_space<vmem>>
      %532 = tpu.memref_slice %arg8[%c0_i32_420, %c25_i32_421] : memref<2x32x!tpu.dma_semaphore, #tpu.memory_space<semaphore_mem>> -> memref<1x1x!tpu.dma_semaphore, #tpu.memory_space<semaphore_mem>>
      %533 = tpu.memref_squeeze %532 : memref<1x1x!tpu.dma_semaphore, #tpu.memory_space<semaphore_mem>> -> memref<!tpu.dma_semaphore, #tpu.memory_space<semaphore_mem>>
      tpu.enqueue_dma source(%529 : memref<1x128xf32, #tpu.memory_space<any>>) target(%531 : memref<1x128xf32, #tpu.memory_space<vmem>>) target_semaphore(%533 : memref<!tpu.dma_semaphore, #tpu.memory_space<semaphore_mem>>)
      %c26_425 = arith.constant 26 : index
      %534 = memref.load %arg1[%c26_425] : memref<64xi32, #tpu.memory_space<smem>>
      %c0_i32_426 = arith.constant 0 : i32
      %c0_i32_427 = arith.constant 0 : i32
      %c26_i32_428 = arith.constant 26 : i32
      %c0_i32_429 = arith.constant 0 : i32
      %535 = tpu.memref_slice %arg2[%534, %c0_i32_429] : memref<256x128xf32, #tpu.memory_space<any>> -> memref<1x128xf32, #tpu.memory_space<any>>
      %c26_i32_430 = arith.constant 26 : i32
      %c0_i32_431 = arith.constant 0 : i32
      %536 = tpu.memref_slice %arg6[%c0_i32_426, %c26_i32_430, %c0_i32_431] : memref<2x32x128xf32, #tpu.memory_space<vmem>> -> memref<1x1x128xf32, #tpu.memory_space<vmem>>
      %537 = tpu.memref_squeeze %536 : memref<1x1x128xf32, #tpu.memory_space<vmem>> -> memref<1x128xf32, #tpu.memory_space<vmem>>
      %538 = tpu.memref_slice %arg8[%c0_i32_427, %c26_i32_428] : memref<2x32x!tpu.dma_semaphore, #tpu.memory_space<semaphore_mem>> -> memref<1x1x!tpu.dma_semaphore, #tpu.memory_space<semaphore_mem>>
      %539 = tpu.memref_squeeze %538 : memref<1x1x!tpu.dma_semaphore, #tpu.memory_space<semaphore_mem>> -> memref<!tpu.dma_semaphore, #tpu.memory_space<semaphore_mem>>
      tpu.enqueue_dma source(%535 : memref<1x128xf32, #tpu.memory_space<any>>) target(%537 : memref<1x128xf32, #tpu.memory_space<vmem>>) target_semaphore(%539 : memref<!tpu.dma_semaphore, #tpu.memory_space<semaphore_mem>>)
      %c27_432 = arith.constant 27 : index
      %540 = memref.load %arg1[%c27_432] : memref<64xi32, #tpu.memory_space<smem>>
      %c0_i32_433 = arith.constant 0 : i32
      %c0_i32_434 = arith.constant 0 : i32
      %c27_i32_435 = arith.constant 27 : i32
      %c0_i32_436 = arith.constant 0 : i32
      %541 = tpu.memref_slice %arg2[%540, %c0_i32_436] : memref<256x128xf32, #tpu.memory_space<any>> -> memref<1x128xf32, #tpu.memory_space<any>>
      %c27_i32_437 = arith.constant 27 : i32
      %c0_i32_438 = arith.constant 0 : i32
      %542 = tpu.memref_slice %arg6[%c0_i32_433, %c27_i32_437, %c0_i32_438] : memref<2x32x128xf32, #tpu.memory_space<vmem>> -> memref<1x1x128xf32, #tpu.memory_space<vmem>>
      %543 = tpu.memref_squeeze %542 : memref<1x1x128xf32, #tpu.memory_space<vmem>> -> memref<1x128xf32, #tpu.memory_space<vmem>>
      %544 = tpu.memref_slice %arg8[%c0_i32_434, %c27_i32_435] : memref<2x32x!tpu.dma_semaphore, #tpu.memory_space<semaphore_mem>> -> memref<1x1x!tpu.dma_semaphore, #tpu.memory_space<semaphore_mem>>
      %545 = tpu.memref_squeeze %544 : memref<1x1x!tpu.dma_semaphore, #tpu.memory_space<semaphore_mem>> -> memref<!tpu.dma_semaphore, #tpu.memory_space<semaphore_mem>>
      tpu.enqueue_dma source(%541 : memref<1x128xf32, #tpu.memory_space<any>>) target(%543 : memref<1x128xf32, #tpu.memory_space<vmem>>) target_semaphore(%545 : memref<!tpu.dma_semaphore, #tpu.memory_space<semaphore_mem>>)
      %c28_439 = arith.constant 28 : index
      %546 = memref.load %arg1[%c28_439] : memref<64xi32, #tpu.memory_space<smem>>
      %c0_i32_440 = arith.constant 0 : i32
      %c0_i32_441 = arith.constant 0 : i32
      %c28_i32_442 = arith.constant 28 : i32
      %c0_i32_443 = arith.constant 0 : i32
      %547 = tpu.memref_slice %arg2[%546, %c0_i32_443] : memref<256x128xf32, #tpu.memory_space<any>> -> memref<1x128xf32, #tpu.memory_space<any>>
      %c28_i32_444 = arith.constant 28 : i32
      %c0_i32_445 = arith.constant 0 : i32
      %548 = tpu.memref_slice %arg6[%c0_i32_440, %c28_i32_444, %c0_i32_445] : memref<2x32x128xf32, #tpu.memory_space<vmem>> -> memref<1x1x128xf32, #tpu.memory_space<vmem>>
      %549 = tpu.memref_squeeze %548 : memref<1x1x128xf32, #tpu.memory_space<vmem>> -> memref<1x128xf32, #tpu.memory_space<vmem>>
      %550 = tpu.memref_slice %arg8[%c0_i32_441, %c28_i32_442] : memref<2x32x!tpu.dma_semaphore, #tpu.memory_space<semaphore_mem>> -> memref<1x1x!tpu.dma_semaphore, #tpu.memory_space<semaphore_mem>>
      %551 = tpu.memref_squeeze %550 : memref<1x1x!tpu.dma_semaphore, #tpu.memory_space<semaphore_mem>> -> memref<!tpu.dma_semaphore, #tpu.memory_space<semaphore_mem>>
      tpu.enqueue_dma source(%547 : memref<1x128xf32, #tpu.memory_space<any>>) target(%549 : memref<1x128xf32, #tpu.memory_space<vmem>>) target_semaphore(%551 : memref<!tpu.dma_semaphore, #tpu.memory_space<semaphore_mem>>)
      %c29_446 = arith.constant 29 : index
      %552 = memref.load %arg1[%c29_446] : memref<64xi32, #tpu.memory_space<smem>>
      %c0_i32_447 = arith.constant 0 : i32
      %c0_i32_448 = arith.constant 0 : i32
      %c29_i32_449 = arith.constant 29 : i32
      %c0_i32_450 = arith.constant 0 : i32
      %553 = tpu.memref_slice %arg2[%552, %c0_i32_450] : memref<256x128xf32, #tpu.memory_space<any>> -> memref<1x128xf32, #tpu.memory_space<any>>
      %c29_i32_451 = arith.constant 29 : i32
      %c0_i32_452 = arith.constant 0 : i32
      %554 = tpu.memref_slice %arg6[%c0_i32_447, %c29_i32_451, %c0_i32_452] : memref<2x32x128xf32, #tpu.memory_space<vmem>> -> memref<1x1x128xf32, #tpu.memory_space<vmem>>
      %555 = tpu.memref_squeeze %554 : memref<1x1x128xf32, #tpu.memory_space<vmem>> -> memref<1x128xf32, #tpu.memory_space<vmem>>
      %556 = tpu.memref_slice %arg8[%c0_i32_448, %c29_i32_449] : memref<2x32x!tpu.dma_semaphore, #tpu.memory_space<semaphore_mem>> -> memref<1x1x!tpu.dma_semaphore, #tpu.memory_space<semaphore_mem>>
      %557 = tpu.memref_squeeze %556 : memref<1x1x!tpu.dma_semaphore, #tpu.memory_space<semaphore_mem>> -> memref<!tpu.dma_semaphore, #tpu.memory_space<semaphore_mem>>
      tpu.enqueue_dma source(%553 : memref<1x128xf32, #tpu.memory_space<any>>) target(%555 : memref<1x128xf32, #tpu.memory_space<vmem>>) target_semaphore(%557 : memref<!tpu.dma_semaphore, #tpu.memory_space<semaphore_mem>>)
      %c30_453 = arith.constant 30 : index
      %558 = memref.load %arg1[%c30_453] : memref<64xi32, #tpu.memory_space<smem>>
      %c0_i32_454 = arith.constant 0 : i32
      %c0_i32_455 = arith.constant 0 : i32
      %c30_i32_456 = arith.constant 30 : i32
      %c0_i32_457 = arith.constant 0 : i32
      %559 = tpu.memref_slice %arg2[%558, %c0_i32_457] : memref<256x128xf32, #tpu.memory_space<any>> -> memref<1x128xf32, #tpu.memory_space<any>>
      %c30_i32_458 = arith.constant 30 : i32
      %c0_i32_459 = arith.constant 0 : i32
      %560 = tpu.memref_slice %arg6[%c0_i32_454, %c30_i32_458, %c0_i32_459] : memref<2x32x128xf32, #tpu.memory_space<vmem>> -> memref<1x1x128xf32, #tpu.memory_space<vmem>>
      %561 = tpu.memref_squeeze %560 : memref<1x1x128xf32, #tpu.memory_space<vmem>> -> memref<1x128xf32, #tpu.memory_space<vmem>>
      %562 = tpu.memref_slice %arg8[%c0_i32_455, %c30_i32_456] : memref<2x32x!tpu.dma_semaphore, #tpu.memory_space<semaphore_mem>> -> memref<1x1x!tpu.dma_semaphore, #tpu.memory_space<semaphore_mem>>
      %563 = tpu.memref_squeeze %562 : memref<1x1x!tpu.dma_semaphore, #tpu.memory_space<semaphore_mem>> -> memref<!tpu.dma_semaphore, #tpu.memory_space<semaphore_mem>>
      tpu.enqueue_dma source(%559 : memref<1x128xf32, #tpu.memory_space<any>>) target(%561 : memref<1x128xf32, #tpu.memory_space<vmem>>) target_semaphore(%563 : memref<!tpu.dma_semaphore, #tpu.memory_space<semaphore_mem>>)
      %c31_460 = arith.constant 31 : index
      %564 = memref.load %arg1[%c31_460] : memref<64xi32, #tpu.memory_space<smem>>
      %c0_i32_461 = arith.constant 0 : i32
      %c0_i32_462 = arith.constant 0 : i32
      %c31_i32_463 = arith.constant 31 : i32
      %c0_i32_464 = arith.constant 0 : i32
      %565 = tpu.memref_slice %arg2[%564, %c0_i32_464] : memref<256x128xf32, #tpu.memory_space<any>> -> memref<1x128xf32, #tpu.memory_space<any>>
      %c31_i32_465 = arith.constant 31 : i32
      %c0_i32_466 = arith.constant 0 : i32
      %566 = tpu.memref_slice %arg6[%c0_i32_461, %c31_i32_465, %c0_i32_466] : memref<2x32x128xf32, #tpu.memory_space<vmem>> -> memref<1x1x128xf32, #tpu.memory_space<vmem>>
      %567 = tpu.memref_squeeze %566 : memref<1x1x128xf32, #tpu.memory_space<vmem>> -> memref<1x128xf32, #tpu.memory_space<vmem>>
      %568 = tpu.memref_slice %arg8[%c0_i32_462, %c31_i32_463] : memref<2x32x!tpu.dma_semaphore, #tpu.memory_space<semaphore_mem>> -> memref<1x1x!tpu.dma_semaphore, #tpu.memory_space<semaphore_mem>>
      %569 = tpu.memref_squeeze %568 : memref<1x1x!tpu.dma_semaphore, #tpu.memory_space<semaphore_mem>> -> memref<!tpu.dma_semaphore, #tpu.memory_space<semaphore_mem>>
      tpu.enqueue_dma source(%565 : memref<1x128xf32, #tpu.memory_space<any>>) target(%567 : memref<1x128xf32, #tpu.memory_space<vmem>>) target_semaphore(%569 : memref<!tpu.dma_semaphore, #tpu.memory_space<semaphore_mem>>)
    } else {
    }
    %c1_i32_5 = arith.constant 1 : i32
    %13 = arith.addi %arg0, %c1_i32_5 : i32
    %c2_i32_6 = arith.constant 2 : i32
    %14 = arith.cmpi slt, %13, %c2_i32_6 : i32
    %15 = arith.extui %14 : i1 to i32
    %c0_i32_7 = arith.constant 0 : i32
    %16 = arith.cmpi ne, %15, %c0_i32_7 : i32
    scf.if %16 {
      %c1_i32_243 = arith.constant 1 : i32
      %378 = arith.addi %arg0, %c1_i32_243 : i32
      %c1_i32_244 = arith.constant 1 : i32
      %379 = arith.subi %c1_i32_244, %9 : i32
      %c32_i32_245 = arith.constant 32 : i32
      %380 = arith.muli %378, %c32_i32_245 : i32
      %c0_i32_246 = arith.constant 0 : i32
      %381 = arith.addi %380, %c0_i32_246 : i32
      %382 = arith.index_cast %381 : i32 to index
      %383 = memref.load %arg1[%382] : memref<64xi32, #tpu.memory_space<smem>>
      %c0_i32_247 = arith.constant 0 : i32
      %c0_i32_248 = arith.constant 0 : i32
      %384 = tpu.memref_slice %arg2[%383, %c0_i32_248] : memref<256x128xf32, #tpu.memory_space<any>> -> memref<1x128xf32, #tpu.memory_space<any>>
      %c0_i32_249 = arith.constant 0 : i32
      %c0_i32_250 = arith.constant 0 : i32
      %385 = tpu.memref_slice %arg6[%379, %c0_i32_249, %c0_i32_250] : memref<2x32x128xf32, #tpu.memory_space<vmem>> -> memref<1x1x128xf32, #tpu.memory_space<vmem>>
      %386 = tpu.memref_squeeze %385 : memref<1x1x128xf32, #tpu.memory_space<vmem>> -> memref<1x128xf32, #tpu.memory_space<vmem>>
      %387 = tpu.memref_slice %arg8[%379, %c0_i32_247] : memref<2x32x!tpu.dma_semaphore, #tpu.memory_space<semaphore_mem>> -> memref<1x1x!tpu.dma_semaphore, #tpu.memory_space<semaphore_mem>>
      %388 = tpu.memref_squeeze %387 : memref<1x1x!tpu.dma_semaphore, #tpu.memory_space<semaphore_mem>> -> memref<!tpu.dma_semaphore, #tpu.memory_space<semaphore_mem>>
      tpu.enqueue_dma source(%384 : memref<1x128xf32, #tpu.memory_space<any>>) target(%386 : memref<1x128xf32, #tpu.memory_space<vmem>>) target_semaphore(%388 : memref<!tpu.dma_semaphore, #tpu.memory_space<semaphore_mem>>)
      %c1_i32_251 = arith.constant 1 : i32
      %389 = arith.addi %380, %c1_i32_251 : i32
      %390 = arith.index_cast %389 : i32 to index
      %391 = memref.load %arg1[%390] : memref<64xi32, #tpu.memory_space<smem>>
      %c1_i32_252 = arith.constant 1 : i32
      %c0_i32_253 = arith.constant 0 : i32
      %392 = tpu.memref_slice %arg2[%391, %c0_i32_253] : memref<256x128xf32, #tpu.memory_space<any>> -> memref<1x128xf32, #tpu.memory_space<any>>
      %c1_i32_254 = arith.constant 1 : i32
      %c0_i32_255 = arith.constant 0 : i32
      %393 = tpu.memref_slice %arg6[%379, %c1_i32_254, %c0_i32_255] : memref<2x32x128xf32, #tpu.memory_space<vmem>> -> memref<1x1x128xf32, #tpu.memory_space<vmem>>
      %394 = tpu.memref_squeeze %393 : memref<1x1x128xf32, #tpu.memory_space<vmem>> -> memref<1x128xf32, #tpu.memory_space<vmem>>
      %395 = tpu.memref_slice %arg8[%379, %c1_i32_252] : memref<2x32x!tpu.dma_semaphore, #tpu.memory_space<semaphore_mem>> -> memref<1x1x!tpu.dma_semaphore, #tpu.memory_space<semaphore_mem>>
      %396 = tpu.memref_squeeze %395 : memref<1x1x!tpu.dma_semaphore, #tpu.memory_space<semaphore_mem>> -> memref<!tpu.dma_semaphore, #tpu.memory_space<semaphore_mem>>
      tpu.enqueue_dma source(%392 : memref<1x128xf32, #tpu.memory_space<any>>) target(%394 : memref<1x128xf32, #tpu.memory_space<vmem>>) target_semaphore(%396 : memref<!tpu.dma_semaphore, #tpu.memory_space<semaphore_mem>>)
      %c2_i32_256 = arith.constant 2 : i32
      %397 = arith.addi %380, %c2_i32_256 : i32
      %398 = arith.index_cast %397 : i32 to index
      %399 = memref.load %arg1[%398] : memref<64xi32, #tpu.memory_space<smem>>
      %c2_i32_257 = arith.constant 2 : i32
      %c0_i32_258 = arith.constant 0 : i32
      %400 = tpu.memref_slice %arg2[%399, %c0_i32_258] : memref<256x128xf32, #tpu.memory_space<any>> -> memref<1x128xf32, #tpu.memory_space<any>>
      %c2_i32_259 = arith.constant 2 : i32
      %c0_i32_260 = arith.constant 0 : i32
      %401 = tpu.memref_slice %arg6[%379, %c2_i32_259, %c0_i32_260] : memref<2x32x128xf32, #tpu.memory_space<vmem>> -> memref<1x1x128xf32, #tpu.memory_space<vmem>>
      %402 = tpu.memref_squeeze %401 : memref<1x1x128xf32, #tpu.memory_space<vmem>> -> memref<1x128xf32, #tpu.memory_space<vmem>>
      %403 = tpu.memref_slice %arg8[%379, %c2_i32_257] : memref<2x32x!tpu.dma_semaphore, #tpu.memory_space<semaphore_mem>> -> memref<1x1x!tpu.dma_semaphore, #tpu.memory_space<semaphore_mem>>
      %404 = tpu.memref_squeeze %403 : memref<1x1x!tpu.dma_semaphore, #tpu.memory_space<semaphore_mem>> -> memref<!tpu.dma_semaphore, #tpu.memory_space<semaphore_mem>>
      tpu.enqueue_dma source(%400 : memref<1x128xf32, #tpu.memory_space<any>>) target(%402 : memref<1x128xf32, #tpu.memory_space<vmem>>) target_semaphore(%404 : memref<!tpu.dma_semaphore, #tpu.memory_space<semaphore_mem>>)
      %c3_i32_261 = arith.constant 3 : i32
      %405 = arith.addi %380, %c3_i32_261 : i32
      %406 = arith.index_cast %405 : i32 to index
      %407 = memref.load %arg1[%406] : memref<64xi32, #tpu.memory_space<smem>>
      %c3_i32_262 = arith.constant 3 : i32
      %c0_i32_263 = arith.constant 0 : i32
      %408 = tpu.memref_slice %arg2[%407, %c0_i32_263] : memref<256x128xf32, #tpu.memory_space<any>> -> memref<1x128xf32, #tpu.memory_space<any>>
      %c3_i32_264 = arith.constant 3 : i32
      %c0_i32_265 = arith.constant 0 : i32
      %409 = tpu.memref_slice %arg6[%379, %c3_i32_264, %c0_i32_265] : memref<2x32x128xf32, #tpu.memory_space<vmem>> -> memref<1x1x128xf32, #tpu.memory_space<vmem>>
      %410 = tpu.memref_squeeze %409 : memref<1x1x128xf32, #tpu.memory_space<vmem>> -> memref<1x128xf32, #tpu.memory_space<vmem>>
      %411 = tpu.memref_slice %arg8[%379, %c3_i32_262] : memref<2x32x!tpu.dma_semaphore, #tpu.memory_space<semaphore_mem>> -> memref<1x1x!tpu.dma_semaphore, #tpu.memory_space<semaphore_mem>>
      %412 = tpu.memref_squeeze %411 : memref<1x1x!tpu.dma_semaphore, #tpu.memory_space<semaphore_mem>> -> memref<!tpu.dma_semaphore, #tpu.memory_space<semaphore_mem>>
      tpu.enqueue_dma source(%408 : memref<1x128xf32, #tpu.memory_space<any>>) target(%410 : memref<1x128xf32, #tpu.memory_space<vmem>>) target_semaphore(%412 : memref<!tpu.dma_semaphore, #tpu.memory_space<semaphore_mem>>)
      %c4_i32_266 = arith.constant 4 : i32
      %413 = arith.addi %380, %c4_i32_266 : i32
      %414 = arith.index_cast %413 : i32 to index
      %415 = memref.load %arg1[%414] : memref<64xi32, #tpu.memory_space<smem>>
      %c4_i32_267 = arith.constant 4 : i32
      %c0_i32_268 = arith.constant 0 : i32
      %416 = tpu.memref_slice %arg2[%415, %c0_i32_268] : memref<256x128xf32, #tpu.memory_space<any>> -> memref<1x128xf32, #tpu.memory_space<any>>
      %c4_i32_269 = arith.constant 4 : i32
      %c0_i32_270 = arith.constant 0 : i32
      %417 = tpu.memref_slice %arg6[%379, %c4_i32_269, %c0_i32_270] : memref<2x32x128xf32, #tpu.memory_space<vmem>> -> memref<1x1x128xf32, #tpu.memory_space<vmem>>
      %418 = tpu.memref_squeeze %417 : memref<1x1x128xf32, #tpu.memory_space<vmem>> -> memref<1x128xf32, #tpu.memory_space<vmem>>
      %419 = tpu.memref_slice %arg8[%379, %c4_i32_267] : memref<2x32x!tpu.dma_semaphore, #tpu.memory_space<semaphore_mem>> -> memref<1x1x!tpu.dma_semaphore, #tpu.memory_space<semaphore_mem>>
      %420 = tpu.memref_squeeze %419 : memref<1x1x!tpu.dma_semaphore, #tpu.memory_space<semaphore_mem>> -> memref<!tpu.dma_semaphore, #tpu.memory_space<semaphore_mem>>
      tpu.enqueue_dma source(%416 : memref<1x128xf32, #tpu.memory_space<any>>) target(%418 : memref<1x128xf32, #tpu.memory_space<vmem>>) target_semaphore(%420 : memref<!tpu.dma_semaphore, #tpu.memory_space<semaphore_mem>>)
      %c5_i32_271 = arith.constant 5 : i32
      %421 = arith.addi %380, %c5_i32_271 : i32
      %422 = arith.index_cast %421 : i32 to index
      %423 = memref.load %arg1[%422] : memref<64xi32, #tpu.memory_space<smem>>
      %c5_i32_272 = arith.constant 5 : i32
      %c0_i32_273 = arith.constant 0 : i32
      %424 = tpu.memref_slice %arg2[%423, %c0_i32_273] : memref<256x128xf32, #tpu.memory_space<any>> -> memref<1x128xf32, #tpu.memory_space<any>>
      %c5_i32_274 = arith.constant 5 : i32
      %c0_i32_275 = arith.constant 0 : i32
      %425 = tpu.memref_slice %arg6[%379, %c5_i32_274, %c0_i32_275] : memref<2x32x128xf32, #tpu.memory_space<vmem>> -> memref<1x1x128xf32, #tpu.memory_space<vmem>>
      %426 = tpu.memref_squeeze %425 : memref<1x1x128xf32, #tpu.memory_space<vmem>> -> memref<1x128xf32, #tpu.memory_space<vmem>>
      %427 = tpu.memref_slice %arg8[%379, %c5_i32_272] : memref<2x32x!tpu.dma_semaphore, #tpu.memory_space<semaphore_mem>> -> memref<1x1x!tpu.dma_semaphore, #tpu.memory_space<semaphore_mem>>
      %428 = tpu.memref_squeeze %427 : memref<1x1x!tpu.dma_semaphore, #tpu.memory_space<semaphore_mem>> -> memref<!tpu.dma_semaphore, #tpu.memory_space<semaphore_mem>>
      tpu.enqueue_dma source(%424 : memref<1x128xf32, #tpu.memory_space<any>>) target(%426 : memref<1x128xf32, #tpu.memory_space<vmem>>) target_semaphore(%428 : memref<!tpu.dma_semaphore, #tpu.memory_space<semaphore_mem>>)
      %c6_i32_276 = arith.constant 6 : i32
      %429 = arith.addi %380, %c6_i32_276 : i32
      %430 = arith.index_cast %429 : i32 to index
      %431 = memref.load %arg1[%430] : memref<64xi32, #tpu.memory_space<smem>>
      %c6_i32_277 = arith.constant 6 : i32
      %c0_i32_278 = arith.constant 0 : i32
      %432 = tpu.memref_slice %arg2[%431, %c0_i32_278] : memref<256x128xf32, #tpu.memory_space<any>> -> memref<1x128xf32, #tpu.memory_space<any>>
      %c6_i32_279 = arith.constant 6 : i32
      %c0_i32_280 = arith.constant 0 : i32
      %433 = tpu.memref_slice %arg6[%379, %c6_i32_279, %c0_i32_280] : memref<2x32x128xf32, #tpu.memory_space<vmem>> -> memref<1x1x128xf32, #tpu.memory_space<vmem>>
      %434 = tpu.memref_squeeze %433 : memref<1x1x128xf32, #tpu.memory_space<vmem>> -> memref<1x128xf32, #tpu.memory_space<vmem>>
      %435 = tpu.memref_slice %arg8[%379, %c6_i32_277] : memref<2x32x!tpu.dma_semaphore, #tpu.memory_space<semaphore_mem>> -> memref<1x1x!tpu.dma_semaphore, #tpu.memory_space<semaphore_mem>>
      %436 = tpu.memref_squeeze %435 : memref<1x1x!tpu.dma_semaphore, #tpu.memory_space<semaphore_mem>> -> memref<!tpu.dma_semaphore, #tpu.memory_space<semaphore_mem>>
      tpu.enqueue_dma source(%432 : memref<1x128xf32, #tpu.memory_space<any>>) target(%434 : memref<1x128xf32, #tpu.memory_space<vmem>>) target_semaphore(%436 : memref<!tpu.dma_semaphore, #tpu.memory_space<semaphore_mem>>)
      %c7_i32_281 = arith.constant 7 : i32
      %437 = arith.addi %380, %c7_i32_281 : i32
      %438 = arith.index_cast %437 : i32 to index
      %439 = memref.load %arg1[%438] : memref<64xi32, #tpu.memory_space<smem>>
      %c7_i32_282 = arith.constant 7 : i32
      %c0_i32_283 = arith.constant 0 : i32
      %440 = tpu.memref_slice %arg2[%439, %c0_i32_283] : memref<256x128xf32, #tpu.memory_space<any>> -> memref<1x128xf32, #tpu.memory_space<any>>
      %c7_i32_284 = arith.constant 7 : i32
      %c0_i32_285 = arith.constant 0 : i32
      %441 = tpu.memref_slice %arg6[%379, %c7_i32_284, %c0_i32_285] : memref<2x32x128xf32, #tpu.memory_space<vmem>> -> memref<1x1x128xf32, #tpu.memory_space<vmem>>
      %442 = tpu.memref_squeeze %441 : memref<1x1x128xf32, #tpu.memory_space<vmem>> -> memref<1x128xf32, #tpu.memory_space<vmem>>
      %443 = tpu.memref_slice %arg8[%379, %c7_i32_282] : memref<2x32x!tpu.dma_semaphore, #tpu.memory_space<semaphore_mem>> -> memref<1x1x!tpu.dma_semaphore, #tpu.memory_space<semaphore_mem>>
      %444 = tpu.memref_squeeze %443 : memref<1x1x!tpu.dma_semaphore, #tpu.memory_space<semaphore_mem>> -> memref<!tpu.dma_semaphore, #tpu.memory_space<semaphore_mem>>
      tpu.enqueue_dma source(%440 : memref<1x128xf32, #tpu.memory_space<any>>) target(%442 : memref<1x128xf32, #tpu.memory_space<vmem>>) target_semaphore(%444 : memref<!tpu.dma_semaphore, #tpu.memory_space<semaphore_mem>>)
      %c8_i32_286 = arith.constant 8 : i32
      %445 = arith.addi %380, %c8_i32_286 : i32
      %446 = arith.index_cast %445 : i32 to index
      %447 = memref.load %arg1[%446] : memref<64xi32, #tpu.memory_space<smem>>
      %c8_i32_287 = arith.constant 8 : i32
      %c0_i32_288 = arith.constant 0 : i32
      %448 = tpu.memref_slice %arg2[%447, %c0_i32_288] : memref<256x128xf32, #tpu.memory_space<any>> -> memref<1x128xf32, #tpu.memory_space<any>>
      %c8_i32_289 = arith.constant 8 : i32
      %c0_i32_290 = arith.constant 0 : i32
      %449 = tpu.memref_slice %arg6[%379, %c8_i32_289, %c0_i32_290] : memref<2x32x128xf32, #tpu.memory_space<vmem>> -> memref<1x1x128xf32, #tpu.memory_space<vmem>>
      %450 = tpu.memref_squeeze %449 : memref<1x1x128xf32, #tpu.memory_space<vmem>> -> memref<1x128xf32, #tpu.memory_space<vmem>>
      %451 = tpu.memref_slice %arg8[%379, %c8_i32_287] : memref<2x32x!tpu.dma_semaphore, #tpu.memory_space<semaphore_mem>> -> memref<1x1x!tpu.dma_semaphore, #tpu.memory_space<semaphore_mem>>
      %452 = tpu.memref_squeeze %451 : memref<1x1x!tpu.dma_semaphore, #tpu.memory_space<semaphore_mem>> -> memref<!tpu.dma_semaphore, #tpu.memory_space<semaphore_mem>>
      tpu.enqueue_dma source(%448 : memref<1x128xf32, #tpu.memory_space<any>>) target(%450 : memref<1x128xf32, #tpu.memory_space<vmem>>) target_semaphore(%452 : memref<!tpu.dma_semaphore, #tpu.memory_space<semaphore_mem>>)
      %c9_i32_291 = arith.constant 9 : i32
      %453 = arith.addi %380, %c9_i32_291 : i32
      %454 = arith.index_cast %453 : i32 to index
      %455 = memref.load %arg1[%454] : memref<64xi32, #tpu.memory_space<smem>>
      %c9_i32_292 = arith.constant 9 : i32
      %c0_i32_293 = arith.constant 0 : i32
      %456 = tpu.memref_slice %arg2[%455, %c0_i32_293] : memref<256x128xf32, #tpu.memory_space<any>> -> memref<1x128xf32, #tpu.memory_space<any>>
      %c9_i32_294 = arith.constant 9 : i32
      %c0_i32_295 = arith.constant 0 : i32
      %457 = tpu.memref_slice %arg6[%379, %c9_i32_294, %c0_i32_295] : memref<2x32x128xf32, #tpu.memory_space<vmem>> -> memref<1x1x128xf32, #tpu.memory_space<vmem>>
      %458 = tpu.memref_squeeze %457 : memref<1x1x128xf32, #tpu.memory_space<vmem>> -> memref<1x128xf32, #tpu.memory_space<vmem>>
      %459 = tpu.memref_slice %arg8[%379, %c9_i32_292] : memref<2x32x!tpu.dma_semaphore, #tpu.memory_space<semaphore_mem>> -> memref<1x1x!tpu.dma_semaphore, #tpu.memory_space<semaphore_mem>>
      %460 = tpu.memref_squeeze %459 : memref<1x1x!tpu.dma_semaphore, #tpu.memory_space<semaphore_mem>> -> memref<!tpu.dma_semaphore, #tpu.memory_space<semaphore_mem>>
      tpu.enqueue_dma source(%456 : memref<1x128xf32, #tpu.memory_space<any>>) target(%458 : memref<1x128xf32, #tpu.memory_space<vmem>>) target_semaphore(%460 : memref<!tpu.dma_semaphore, #tpu.memory_space<semaphore_mem>>)
      %c10_i32_296 = arith.constant 10 : i32
      %461 = arith.addi %380, %c10_i32_296 : i32
      %462 = arith.index_cast %461 : i32 to index
      %463 = memref.load %arg1[%462] : memref<64xi32, #tpu.memory_space<smem>>
      %c10_i32_297 = arith.constant 10 : i32
      %c0_i32_298 = arith.constant 0 : i32
      %464 = tpu.memref_slice %arg2[%463, %c0_i32_298] : memref<256x128xf32, #tpu.memory_space<any>> -> memref<1x128xf32, #tpu.memory_space<any>>
      %c10_i32_299 = arith.constant 10 : i32
      %c0_i32_300 = arith.constant 0 : i32
      %465 = tpu.memref_slice %arg6[%379, %c10_i32_299, %c0_i32_300] : memref<2x32x128xf32, #tpu.memory_space<vmem>> -> memref<1x1x128xf32, #tpu.memory_space<vmem>>
      %466 = tpu.memref_squeeze %465 : memref<1x1x128xf32, #tpu.memory_space<vmem>> -> memref<1x128xf32, #tpu.memory_space<vmem>>
      %467 = tpu.memref_slice %arg8[%379, %c10_i32_297] : memref<2x32x!tpu.dma_semaphore, #tpu.memory_space<semaphore_mem>> -> memref<1x1x!tpu.dma_semaphore, #tpu.memory_space<semaphore_mem>>
      %468 = tpu.memref_squeeze %467 : memref<1x1x!tpu.dma_semaphore, #tpu.memory_space<semaphore_mem>> -> memref<!tpu.dma_semaphore, #tpu.memory_space<semaphore_mem>>
      tpu.enqueue_dma source(%464 : memref<1x128xf32, #tpu.memory_space<any>>) target(%466 : memref<1x128xf32, #tpu.memory_space<vmem>>) target_semaphore(%468 : memref<!tpu.dma_semaphore, #tpu.memory_space<semaphore_mem>>)
      %c11_i32_301 = arith.constant 11 : i32
      %469 = arith.addi %380, %c11_i32_301 : i32
      %470 = arith.index_cast %469 : i32 to index
      %471 = memref.load %arg1[%470] : memref<64xi32, #tpu.memory_space<smem>>
      %c11_i32_302 = arith.constant 11 : i32
      %c0_i32_303 = arith.constant 0 : i32
      %472 = tpu.memref_slice %arg2[%471, %c0_i32_303] : memref<256x128xf32, #tpu.memory_space<any>> -> memref<1x128xf32, #tpu.memory_space<any>>
      %c11_i32_304 = arith.constant 11 : i32
      %c0_i32_305 = arith.constant 0 : i32
      %473 = tpu.memref_slice %arg6[%379, %c11_i32_304, %c0_i32_305] : memref<2x32x128xf32, #tpu.memory_space<vmem>> -> memref<1x1x128xf32, #tpu.memory_space<vmem>>
      %474 = tpu.memref_squeeze %473 : memref<1x1x128xf32, #tpu.memory_space<vmem>> -> memref<1x128xf32, #tpu.memory_space<vmem>>
      %475 = tpu.memref_slice %arg8[%379, %c11_i32_302] : memref<2x32x!tpu.dma_semaphore, #tpu.memory_space<semaphore_mem>> -> memref<1x1x!tpu.dma_semaphore, #tpu.memory_space<semaphore_mem>>
      %476 = tpu.memref_squeeze %475 : memref<1x1x!tpu.dma_semaphore, #tpu.memory_space<semaphore_mem>> -> memref<!tpu.dma_semaphore, #tpu.memory_space<semaphore_mem>>
      tpu.enqueue_dma source(%472 : memref<1x128xf32, #tpu.memory_space<any>>) target(%474 : memref<1x128xf32, #tpu.memory_space<vmem>>) target_semaphore(%476 : memref<!tpu.dma_semaphore, #tpu.memory_space<semaphore_mem>>)
      %c12_i32_306 = arith.constant 12 : i32
      %477 = arith.addi %380, %c12_i32_306 : i32
      %478 = arith.index_cast %477 : i32 to index
      %479 = memref.load %arg1[%478] : memref<64xi32, #tpu.memory_space<smem>>
      %c12_i32_307 = arith.constant 12 : i32
      %c0_i32_308 = arith.constant 0 : i32
      %480 = tpu.memref_slice %arg2[%479, %c0_i32_308] : memref<256x128xf32, #tpu.memory_space<any>> -> memref<1x128xf32, #tpu.memory_space<any>>
      %c12_i32_309 = arith.constant 12 : i32
      %c0_i32_310 = arith.constant 0 : i32
      %481 = tpu.memref_slice %arg6[%379, %c12_i32_309, %c0_i32_310] : memref<2x32x128xf32, #tpu.memory_space<vmem>> -> memref<1x1x128xf32, #tpu.memory_space<vmem>>
      %482 = tpu.memref_squeeze %481 : memref<1x1x128xf32, #tpu.memory_space<vmem>> -> memref<1x128xf32, #tpu.memory_space<vmem>>
      %483 = tpu.memref_slice %arg8[%379, %c12_i32_307] : memref<2x32x!tpu.dma_semaphore, #tpu.memory_space<semaphore_mem>> -> memref<1x1x!tpu.dma_semaphore, #tpu.memory_space<semaphore_mem>>
      %484 = tpu.memref_squeeze %483 : memref<1x1x!tpu.dma_semaphore, #tpu.memory_space<semaphore_mem>> -> memref<!tpu.dma_semaphore, #tpu.memory_space<semaphore_mem>>
      tpu.enqueue_dma source(%480 : memref<1x128xf32, #tpu.memory_space<any>>) target(%482 : memref<1x128xf32, #tpu.memory_space<vmem>>) target_semaphore(%484 : memref<!tpu.dma_semaphore, #tpu.memory_space<semaphore_mem>>)
      %c13_i32_311 = arith.constant 13 : i32
      %485 = arith.addi %380, %c13_i32_311 : i32
      %486 = arith.index_cast %485 : i32 to index
      %487 = memref.load %arg1[%486] : memref<64xi32, #tpu.memory_space<smem>>
      %c13_i32_312 = arith.constant 13 : i32
      %c0_i32_313 = arith.constant 0 : i32
      %488 = tpu.memref_slice %arg2[%487, %c0_i32_313] : memref<256x128xf32, #tpu.memory_space<any>> -> memref<1x128xf32, #tpu.memory_space<any>>
      %c13_i32_314 = arith.constant 13 : i32
      %c0_i32_315 = arith.constant 0 : i32
      %489 = tpu.memref_slice %arg6[%379, %c13_i32_314, %c0_i32_315] : memref<2x32x128xf32, #tpu.memory_space<vmem>> -> memref<1x1x128xf32, #tpu.memory_space<vmem>>
      %490 = tpu.memref_squeeze %489 : memref<1x1x128xf32, #tpu.memory_space<vmem>> -> memref<1x128xf32, #tpu.memory_space<vmem>>
      %491 = tpu.memref_slice %arg8[%379, %c13_i32_312] : memref<2x32x!tpu.dma_semaphore, #tpu.memory_space<semaphore_mem>> -> memref<1x1x!tpu.dma_semaphore, #tpu.memory_space<semaphore_mem>>
      %492 = tpu.memref_squeeze %491 : memref<1x1x!tpu.dma_semaphore, #tpu.memory_space<semaphore_mem>> -> memref<!tpu.dma_semaphore, #tpu.memory_space<semaphore_mem>>
      tpu.enqueue_dma source(%488 : memref<1x128xf32, #tpu.memory_space<any>>) target(%490 : memref<1x128xf32, #tpu.memory_space<vmem>>) target_semaphore(%492 : memref<!tpu.dma_semaphore, #tpu.memory_space<semaphore_mem>>)
      %c14_i32_316 = arith.constant 14 : i32
      %493 = arith.addi %380, %c14_i32_316 : i32
      %494 = arith.index_cast %493 : i32 to index
      %495 = memref.load %arg1[%494] : memref<64xi32, #tpu.memory_space<smem>>
      %c14_i32_317 = arith.constant 14 : i32
      %c0_i32_318 = arith.constant 0 : i32
      %496 = tpu.memref_slice %arg2[%495, %c0_i32_318] : memref<256x128xf32, #tpu.memory_space<any>> -> memref<1x128xf32, #tpu.memory_space<any>>
      %c14_i32_319 = arith.constant 14 : i32
      %c0_i32_320 = arith.constant 0 : i32
      %497 = tpu.memref_slice %arg6[%379, %c14_i32_319, %c0_i32_320] : memref<2x32x128xf32, #tpu.memory_space<vmem>> -> memref<1x1x128xf32, #tpu.memory_space<vmem>>
      %498 = tpu.memref_squeeze %497 : memref<1x1x128xf32, #tpu.memory_space<vmem>> -> memref<1x128xf32, #tpu.memory_space<vmem>>
      %499 = tpu.memref_slice %arg8[%379, %c14_i32_317] : memref<2x32x!tpu.dma_semaphore, #tpu.memory_space<semaphore_mem>> -> memref<1x1x!tpu.dma_semaphore, #tpu.memory_space<semaphore_mem>>
      %500 = tpu.memref_squeeze %499 : memref<1x1x!tpu.dma_semaphore, #tpu.memory_space<semaphore_mem>> -> memref<!tpu.dma_semaphore, #tpu.memory_space<semaphore_mem>>
      tpu.enqueue_dma source(%496 : memref<1x128xf32, #tpu.memory_space<any>>) target(%498 : memref<1x128xf32, #tpu.memory_space<vmem>>) target_semaphore(%500 : memref<!tpu.dma_semaphore, #tpu.memory_space<semaphore_mem>>)
      %c15_i32_321 = arith.constant 15 : i32
      %501 = arith.addi %380, %c15_i32_321 : i32
      %502 = arith.index_cast %501 : i32 to index
      %503 = memref.load %arg1[%502] : memref<64xi32, #tpu.memory_space<smem>>
      %c15_i32_322 = arith.constant 15 : i32
      %c0_i32_323 = arith.constant 0 : i32
      %504 = tpu.memref_slice %arg2[%503, %c0_i32_323] : memref<256x128xf32, #tpu.memory_space<any>> -> memref<1x128xf32, #tpu.memory_space<any>>
      %c15_i32_324 = arith.constant 15 : i32
      %c0_i32_325 = arith.constant 0 : i32
      %505 = tpu.memref_slice %arg6[%379, %c15_i32_324, %c0_i32_325] : memref<2x32x128xf32, #tpu.memory_space<vmem>> -> memref<1x1x128xf32, #tpu.memory_space<vmem>>
      %506 = tpu.memref_squeeze %505 : memref<1x1x128xf32, #tpu.memory_space<vmem>> -> memref<1x128xf32, #tpu.memory_space<vmem>>
      %507 = tpu.memref_slice %arg8[%379, %c15_i32_322] : memref<2x32x!tpu.dma_semaphore, #tpu.memory_space<semaphore_mem>> -> memref<1x1x!tpu.dma_semaphore, #tpu.memory_space<semaphore_mem>>
      %508 = tpu.memref_squeeze %507 : memref<1x1x!tpu.dma_semaphore, #tpu.memory_space<semaphore_mem>> -> memref<!tpu.dma_semaphore, #tpu.memory_space<semaphore_mem>>
      tpu.enqueue_dma source(%504 : memref<1x128xf32, #tpu.memory_space<any>>) target(%506 : memref<1x128xf32, #tpu.memory_space<vmem>>) target_semaphore(%508 : memref<!tpu.dma_semaphore, #tpu.memory_space<semaphore_mem>>)
      %c16_i32_326 = arith.constant 16 : i32
      %509 = arith.addi %380, %c16_i32_326 : i32
      %510 = arith.index_cast %509 : i32 to index
      %511 = memref.load %arg1[%510] : memref<64xi32, #tpu.memory_space<smem>>
      %c16_i32_327 = arith.constant 16 : i32
      %c0_i32_328 = arith.constant 0 : i32
      %512 = tpu.memref_slice %arg2[%511, %c0_i32_328] : memref<256x128xf32, #tpu.memory_space<any>> -> memref<1x128xf32, #tpu.memory_space<any>>
      %c16_i32_329 = arith.constant 16 : i32
      %c0_i32_330 = arith.constant 0 : i32
      %513 = tpu.memref_slice %arg6[%379, %c16_i32_329, %c0_i32_330] : memref<2x32x128xf32, #tpu.memory_space<vmem>> -> memref<1x1x128xf32, #tpu.memory_space<vmem>>
      %514 = tpu.memref_squeeze %513 : memref<1x1x128xf32, #tpu.memory_space<vmem>> -> memref<1x128xf32, #tpu.memory_space<vmem>>
      %515 = tpu.memref_slice %arg8[%379, %c16_i32_327] : memref<2x32x!tpu.dma_semaphore, #tpu.memory_space<semaphore_mem>> -> memref<1x1x!tpu.dma_semaphore, #tpu.memory_space<semaphore_mem>>
      %516 = tpu.memref_squeeze %515 : memref<1x1x!tpu.dma_semaphore, #tpu.memory_space<semaphore_mem>> -> memref<!tpu.dma_semaphore, #tpu.memory_space<semaphore_mem>>
      tpu.enqueue_dma source(%512 : memref<1x128xf32, #tpu.memory_space<any>>) target(%514 : memref<1x128xf32, #tpu.memory_space<vmem>>) target_semaphore(%516 : memref<!tpu.dma_semaphore, #tpu.memory_space<semaphore_mem>>)
      %c17_i32_331 = arith.constant 17 : i32
      %517 = arith.addi %380, %c17_i32_331 : i32
      %518 = arith.index_cast %517 : i32 to index
      %519 = memref.load %arg1[%518] : memref<64xi32, #tpu.memory_space<smem>>
      %c17_i32_332 = arith.constant 17 : i32
      %c0_i32_333 = arith.constant 0 : i32
      %520 = tpu.memref_slice %arg2[%519, %c0_i32_333] : memref<256x128xf32, #tpu.memory_space<any>> -> memref<1x128xf32, #tpu.memory_space<any>>
      %c17_i32_334 = arith.constant 17 : i32
      %c0_i32_335 = arith.constant 0 : i32
      %521 = tpu.memref_slice %arg6[%379, %c17_i32_334, %c0_i32_335] : memref<2x32x128xf32, #tpu.memory_space<vmem>> -> memref<1x1x128xf32, #tpu.memory_space<vmem>>
      %522 = tpu.memref_squeeze %521 : memref<1x1x128xf32, #tpu.memory_space<vmem>> -> memref<1x128xf32, #tpu.memory_space<vmem>>
      %523 = tpu.memref_slice %arg8[%379, %c17_i32_332] : memref<2x32x!tpu.dma_semaphore, #tpu.memory_space<semaphore_mem>> -> memref<1x1x!tpu.dma_semaphore, #tpu.memory_space<semaphore_mem>>
      %524 = tpu.memref_squeeze %523 : memref<1x1x!tpu.dma_semaphore, #tpu.memory_space<semaphore_mem>> -> memref<!tpu.dma_semaphore, #tpu.memory_space<semaphore_mem>>
      tpu.enqueue_dma source(%520 : memref<1x128xf32, #tpu.memory_space<any>>) target(%522 : memref<1x128xf32, #tpu.memory_space<vmem>>) target_semaphore(%524 : memref<!tpu.dma_semaphore, #tpu.memory_space<semaphore_mem>>)
      %c18_i32_336 = arith.constant 18 : i32
      %525 = arith.addi %380, %c18_i32_336 : i32
      %526 = arith.index_cast %525 : i32 to index
      %527 = memref.load %arg1[%526] : memref<64xi32, #tpu.memory_space<smem>>
      %c18_i32_337 = arith.constant 18 : i32
      %c0_i32_338 = arith.constant 0 : i32
      %528 = tpu.memref_slice %arg2[%527, %c0_i32_338] : memref<256x128xf32, #tpu.memory_space<any>> -> memref<1x128xf32, #tpu.memory_space<any>>
      %c18_i32_339 = arith.constant 18 : i32
      %c0_i32_340 = arith.constant 0 : i32
      %529 = tpu.memref_slice %arg6[%379, %c18_i32_339, %c0_i32_340] : memref<2x32x128xf32, #tpu.memory_space<vmem>> -> memref<1x1x128xf32, #tpu.memory_space<vmem>>
      %530 = tpu.memref_squeeze %529 : memref<1x1x128xf32, #tpu.memory_space<vmem>> -> memref<1x128xf32, #tpu.memory_space<vmem>>
      %531 = tpu.memref_slice %arg8[%379, %c18_i32_337] : memref<2x32x!tpu.dma_semaphore, #tpu.memory_space<semaphore_mem>> -> memref<1x1x!tpu.dma_semaphore, #tpu.memory_space<semaphore_mem>>
      %532 = tpu.memref_squeeze %531 : memref<1x1x!tpu.dma_semaphore, #tpu.memory_space<semaphore_mem>> -> memref<!tpu.dma_semaphore, #tpu.memory_space<semaphore_mem>>
      tpu.enqueue_dma source(%528 : memref<1x128xf32, #tpu.memory_space<any>>) target(%530 : memref<1x128xf32, #tpu.memory_space<vmem>>) target_semaphore(%532 : memref<!tpu.dma_semaphore, #tpu.memory_space<semaphore_mem>>)
      %c19_i32_341 = arith.constant 19 : i32
      %533 = arith.addi %380, %c19_i32_341 : i32
      %534 = arith.index_cast %533 : i32 to index
      %535 = memref.load %arg1[%534] : memref<64xi32, #tpu.memory_space<smem>>
      %c19_i32_342 = arith.constant 19 : i32
      %c0_i32_343 = arith.constant 0 : i32
      %536 = tpu.memref_slice %arg2[%535, %c0_i32_343] : memref<256x128xf32, #tpu.memory_space<any>> -> memref<1x128xf32, #tpu.memory_space<any>>
      %c19_i32_344 = arith.constant 19 : i32
      %c0_i32_345 = arith.constant 0 : i32
      %537 = tpu.memref_slice %arg6[%379, %c19_i32_344, %c0_i32_345] : memref<2x32x128xf32, #tpu.memory_space<vmem>> -> memref<1x1x128xf32, #tpu.memory_space<vmem>>
      %538 = tpu.memref_squeeze %537 : memref<1x1x128xf32, #tpu.memory_space<vmem>> -> memref<1x128xf32, #tpu.memory_space<vmem>>
      %539 = tpu.memref_slice %arg8[%379, %c19_i32_342] : memref<2x32x!tpu.dma_semaphore, #tpu.memory_space<semaphore_mem>> -> memref<1x1x!tpu.dma_semaphore, #tpu.memory_space<semaphore_mem>>
      %540 = tpu.memref_squeeze %539 : memref<1x1x!tpu.dma_semaphore, #tpu.memory_space<semaphore_mem>> -> memref<!tpu.dma_semaphore, #tpu.memory_space<semaphore_mem>>
      tpu.enqueue_dma source(%536 : memref<1x128xf32, #tpu.memory_space<any>>) target(%538 : memref<1x128xf32, #tpu.memory_space<vmem>>) target_semaphore(%540 : memref<!tpu.dma_semaphore, #tpu.memory_space<semaphore_mem>>)
      %c20_i32_346 = arith.constant 20 : i32
      %541 = arith.addi %380, %c20_i32_346 : i32
      %542 = arith.index_cast %541 : i32 to index
      %543 = memref.load %arg1[%542] : memref<64xi32, #tpu.memory_space<smem>>
      %c20_i32_347 = arith.constant 20 : i32
      %c0_i32_348 = arith.constant 0 : i32
      %544 = tpu.memref_slice %arg2[%543, %c0_i32_348] : memref<256x128xf32, #tpu.memory_space<any>> -> memref<1x128xf32, #tpu.memory_space<any>>
      %c20_i32_349 = arith.constant 20 : i32
      %c0_i32_350 = arith.constant 0 : i32
      %545 = tpu.memref_slice %arg6[%379, %c20_i32_349, %c0_i32_350] : memref<2x32x128xf32, #tpu.memory_space<vmem>> -> memref<1x1x128xf32, #tpu.memory_space<vmem>>
      %546 = tpu.memref_squeeze %545 : memref<1x1x128xf32, #tpu.memory_space<vmem>> -> memref<1x128xf32, #tpu.memory_space<vmem>>
      %547 = tpu.memref_slice %arg8[%379, %c20_i32_347] : memref<2x32x!tpu.dma_semaphore, #tpu.memory_space<semaphore_mem>> -> memref<1x1x!tpu.dma_semaphore, #tpu.memory_space<semaphore_mem>>
      %548 = tpu.memref_squeeze %547 : memref<1x1x!tpu.dma_semaphore, #tpu.memory_space<semaphore_mem>> -> memref<!tpu.dma_semaphore, #tpu.memory_space<semaphore_mem>>
      tpu.enqueue_dma source(%544 : memref<1x128xf32, #tpu.memory_space<any>>) target(%546 : memref<1x128xf32, #tpu.memory_space<vmem>>) target_semaphore(%548 : memref<!tpu.dma_semaphore, #tpu.memory_space<semaphore_mem>>)
      %c21_i32_351 = arith.constant 21 : i32
      %549 = arith.addi %380, %c21_i32_351 : i32
      %550 = arith.index_cast %549 : i32 to index
      %551 = memref.load %arg1[%550] : memref<64xi32, #tpu.memory_space<smem>>
      %c21_i32_352 = arith.constant 21 : i32
      %c0_i32_353 = arith.constant 0 : i32
      %552 = tpu.memref_slice %arg2[%551, %c0_i32_353] : memref<256x128xf32, #tpu.memory_space<any>> -> memref<1x128xf32, #tpu.memory_space<any>>
      %c21_i32_354 = arith.constant 21 : i32
      %c0_i32_355 = arith.constant 0 : i32
      %553 = tpu.memref_slice %arg6[%379, %c21_i32_354, %c0_i32_355] : memref<2x32x128xf32, #tpu.memory_space<vmem>> -> memref<1x1x128xf32, #tpu.memory_space<vmem>>
      %554 = tpu.memref_squeeze %553 : memref<1x1x128xf32, #tpu.memory_space<vmem>> -> memref<1x128xf32, #tpu.memory_space<vmem>>
      %555 = tpu.memref_slice %arg8[%379, %c21_i32_352] : memref<2x32x!tpu.dma_semaphore, #tpu.memory_space<semaphore_mem>> -> memref<1x1x!tpu.dma_semaphore, #tpu.memory_space<semaphore_mem>>
      %556 = tpu.memref_squeeze %555 : memref<1x1x!tpu.dma_semaphore, #tpu.memory_space<semaphore_mem>> -> memref<!tpu.dma_semaphore, #tpu.memory_space<semaphore_mem>>
      tpu.enqueue_dma source(%552 : memref<1x128xf32, #tpu.memory_space<any>>) target(%554 : memref<1x128xf32, #tpu.memory_space<vmem>>) target_semaphore(%556 : memref<!tpu.dma_semaphore, #tpu.memory_space<semaphore_mem>>)
      %c22_i32_356 = arith.constant 22 : i32
      %557 = arith.addi %380, %c22_i32_356 : i32
      %558 = arith.index_cast %557 : i32 to index
      %559 = memref.load %arg1[%558] : memref<64xi32, #tpu.memory_space<smem>>
      %c22_i32_357 = arith.constant 22 : i32
      %c0_i32_358 = arith.constant 0 : i32
      %560 = tpu.memref_slice %arg2[%559, %c0_i32_358] : memref<256x128xf32, #tpu.memory_space<any>> -> memref<1x128xf32, #tpu.memory_space<any>>
      %c22_i32_359 = arith.constant 22 : i32
      %c0_i32_360 = arith.constant 0 : i32
      %561 = tpu.memref_slice %arg6[%379, %c22_i32_359, %c0_i32_360] : memref<2x32x128xf32, #tpu.memory_space<vmem>> -> memref<1x1x128xf32, #tpu.memory_space<vmem>>
      %562 = tpu.memref_squeeze %561 : memref<1x1x128xf32, #tpu.memory_space<vmem>> -> memref<1x128xf32, #tpu.memory_space<vmem>>
      %563 = tpu.memref_slice %arg8[%379, %c22_i32_357] : memref<2x32x!tpu.dma_semaphore, #tpu.memory_space<semaphore_mem>> -> memref<1x1x!tpu.dma_semaphore, #tpu.memory_space<semaphore_mem>>
      %564 = tpu.memref_squeeze %563 : memref<1x1x!tpu.dma_semaphore, #tpu.memory_space<semaphore_mem>> -> memref<!tpu.dma_semaphore, #tpu.memory_space<semaphore_mem>>
      tpu.enqueue_dma source(%560 : memref<1x128xf32, #tpu.memory_space<any>>) target(%562 : memref<1x128xf32, #tpu.memory_space<vmem>>) target_semaphore(%564 : memref<!tpu.dma_semaphore, #tpu.memory_space<semaphore_mem>>)
      %c23_i32_361 = arith.constant 23 : i32
      %565 = arith.addi %380, %c23_i32_361 : i32
      %566 = arith.index_cast %565 : i32 to index
      %567 = memref.load %arg1[%566] : memref<64xi32, #tpu.memory_space<smem>>
      %c23_i32_362 = arith.constant 23 : i32
      %c0_i32_363 = arith.constant 0 : i32
      %568 = tpu.memref_slice %arg2[%567, %c0_i32_363] : memref<256x128xf32, #tpu.memory_space<any>> -> memref<1x128xf32, #tpu.memory_space<any>>
      %c23_i32_364 = arith.constant 23 : i32
      %c0_i32_365 = arith.constant 0 : i32
      %569 = tpu.memref_slice %arg6[%379, %c23_i32_364, %c0_i32_365] : memref<2x32x128xf32, #tpu.memory_space<vmem>> -> memref<1x1x128xf32, #tpu.memory_space<vmem>>
      %570 = tpu.memref_squeeze %569 : memref<1x1x128xf32, #tpu.memory_space<vmem>> -> memref<1x128xf32, #tpu.memory_space<vmem>>
      %571 = tpu.memref_slice %arg8[%379, %c23_i32_362] : memref<2x32x!tpu.dma_semaphore, #tpu.memory_space<semaphore_mem>> -> memref<1x1x!tpu.dma_semaphore, #tpu.memory_space<semaphore_mem>>
      %572 = tpu.memref_squeeze %571 : memref<1x1x!tpu.dma_semaphore, #tpu.memory_space<semaphore_mem>> -> memref<!tpu.dma_semaphore, #tpu.memory_space<semaphore_mem>>
      tpu.enqueue_dma source(%568 : memref<1x128xf32, #tpu.memory_space<any>>) target(%570 : memref<1x128xf32, #tpu.memory_space<vmem>>) target_semaphore(%572 : memref<!tpu.dma_semaphore, #tpu.memory_space<semaphore_mem>>)
      %c24_i32_366 = arith.constant 24 : i32
      %573 = arith.addi %380, %c24_i32_366 : i32
      %574 = arith.index_cast %573 : i32 to index
      %575 = memref.load %arg1[%574] : memref<64xi32, #tpu.memory_space<smem>>
      %c24_i32_367 = arith.constant 24 : i32
      %c0_i32_368 = arith.constant 0 : i32
      %576 = tpu.memref_slice %arg2[%575, %c0_i32_368] : memref<256x128xf32, #tpu.memory_space<any>> -> memref<1x128xf32, #tpu.memory_space<any>>
      %c24_i32_369 = arith.constant 24 : i32
      %c0_i32_370 = arith.constant 0 : i32
      %577 = tpu.memref_slice %arg6[%379, %c24_i32_369, %c0_i32_370] : memref<2x32x128xf32, #tpu.memory_space<vmem>> -> memref<1x1x128xf32, #tpu.memory_space<vmem>>
      %578 = tpu.memref_squeeze %577 : memref<1x1x128xf32, #tpu.memory_space<vmem>> -> memref<1x128xf32, #tpu.memory_space<vmem>>
      %579 = tpu.memref_slice %arg8[%379, %c24_i32_367] : memref<2x32x!tpu.dma_semaphore, #tpu.memory_space<semaphore_mem>> -> memref<1x1x!tpu.dma_semaphore, #tpu.memory_space<semaphore_mem>>
      %580 = tpu.memref_squeeze %579 : memref<1x1x!tpu.dma_semaphore, #tpu.memory_space<semaphore_mem>> -> memref<!tpu.dma_semaphore, #tpu.memory_space<semaphore_mem>>
      tpu.enqueue_dma source(%576 : memref<1x128xf32, #tpu.memory_space<any>>) target(%578 : memref<1x128xf32, #tpu.memory_space<vmem>>) target_semaphore(%580 : memref<!tpu.dma_semaphore, #tpu.memory_space<semaphore_mem>>)
      %c25_i32_371 = arith.constant 25 : i32
      %581 = arith.addi %380, %c25_i32_371 : i32
      %582 = arith.index_cast %581 : i32 to index
      %583 = memref.load %arg1[%582] : memref<64xi32, #tpu.memory_space<smem>>
      %c25_i32_372 = arith.constant 25 : i32
      %c0_i32_373 = arith.constant 0 : i32
      %584 = tpu.memref_slice %arg2[%583, %c0_i32_373] : memref<256x128xf32, #tpu.memory_space<any>> -> memref<1x128xf32, #tpu.memory_space<any>>
      %c25_i32_374 = arith.constant 25 : i32
      %c0_i32_375 = arith.constant 0 : i32
      %585 = tpu.memref_slice %arg6[%379, %c25_i32_374, %c0_i32_375] : memref<2x32x128xf32, #tpu.memory_space<vmem>> -> memref<1x1x128xf32, #tpu.memory_space<vmem>>
      %586 = tpu.memref_squeeze %585 : memref<1x1x128xf32, #tpu.memory_space<vmem>> -> memref<1x128xf32, #tpu.memory_space<vmem>>
      %587 = tpu.memref_slice %arg8[%379, %c25_i32_372] : memref<2x32x!tpu.dma_semaphore, #tpu.memory_space<semaphore_mem>> -> memref<1x1x!tpu.dma_semaphore, #tpu.memory_space<semaphore_mem>>
      %588 = tpu.memref_squeeze %587 : memref<1x1x!tpu.dma_semaphore, #tpu.memory_space<semaphore_mem>> -> memref<!tpu.dma_semaphore, #tpu.memory_space<semaphore_mem>>
      tpu.enqueue_dma source(%584 : memref<1x128xf32, #tpu.memory_space<any>>) target(%586 : memref<1x128xf32, #tpu.memory_space<vmem>>) target_semaphore(%588 : memref<!tpu.dma_semaphore, #tpu.memory_space<semaphore_mem>>)
      %c26_i32_376 = arith.constant 26 : i32
      %589 = arith.addi %380, %c26_i32_376 : i32
      %590 = arith.index_cast %589 : i32 to index
      %591 = memref.load %arg1[%590] : memref<64xi32, #tpu.memory_space<smem>>
      %c26_i32_377 = arith.constant 26 : i32
      %c0_i32_378 = arith.constant 0 : i32
      %592 = tpu.memref_slice %arg2[%591, %c0_i32_378] : memref<256x128xf32, #tpu.memory_space<any>> -> memref<1x128xf32, #tpu.memory_space<any>>
      %c26_i32_379 = arith.constant 26 : i32
      %c0_i32_380 = arith.constant 0 : i32
      %593 = tpu.memref_slice %arg6[%379, %c26_i32_379, %c0_i32_380] : memref<2x32x128xf32, #tpu.memory_space<vmem>> -> memref<1x1x128xf32, #tpu.memory_space<vmem>>
      %594 = tpu.memref_squeeze %593 : memref<1x1x128xf32, #tpu.memory_space<vmem>> -> memref<1x128xf32, #tpu.memory_space<vmem>>
      %595 = tpu.memref_slice %arg8[%379, %c26_i32_377] : memref<2x32x!tpu.dma_semaphore, #tpu.memory_space<semaphore_mem>> -> memref<1x1x!tpu.dma_semaphore, #tpu.memory_space<semaphore_mem>>
      %596 = tpu.memref_squeeze %595 : memref<1x1x!tpu.dma_semaphore, #tpu.memory_space<semaphore_mem>> -> memref<!tpu.dma_semaphore, #tpu.memory_space<semaphore_mem>>
      tpu.enqueue_dma source(%592 : memref<1x128xf32, #tpu.memory_space<any>>) target(%594 : memref<1x128xf32, #tpu.memory_space<vmem>>) target_semaphore(%596 : memref<!tpu.dma_semaphore, #tpu.memory_space<semaphore_mem>>)
      %c27_i32_381 = arith.constant 27 : i32
      %597 = arith.addi %380, %c27_i32_381 : i32
      %598 = arith.index_cast %597 : i32 to index
      %599 = memref.load %arg1[%598] : memref<64xi32, #tpu.memory_space<smem>>
      %c27_i32_382 = arith.constant 27 : i32
      %c0_i32_383 = arith.constant 0 : i32
      %600 = tpu.memref_slice %arg2[%599, %c0_i32_383] : memref<256x128xf32, #tpu.memory_space<any>> -> memref<1x128xf32, #tpu.memory_space<any>>
      %c27_i32_384 = arith.constant 27 : i32
      %c0_i32_385 = arith.constant 0 : i32
      %601 = tpu.memref_slice %arg6[%379, %c27_i32_384, %c0_i32_385] : memref<2x32x128xf32, #tpu.memory_space<vmem>> -> memref<1x1x128xf32, #tpu.memory_space<vmem>>
      %602 = tpu.memref_squeeze %601 : memref<1x1x128xf32, #tpu.memory_space<vmem>> -> memref<1x128xf32, #tpu.memory_space<vmem>>
      %603 = tpu.memref_slice %arg8[%379, %c27_i32_382] : memref<2x32x!tpu.dma_semaphore, #tpu.memory_space<semaphore_mem>> -> memref<1x1x!tpu.dma_semaphore, #tpu.memory_space<semaphore_mem>>
      %604 = tpu.memref_squeeze %603 : memref<1x1x!tpu.dma_semaphore, #tpu.memory_space<semaphore_mem>> -> memref<!tpu.dma_semaphore, #tpu.memory_space<semaphore_mem>>
      tpu.enqueue_dma source(%600 : memref<1x128xf32, #tpu.memory_space<any>>) target(%602 : memref<1x128xf32, #tpu.memory_space<vmem>>) target_semaphore(%604 : memref<!tpu.dma_semaphore, #tpu.memory_space<semaphore_mem>>)
      %c28_i32_386 = arith.constant 28 : i32
      %605 = arith.addi %380, %c28_i32_386 : i32
      %606 = arith.index_cast %605 : i32 to index
      %607 = memref.load %arg1[%606] : memref<64xi32, #tpu.memory_space<smem>>
      %c28_i32_387 = arith.constant 28 : i32
      %c0_i32_388 = arith.constant 0 : i32
      %608 = tpu.memref_slice %arg2[%607, %c0_i32_388] : memref<256x128xf32, #tpu.memory_space<any>> -> memref<1x128xf32, #tpu.memory_space<any>>
      %c28_i32_389 = arith.constant 28 : i32
      %c0_i32_390 = arith.constant 0 : i32
      %609 = tpu.memref_slice %arg6[%379, %c28_i32_389, %c0_i32_390] : memref<2x32x128xf32, #tpu.memory_space<vmem>> -> memref<1x1x128xf32, #tpu.memory_space<vmem>>
      %610 = tpu.memref_squeeze %609 : memref<1x1x128xf32, #tpu.memory_space<vmem>> -> memref<1x128xf32, #tpu.memory_space<vmem>>
      %611 = tpu.memref_slice %arg8[%379, %c28_i32_387] : memref<2x32x!tpu.dma_semaphore, #tpu.memory_space<semaphore_mem>> -> memref<1x1x!tpu.dma_semaphore, #tpu.memory_space<semaphore_mem>>
      %612 = tpu.memref_squeeze %611 : memref<1x1x!tpu.dma_semaphore, #tpu.memory_space<semaphore_mem>> -> memref<!tpu.dma_semaphore, #tpu.memory_space<semaphore_mem>>
      tpu.enqueue_dma source(%608 : memref<1x128xf32, #tpu.memory_space<any>>) target(%610 : memref<1x128xf32, #tpu.memory_space<vmem>>) target_semaphore(%612 : memref<!tpu.dma_semaphore, #tpu.memory_space<semaphore_mem>>)
      %c29_i32_391 = arith.constant 29 : i32
      %613 = arith.addi %380, %c29_i32_391 : i32
      %614 = arith.index_cast %613 : i32 to index
      %615 = memref.load %arg1[%614] : memref<64xi32, #tpu.memory_space<smem>>
      %c29_i32_392 = arith.constant 29 : i32
      %c0_i32_393 = arith.constant 0 : i32
      %616 = tpu.memref_slice %arg2[%615, %c0_i32_393] : memref<256x128xf32, #tpu.memory_space<any>> -> memref<1x128xf32, #tpu.memory_space<any>>
      %c29_i32_394 = arith.constant 29 : i32
      %c0_i32_395 = arith.constant 0 : i32
      %617 = tpu.memref_slice %arg6[%379, %c29_i32_394, %c0_i32_395] : memref<2x32x128xf32, #tpu.memory_space<vmem>> -> memref<1x1x128xf32, #tpu.memory_space<vmem>>
      %618 = tpu.memref_squeeze %617 : memref<1x1x128xf32, #tpu.memory_space<vmem>> -> memref<1x128xf32, #tpu.memory_space<vmem>>
      %619 = tpu.memref_slice %arg8[%379, %c29_i32_392] : memref<2x32x!tpu.dma_semaphore, #tpu.memory_space<semaphore_mem>> -> memref<1x1x!tpu.dma_semaphore, #tpu.memory_space<semaphore_mem>>
      %620 = tpu.memref_squeeze %619 : memref<1x1x!tpu.dma_semaphore, #tpu.memory_space<semaphore_mem>> -> memref<!tpu.dma_semaphore, #tpu.memory_space<semaphore_mem>>
      tpu.enqueue_dma source(%616 : memref<1x128xf32, #tpu.memory_space<any>>) target(%618 : memref<1x128xf32, #tpu.memory_space<vmem>>) target_semaphore(%620 : memref<!tpu.dma_semaphore, #tpu.memory_space<semaphore_mem>>)
      %c30_i32_396 = arith.constant 30 : i32
      %621 = arith.addi %380, %c30_i32_396 : i32
      %622 = arith.index_cast %621 : i32 to index
      %623 = memref.load %arg1[%622] : memref<64xi32, #tpu.memory_space<smem>>
      %c30_i32_397 = arith.constant 30 : i32
      %c0_i32_398 = arith.constant 0 : i32
      %624 = tpu.memref_slice %arg2[%623, %c0_i32_398] : memref<256x128xf32, #tpu.memory_space<any>> -> memref<1x128xf32, #tpu.memory_space<any>>
      %c30_i32_399 = arith.constant 30 : i32
      %c0_i32_400 = arith.constant 0 : i32
      %625 = tpu.memref_slice %arg6[%379, %c30_i32_399, %c0_i32_400] : memref<2x32x128xf32, #tpu.memory_space<vmem>> -> memref<1x1x128xf32, #tpu.memory_space<vmem>>
      %626 = tpu.memref_squeeze %625 : memref<1x1x128xf32, #tpu.memory_space<vmem>> -> memref<1x128xf32, #tpu.memory_space<vmem>>
      %627 = tpu.memref_slice %arg8[%379, %c30_i32_397] : memref<2x32x!tpu.dma_semaphore, #tpu.memory_space<semaphore_mem>> -> memref<1x1x!tpu.dma_semaphore, #tpu.memory_space<semaphore_mem>>
      %628 = tpu.memref_squeeze %627 : memref<1x1x!tpu.dma_semaphore, #tpu.memory_space<semaphore_mem>> -> memref<!tpu.dma_semaphore, #tpu.memory_space<semaphore_mem>>
      tpu.enqueue_dma source(%624 : memref<1x128xf32, #tpu.memory_space<any>>) target(%626 : memref<1x128xf32, #tpu.memory_space<vmem>>) target_semaphore(%628 : memref<!tpu.dma_semaphore, #tpu.memory_space<semaphore_mem>>)
      %c31_i32_401 = arith.constant 31 : i32
      %629 = arith.addi %380, %c31_i32_401 : i32
      %630 = arith.index_cast %629 : i32 to index
      %631 = memref.load %arg1[%630] : memref<64xi32, #tpu.memory_space<smem>>
      %c31_i32_402 = arith.constant 31 : i32
      %c0_i32_403 = arith.constant 0 : i32
      %632 = tpu.memref_slice %arg2[%631, %c0_i32_403] : memref<256x128xf32, #tpu.memory_space<any>> -> memref<1x128xf32, #tpu.memory_space<any>>
      %c31_i32_404 = arith.constant 31 : i32
      %c0_i32_405 = arith.constant 0 : i32
      %633 = tpu.memref_slice %arg6[%379, %c31_i32_404, %c0_i32_405] : memref<2x32x128xf32, #tpu.memory_space<vmem>> -> memref<1x1x128xf32, #tpu.memory_space<vmem>>
      %634 = tpu.memref_squeeze %633 : memref<1x1x128xf32, #tpu.memory_space<vmem>> -> memref<1x128xf32, #tpu.memory_space<vmem>>
      %635 = tpu.memref_slice %arg8[%379, %c31_i32_402] : memref<2x32x!tpu.dma_semaphore, #tpu.memory_space<semaphore_mem>> -> memref<1x1x!tpu.dma_semaphore, #tpu.memory_space<semaphore_mem>>
      %636 = tpu.memref_squeeze %635 : memref<1x1x!tpu.dma_semaphore, #tpu.memory_space<semaphore_mem>> -> memref<!tpu.dma_semaphore, #tpu.memory_space<semaphore_mem>>
      tpu.enqueue_dma source(%632 : memref<1x128xf32, #tpu.memory_space<any>>) target(%634 : memref<1x128xf32, #tpu.memory_space<vmem>>) target_semaphore(%636 : memref<!tpu.dma_semaphore, #tpu.memory_space<semaphore_mem>>)
    } else {
    }
    %c32_i32 = arith.constant 32 : i32
    %17 = arith.muli %arg0, %c32_i32 : i32
    %c0_i32_8 = arith.constant 0 : i32
    %18 = arith.addi %17, %c0_i32_8 : i32
    %19 = arith.index_cast %18 : i32 to index
    %20 = memref.load %arg1[%19] : memref<64xi32, #tpu.memory_space<smem>>
    %21 = arith.index_cast %20 : i32 to index
    %c0 = arith.constant 0 : index
    %22 = vector.load %arg3[%21, %c0] : memref<256x8xf32, #tpu.memory_space<vmem>>, vector<1x8xf32>
    %c0_9 = arith.constant 0 : index
    %c0_10 = arith.constant 0 : index
    %23 = vector.load %arg7[%c0_9, %c0_10] : memref<32x8xf32, #tpu.memory_space<vmem>>, vector<1x8xf32>
    tpu.vector_store %arg7[%c0_9, %c0_10], %22 {strides = array<i32>} : memref<32x8xf32, #tpu.memory_space<vmem>>, vector<1x8xf32>,
    %c1_i32_11 = arith.constant 1 : i32
    %24 = arith.addi %17, %c1_i32_11 : i32
    %25 = arith.index_cast %24 : i32 to index
    %26 = memref.load %arg1[%25] : memref<64xi32, #tpu.memory_space<smem>>
    %27 = arith.index_cast %26 : i32 to index
    %c0_12 = arith.constant 0 : index
    %28 = vector.load %arg3[%27, %c0_12] : memref<256x8xf32, #tpu.memory_space<vmem>>, vector<1x8xf32>
    %c1 = arith.constant 1 : index
    %c0_13 = arith.constant 0 : index
    %29 = vector.load %arg7[%c1, %c0_13] : memref<32x8xf32, #tpu.memory_space<vmem>>, vector<1x8xf32>
    tpu.vector_store %arg7[%c1, %c0_13], %28 {strides = array<i32>} : memref<32x8xf32, #tpu.memory_space<vmem>>, vector<1x8xf32>,
    %c2_i32_14 = arith.constant 2 : i32
    %30 = arith.addi %17, %c2_i32_14 : i32
    %31 = arith.index_cast %30 : i32 to index
    %32 = memref.load %arg1[%31] : memref<64xi32, #tpu.memory_space<smem>>
    %33 = arith.index_cast %32 : i32 to index
    %c0_15 = arith.constant 0 : index
    %34 = vector.load %arg3[%33, %c0_15] : memref<256x8xf32, #tpu.memory_space<vmem>>, vector<1x8xf32>
    %c2 = arith.constant 2 : index
    %c0_16 = arith.constant 0 : index
    %35 = vector.load %arg7[%c2, %c0_16] : memref<32x8xf32, #tpu.memory_space<vmem>>, vector<1x8xf32>
    tpu.vector_store %arg7[%c2, %c0_16], %34 {strides = array<i32>} : memref<32x8xf32, #tpu.memory_space<vmem>>, vector<1x8xf32>,
    %c3_i32 = arith.constant 3 : i32
    %36 = arith.addi %17, %c3_i32 : i32
    %37 = arith.index_cast %36 : i32 to index
    %38 = memref.load %arg1[%37] : memref<64xi32, #tpu.memory_space<smem>>
    %39 = arith.index_cast %38 : i32 to index
    %c0_17 = arith.constant 0 : index
    %40 = vector.load %arg3[%39, %c0_17] : memref<256x8xf32, #tpu.memory_space<vmem>>, vector<1x8xf32>
    %c3 = arith.constant 3 : index
    %c0_18 = arith.constant 0 : index
    %41 = vector.load %arg7[%c3, %c0_18] : memref<32x8xf32, #tpu.memory_space<vmem>>, vector<1x8xf32>
    tpu.vector_store %arg7[%c3, %c0_18], %40 {strides = array<i32>} : memref<32x8xf32, #tpu.memory_space<vmem>>, vector<1x8xf32>,
    %c4_i32 = arith.constant 4 : i32
    %42 = arith.addi %17, %c4_i32 : i32
    %43 = arith.index_cast %42 : i32 to index
    %44 = memref.load %arg1[%43] : memref<64xi32, #tpu.memory_space<smem>>
    %45 = arith.index_cast %44 : i32 to index
    %c0_19 = arith.constant 0 : index
    %46 = vector.load %arg3[%45, %c0_19] : memref<256x8xf32, #tpu.memory_space<vmem>>, vector<1x8xf32>
    %c4 = arith.constant 4 : index
    %c0_20 = arith.constant 0 : index
    %47 = vector.load %arg7[%c4, %c0_20] : memref<32x8xf32, #tpu.memory_space<vmem>>, vector<1x8xf32>
    tpu.vector_store %arg7[%c4, %c0_20], %46 {strides = array<i32>} : memref<32x8xf32, #tpu.memory_space<vmem>>, vector<1x8xf32>,
    %c5_i32 = arith.constant 5 : i32
    %48 = arith.addi %17, %c5_i32 : i32
    %49 = arith.index_cast %48 : i32 to index
    %50 = memref.load %arg1[%49] : memref<64xi32, #tpu.memory_space<smem>>
    %51 = arith.index_cast %50 : i32 to index
    %c0_21 = arith.constant 0 : index
    %52 = vector.load %arg3[%51, %c0_21] : memref<256x8xf32, #tpu.memory_space<vmem>>, vector<1x8xf32>
    %c5 = arith.constant 5 : index
    %c0_22 = arith.constant 0 : index
    %53 = vector.load %arg7[%c5, %c0_22] : memref<32x8xf32, #tpu.memory_space<vmem>>, vector<1x8xf32>
    tpu.vector_store %arg7[%c5, %c0_22], %52 {strides = array<i32>} : memref<32x8xf32, #tpu.memory_space<vmem>>, vector<1x8xf32>,
    %c6_i32 = arith.constant 6 : i32
    %54 = arith.addi %17, %c6_i32 : i32
    %55 = arith.index_cast %54 : i32 to index
    %56 = memref.load %arg1[%55] : memref<64xi32, #tpu.memory_space<smem>>
    %57 = arith.index_cast %56 : i32 to index
    %c0_23 = arith.constant 0 : index
    %58 = vector.load %arg3[%57, %c0_23] : memref<256x8xf32, #tpu.memory_space<vmem>>, vector<1x8xf32>
    %c6 = arith.constant 6 : index
    %c0_24 = arith.constant 0 : index
    %59 = vector.load %arg7[%c6, %c0_24] : memref<32x8xf32, #tpu.memory_space<vmem>>, vector<1x8xf32>
    tpu.vector_store %arg7[%c6, %c0_24], %58 {strides = array<i32>} : memref<32x8xf32, #tpu.memory_space<vmem>>, vector<1x8xf32>,
    %c7_i32 = arith.constant 7 : i32
    %60 = arith.addi %17, %c7_i32 : i32
    %61 = arith.index_cast %60 : i32 to index
    %62 = memref.load %arg1[%61] : memref<64xi32, #tpu.memory_space<smem>>
    %63 = arith.index_cast %62 : i32 to index
    %c0_25 = arith.constant 0 : index
    %64 = vector.load %arg3[%63, %c0_25] : memref<256x8xf32, #tpu.memory_space<vmem>>, vector<1x8xf32>
    %c7 = arith.constant 7 : index
    %c0_26 = arith.constant 0 : index
    %65 = vector.load %arg7[%c7, %c0_26] : memref<32x8xf32, #tpu.memory_space<vmem>>, vector<1x8xf32>
    tpu.vector_store %arg7[%c7, %c0_26], %64 {strides = array<i32>} : memref<32x8xf32, #tpu.memory_space<vmem>>, vector<1x8xf32>,
    %c8_i32 = arith.constant 8 : i32
    %66 = arith.addi %17, %c8_i32 : i32
    %67 = arith.index_cast %66 : i32 to index
    %68 = memref.load %arg1[%67] : memref<64xi32, #tpu.memory_space<smem>>
    %69 = arith.index_cast %68 : i32 to index
    %c0_27 = arith.constant 0 : index
    %70 = vector.load %arg3[%69, %c0_27] : memref<256x8xf32, #tpu.memory_space<vmem>>, vector<1x8xf32>
    %c8 = arith.constant 8 : index
    %c0_28 = arith.constant 0 : index
    %71 = vector.load %arg7[%c8, %c0_28] : memref<32x8xf32, #tpu.memory_space<vmem>>, vector<1x8xf32>
    tpu.vector_store %arg7[%c8, %c0_28], %70 {strides = array<i32>} : memref<32x8xf32, #tpu.memory_space<vmem>>, vector<1x8xf32>,
    %c9_i32 = arith.constant 9 : i32
    %72 = arith.addi %17, %c9_i32 : i32
    %73 = arith.index_cast %72 : i32 to index
    %74 = memref.load %arg1[%73] : memref<64xi32, #tpu.memory_space<smem>>
    %75 = arith.index_cast %74 : i32 to index
    %c0_29 = arith.constant 0 : index
    %76 = vector.load %arg3[%75, %c0_29] : memref<256x8xf32, #tpu.memory_space<vmem>>, vector<1x8xf32>
    %c9 = arith.constant 9 : index
    %c0_30 = arith.constant 0 : index
    %77 = vector.load %arg7[%c9, %c0_30] : memref<32x8xf32, #tpu.memory_space<vmem>>, vector<1x8xf32>
    tpu.vector_store %arg7[%c9, %c0_30], %76 {strides = array<i32>} : memref<32x8xf32, #tpu.memory_space<vmem>>, vector<1x8xf32>,
    %c10_i32 = arith.constant 10 : i32
    %78 = arith.addi %17, %c10_i32 : i32
    %79 = arith.index_cast %78 : i32 to index
    %80 = memref.load %arg1[%79] : memref<64xi32, #tpu.memory_space<smem>>
    %81 = arith.index_cast %80 : i32 to index
    %c0_31 = arith.constant 0 : index
    %82 = vector.load %arg3[%81, %c0_31] : memref<256x8xf32, #tpu.memory_space<vmem>>, vector<1x8xf32>
    %c10 = arith.constant 10 : index
    %c0_32 = arith.constant 0 : index
    %83 = vector.load %arg7[%c10, %c0_32] : memref<32x8xf32, #tpu.memory_space<vmem>>, vector<1x8xf32>
    tpu.vector_store %arg7[%c10, %c0_32], %82 {strides = array<i32>} : memref<32x8xf32, #tpu.memory_space<vmem>>, vector<1x8xf32>,
    %c11_i32 = arith.constant 11 : i32
    %84 = arith.addi %17, %c11_i32 : i32
    %85 = arith.index_cast %84 : i32 to index
    %86 = memref.load %arg1[%85] : memref<64xi32, #tpu.memory_space<smem>>
    %87 = arith.index_cast %86 : i32 to index
    %c0_33 = arith.constant 0 : index
    %88 = vector.load %arg3[%87, %c0_33] : memref<256x8xf32, #tpu.memory_space<vmem>>, vector<1x8xf32>
    %c11 = arith.constant 11 : index
    %c0_34 = arith.constant 0 : index
    %89 = vector.load %arg7[%c11, %c0_34] : memref<32x8xf32, #tpu.memory_space<vmem>>, vector<1x8xf32>
    tpu.vector_store %arg7[%c11, %c0_34], %88 {strides = array<i32>} : memref<32x8xf32, #tpu.memory_space<vmem>>, vector<1x8xf32>,
    %c12_i32 = arith.constant 12 : i32
    %90 = arith.addi %17, %c12_i32 : i32
    %91 = arith.index_cast %90 : i32 to index
    %92 = memref.load %arg1[%91] : memref<64xi32, #tpu.memory_space<smem>>
    %93 = arith.index_cast %92 : i32 to index
    %c0_35 = arith.constant 0 : index
    %94 = vector.load %arg3[%93, %c0_35] : memref<256x8xf32, #tpu.memory_space<vmem>>, vector<1x8xf32>
    %c12 = arith.constant 12 : index
    %c0_36 = arith.constant 0 : index
    %95 = vector.load %arg7[%c12, %c0_36] : memref<32x8xf32, #tpu.memory_space<vmem>>, vector<1x8xf32>
    tpu.vector_store %arg7[%c12, %c0_36], %94 {strides = array<i32>} : memref<32x8xf32, #tpu.memory_space<vmem>>, vector<1x8xf32>,
    %c13_i32 = arith.constant 13 : i32
    %96 = arith.addi %17, %c13_i32 : i32
    %97 = arith.index_cast %96 : i32 to index
    %98 = memref.load %arg1[%97] : memref<64xi32, #tpu.memory_space<smem>>
    %99 = arith.index_cast %98 : i32 to index
    %c0_37 = arith.constant 0 : index
    %100 = vector.load %arg3[%99, %c0_37] : memref<256x8xf32, #tpu.memory_space<vmem>>, vector<1x8xf32>
    %c13 = arith.constant 13 : index
    %c0_38 = arith.constant 0 : index
    %101 = vector.load %arg7[%c13, %c0_38] : memref<32x8xf32, #tpu.memory_space<vmem>>, vector<1x8xf32>
    tpu.vector_store %arg7[%c13, %c0_38], %100 {strides = array<i32>} : memref<32x8xf32, #tpu.memory_space<vmem>>, vector<1x8xf32>,
    %c14_i32 = arith.constant 14 : i32
    %102 = arith.addi %17, %c14_i32 : i32
    %103 = arith.index_cast %102 : i32 to index
    %104 = memref.load %arg1[%103] : memref<64xi32, #tpu.memory_space<smem>>
    %105 = arith.index_cast %104 : i32 to index
    %c0_39 = arith.constant 0 : index
    %106 = vector.load %arg3[%105, %c0_39] : memref<256x8xf32, #tpu.memory_space<vmem>>, vector<1x8xf32>
    %c14 = arith.constant 14 : index
    %c0_40 = arith.constant 0 : index
    %107 = vector.load %arg7[%c14, %c0_40] : memref<32x8xf32, #tpu.memory_space<vmem>>, vector<1x8xf32>
    tpu.vector_store %arg7[%c14, %c0_40], %106 {strides = array<i32>} : memref<32x8xf32, #tpu.memory_space<vmem>>, vector<1x8xf32>,
    %c15_i32 = arith.constant 15 : i32
    %108 = arith.addi %17, %c15_i32 : i32
    %109 = arith.index_cast %108 : i32 to index
    %110 = memref.load %arg1[%109] : memref<64xi32, #tpu.memory_space<smem>>
    %111 = arith.index_cast %110 : i32 to index
    %c0_41 = arith.constant 0 : index
    %112 = vector.load %arg3[%111, %c0_41] : memref<256x8xf32, #tpu.memory_space<vmem>>, vector<1x8xf32>
    %c15 = arith.constant 15 : index
    %c0_42 = arith.constant 0 : index
    %113 = vector.load %arg7[%c15, %c0_42] : memref<32x8xf32, #tpu.memory_space<vmem>>, vector<1x8xf32>
    tpu.vector_store %arg7[%c15, %c0_42], %112 {strides = array<i32>} : memref<32x8xf32, #tpu.memory_space<vmem>>, vector<1x8xf32>,
    %c16_i32 = arith.constant 16 : i32
    %114 = arith.addi %17, %c16_i32 : i32
    %115 = arith.index_cast %114 : i32 to index
    %116 = memref.load %arg1[%115] : memref<64xi32, #tpu.memory_space<smem>>
    %117 = arith.index_cast %116 : i32 to index
    %c0_43 = arith.constant 0 : index
    %118 = vector.load %arg3[%117, %c0_43] : memref<256x8xf32, #tpu.memory_space<vmem>>, vector<1x8xf32>
    %c16 = arith.constant 16 : index
    %c0_44 = arith.constant 0 : index
    %119 = vector.load %arg7[%c16, %c0_44] : memref<32x8xf32, #tpu.memory_space<vmem>>, vector<1x8xf32>
    tpu.vector_store %arg7[%c16, %c0_44], %118 {strides = array<i32>} : memref<32x8xf32, #tpu.memory_space<vmem>>, vector<1x8xf32>,
    %c17_i32 = arith.constant 17 : i32
    %120 = arith.addi %17, %c17_i32 : i32
    %121 = arith.index_cast %120 : i32 to index
    %122 = memref.load %arg1[%121] : memref<64xi32, #tpu.memory_space<smem>>
    %123 = arith.index_cast %122 : i32 to index
    %c0_45 = arith.constant 0 : index
    %124 = vector.load %arg3[%123, %c0_45] : memref<256x8xf32, #tpu.memory_space<vmem>>, vector<1x8xf32>
    %c17 = arith.constant 17 : index
    %c0_46 = arith.constant 0 : index
    %125 = vector.load %arg7[%c17, %c0_46] : memref<32x8xf32, #tpu.memory_space<vmem>>, vector<1x8xf32>
    tpu.vector_store %arg7[%c17, %c0_46], %124 {strides = array<i32>} : memref<32x8xf32, #tpu.memory_space<vmem>>, vector<1x8xf32>,
    %c18_i32 = arith.constant 18 : i32
    %126 = arith.addi %17, %c18_i32 : i32
    %127 = arith.index_cast %126 : i32 to index
    %128 = memref.load %arg1[%127] : memref<64xi32, #tpu.memory_space<smem>>
    %129 = arith.index_cast %128 : i32 to index
    %c0_47 = arith.constant 0 : index
    %130 = vector.load %arg3[%129, %c0_47] : memref<256x8xf32, #tpu.memory_space<vmem>>, vector<1x8xf32>
    %c18 = arith.constant 18 : index
    %c0_48 = arith.constant 0 : index
    %131 = vector.load %arg7[%c18, %c0_48] : memref<32x8xf32, #tpu.memory_space<vmem>>, vector<1x8xf32>
    tpu.vector_store %arg7[%c18, %c0_48], %130 {strides = array<i32>} : memref<32x8xf32, #tpu.memory_space<vmem>>, vector<1x8xf32>,
    %c19_i32 = arith.constant 19 : i32
    %132 = arith.addi %17, %c19_i32 : i32
    %133 = arith.index_cast %132 : i32 to index
    %134 = memref.load %arg1[%133] : memref<64xi32, #tpu.memory_space<smem>>
    %135 = arith.index_cast %134 : i32 to index
    %c0_49 = arith.constant 0 : index
    %136 = vector.load %arg3[%135, %c0_49] : memref<256x8xf32, #tpu.memory_space<vmem>>, vector<1x8xf32>
    %c19 = arith.constant 19 : index
    %c0_50 = arith.constant 0 : index
    %137 = vector.load %arg7[%c19, %c0_50] : memref<32x8xf32, #tpu.memory_space<vmem>>, vector<1x8xf32>
    tpu.vector_store %arg7[%c19, %c0_50], %136 {strides = array<i32>} : memref<32x8xf32, #tpu.memory_space<vmem>>, vector<1x8xf32>,
    %c20_i32 = arith.constant 20 : i32
    %138 = arith.addi %17, %c20_i32 : i32
    %139 = arith.index_cast %138 : i32 to index
    %140 = memref.load %arg1[%139] : memref<64xi32, #tpu.memory_space<smem>>
    %141 = arith.index_cast %140 : i32 to index
    %c0_51 = arith.constant 0 : index
    %142 = vector.load %arg3[%141, %c0_51] : memref<256x8xf32, #tpu.memory_space<vmem>>, vector<1x8xf32>
    %c20 = arith.constant 20 : index
    %c0_52 = arith.constant 0 : index
    %143 = vector.load %arg7[%c20, %c0_52] : memref<32x8xf32, #tpu.memory_space<vmem>>, vector<1x8xf32>
    tpu.vector_store %arg7[%c20, %c0_52], %142 {strides = array<i32>} : memref<32x8xf32, #tpu.memory_space<vmem>>, vector<1x8xf32>,
    %c21_i32 = arith.constant 21 : i32
    %144 = arith.addi %17, %c21_i32 : i32
    %145 = arith.index_cast %144 : i32 to index
    %146 = memref.load %arg1[%145] : memref<64xi32, #tpu.memory_space<smem>>
    %147 = arith.index_cast %146 : i32 to index
    %c0_53 = arith.constant 0 : index
    %148 = vector.load %arg3[%147, %c0_53] : memref<256x8xf32, #tpu.memory_space<vmem>>, vector<1x8xf32>
    %c21 = arith.constant 21 : index
    %c0_54 = arith.constant 0 : index
    %149 = vector.load %arg7[%c21, %c0_54] : memref<32x8xf32, #tpu.memory_space<vmem>>, vector<1x8xf32>
    tpu.vector_store %arg7[%c21, %c0_54], %148 {strides = array<i32>} : memref<32x8xf32, #tpu.memory_space<vmem>>, vector<1x8xf32>,
    %c22_i32 = arith.constant 22 : i32
    %150 = arith.addi %17, %c22_i32 : i32
    %151 = arith.index_cast %150 : i32 to index
    %152 = memref.load %arg1[%151] : memref<64xi32, #tpu.memory_space<smem>>
    %153 = arith.index_cast %152 : i32 to index
    %c0_55 = arith.constant 0 : index
    %154 = vector.load %arg3[%153, %c0_55] : memref<256x8xf32, #tpu.memory_space<vmem>>, vector<1x8xf32>
    %c22 = arith.constant 22 : index
    %c0_56 = arith.constant 0 : index
    %155 = vector.load %arg7[%c22, %c0_56] : memref<32x8xf32, #tpu.memory_space<vmem>>, vector<1x8xf32>
    tpu.vector_store %arg7[%c22, %c0_56], %154 {strides = array<i32>} : memref<32x8xf32, #tpu.memory_space<vmem>>, vector<1x8xf32>,
    %c23_i32 = arith.constant 23 : i32
    %156 = arith.addi %17, %c23_i32 : i32
    %157 = arith.index_cast %156 : i32 to index
    %158 = memref.load %arg1[%157] : memref<64xi32, #tpu.memory_space<smem>>
    %159 = arith.index_cast %158 : i32 to index
    %c0_57 = arith.constant 0 : index
    %160 = vector.load %arg3[%159, %c0_57] : memref<256x8xf32, #tpu.memory_space<vmem>>, vector<1x8xf32>
    %c23 = arith.constant 23 : index
    %c0_58 = arith.constant 0 : index
    %161 = vector.load %arg7[%c23, %c0_58] : memref<32x8xf32, #tpu.memory_space<vmem>>, vector<1x8xf32>
    tpu.vector_store %arg7[%c23, %c0_58], %160 {strides = array<i32>} : memref<32x8xf32, #tpu.memory_space<vmem>>, vector<1x8xf32>,
    %c24_i32 = arith.constant 24 : i32
    %162 = arith.addi %17, %c24_i32 : i32
    %163 = arith.index_cast %162 : i32 to index
    %164 = memref.load %arg1[%163] : memref<64xi32, #tpu.memory_space<smem>>
    %165 = arith.index_cast %164 : i32 to index
    %c0_59 = arith.constant 0 : index
    %166 = vector.load %arg3[%165, %c0_59] : memref<256x8xf32, #tpu.memory_space<vmem>>, vector<1x8xf32>
    %c24 = arith.constant 24 : index
    %c0_60 = arith.constant 0 : index
    %167 = vector.load %arg7[%c24, %c0_60] : memref<32x8xf32, #tpu.memory_space<vmem>>, vector<1x8xf32>
    tpu.vector_store %arg7[%c24, %c0_60], %166 {strides = array<i32>} : memref<32x8xf32, #tpu.memory_space<vmem>>, vector<1x8xf32>,
    %c25_i32 = arith.constant 25 : i32
    %168 = arith.addi %17, %c25_i32 : i32
    %169 = arith.index_cast %168 : i32 to index
    %170 = memref.load %arg1[%169] : memref<64xi32, #tpu.memory_space<smem>>
    %171 = arith.index_cast %170 : i32 to index
    %c0_61 = arith.constant 0 : index
    %172 = vector.load %arg3[%171, %c0_61] : memref<256x8xf32, #tpu.memory_space<vmem>>, vector<1x8xf32>
    %c25 = arith.constant 25 : index
    %c0_62 = arith.constant 0 : index
    %173 = vector.load %arg7[%c25, %c0_62] : memref<32x8xf32, #tpu.memory_space<vmem>>, vector<1x8xf32>
    tpu.vector_store %arg7[%c25, %c0_62], %172 {strides = array<i32>} : memref<32x8xf32, #tpu.memory_space<vmem>>, vector<1x8xf32>,
    %c26_i32 = arith.constant 26 : i32
    %174 = arith.addi %17, %c26_i32 : i32
    %175 = arith.index_cast %174 : i32 to index
    %176 = memref.load %arg1[%175] : memref<64xi32, #tpu.memory_space<smem>>
    %177 = arith.index_cast %176 : i32 to index
    %c0_63 = arith.constant 0 : index
    %178 = vector.load %arg3[%177, %c0_63] : memref<256x8xf32, #tpu.memory_space<vmem>>, vector<1x8xf32>
    %c26 = arith.constant 26 : index
    %c0_64 = arith.constant 0 : index
    %179 = vector.load %arg7[%c26, %c0_64] : memref<32x8xf32, #tpu.memory_space<vmem>>, vector<1x8xf32>
    tpu.vector_store %arg7[%c26, %c0_64], %178 {strides = array<i32>} : memref<32x8xf32, #tpu.memory_space<vmem>>, vector<1x8xf32>,
    %c27_i32 = arith.constant 27 : i32
    %180 = arith.addi %17, %c27_i32 : i32
    %181 = arith.index_cast %180 : i32 to index
    %182 = memref.load %arg1[%181] : memref<64xi32, #tpu.memory_space<smem>>
    %183 = arith.index_cast %182 : i32 to index
    %c0_65 = arith.constant 0 : index
    %184 = vector.load %arg3[%183, %c0_65] : memref<256x8xf32, #tpu.memory_space<vmem>>, vector<1x8xf32>
    %c27 = arith.constant 27 : index
    %c0_66 = arith.constant 0 : index
    %185 = vector.load %arg7[%c27, %c0_66] : memref<32x8xf32, #tpu.memory_space<vmem>>, vector<1x8xf32>
    tpu.vector_store %arg7[%c27, %c0_66], %184 {strides = array<i32>} : memref<32x8xf32, #tpu.memory_space<vmem>>, vector<1x8xf32>,
    %c28_i32 = arith.constant 28 : i32
    %186 = arith.addi %17, %c28_i32 : i32
    %187 = arith.index_cast %186 : i32 to index
    %188 = memref.load %arg1[%187] : memref<64xi32, #tpu.memory_space<smem>>
    %189 = arith.index_cast %188 : i32 to index
    %c0_67 = arith.constant 0 : index
    %190 = vector.load %arg3[%189, %c0_67] : memref<256x8xf32, #tpu.memory_space<vmem>>, vector<1x8xf32>
    %c28 = arith.constant 28 : index
    %c0_68 = arith.constant 0 : index
    %191 = vector.load %arg7[%c28, %c0_68] : memref<32x8xf32, #tpu.memory_space<vmem>>, vector<1x8xf32>
    tpu.vector_store %arg7[%c28, %c0_68], %190 {strides = array<i32>} : memref<32x8xf32, #tpu.memory_space<vmem>>, vector<1x8xf32>,
    %c29_i32 = arith.constant 29 : i32
    %192 = arith.addi %17, %c29_i32 : i32
    %193 = arith.index_cast %192 : i32 to index
    %194 = memref.load %arg1[%193] : memref<64xi32, #tpu.memory_space<smem>>
    %195 = arith.index_cast %194 : i32 to index
    %c0_69 = arith.constant 0 : index
    %196 = vector.load %arg3[%195, %c0_69] : memref<256x8xf32, #tpu.memory_space<vmem>>, vector<1x8xf32>
    %c29 = arith.constant 29 : index
    %c0_70 = arith.constant 0 : index
    %197 = vector.load %arg7[%c29, %c0_70] : memref<32x8xf32, #tpu.memory_space<vmem>>, vector<1x8xf32>
    tpu.vector_store %arg7[%c29, %c0_70], %196 {strides = array<i32>} : memref<32x8xf32, #tpu.memory_space<vmem>>, vector<1x8xf32>,
    %c30_i32 = arith.constant 30 : i32
    %198 = arith.addi %17, %c30_i32 : i32
    %199 = arith.index_cast %198 : i32 to index
    %200 = memref.load %arg1[%199] : memref<64xi32, #tpu.memory_space<smem>>
    %201 = arith.index_cast %200 : i32 to index
    %c0_71 = arith.constant 0 : index
    %202 = vector.load %arg3[%201, %c0_71] : memref<256x8xf32, #tpu.memory_space<vmem>>, vector<1x8xf32>
    %c30 = arith.constant 30 : index
    %c0_72 = arith.constant 0 : index
    %203 = vector.load %arg7[%c30, %c0_72] : memref<32x8xf32, #tpu.memory_space<vmem>>, vector<1x8xf32>
    tpu.vector_store %arg7[%c30, %c0_72], %202 {strides = array<i32>} : memref<32x8xf32, #tpu.memory_space<vmem>>, vector<1x8xf32>,
    %c31_i32 = arith.constant 31 : i32
    %204 = arith.addi %17, %c31_i32 : i32
    %205 = arith.index_cast %204 : i32 to index
    %206 = memref.load %arg1[%205] : memref<64xi32, #tpu.memory_space<smem>>
    %207 = arith.index_cast %206 : i32 to index
    %c0_73 = arith.constant 0 : index
    %208 = vector.load %arg3[%207, %c0_73] : memref<256x8xf32, #tpu.memory_space<vmem>>, vector<1x8xf32>
    %c31 = arith.constant 31 : index
    %c0_74 = arith.constant 0 : index
    %209 = vector.load %arg7[%c31, %c0_74] : memref<32x8xf32, #tpu.memory_space<vmem>>, vector<1x8xf32>
    tpu.vector_store %arg7[%c31, %c0_74], %208 {strides = array<i32>} : memref<32x8xf32, #tpu.memory_space<vmem>>, vector<1x8xf32>,
    %c0_75 = arith.constant 0 : index
    %c0_76 = arith.constant 0 : index
    %210 = vector.load %arg7[%c0_75, %c0_76] : memref<32x8xf32, #tpu.memory_space<vmem>>, vector<32x8xf32>
    %c0_77 = arith.constant 0 : index
    %c0_78 = arith.constant 0 : index
    %211 = vector.load %arg4[%c0_77, %c0_78] : memref<8x128xf32, #tpu.memory_space<vmem>>, vector<8x128xf32>
    %cst = arith.constant dense<0.000000e+00> : vector<32x128xf32>
    %212 = tpu.matmul %210, %211, %cst {dimension_numbers = #tpu.dot_dimension_numbers<[1], [0], [0], [1], [0, 0, 1, 1], [], []>} : vector<32x8xf32>, vector<8x128xf32>, vector<32x128xf32> -> vector<32x128xf32>
    %c0_i32_79 = arith.constant 0 : i32
    %c0_i32_80 = arith.constant 0 : i32
    %c0_i32_81 = arith.constant 0 : i32
    %213 = tpu.memref_slice %arg2[%c0_i32_80, %c0_i32_81] : memref<256x128xf32, #tpu.memory_space<any>> -> memref<1x128xf32, #tpu.memory_space<any>>
    %c0_i32_82 = arith.constant 0 : i32
    %c0_i32_83 = arith.constant 0 : i32
    %214 = tpu.memref_slice %arg6[%9, %c0_i32_82, %c0_i32_83] : memref<2x32x128xf32, #tpu.memory_space<vmem>> -> memref<1x1x128xf32, #tpu.memory_space<vmem>>
    %215 = tpu.memref_squeeze %214 : memref<1x1x128xf32, #tpu.memory_space<vmem>> -> memref<1x128xf32, #tpu.memory_space<vmem>>
    %216 = tpu.memref_slice %arg8[%9, %c0_i32_79] : memref<2x32x!tpu.dma_semaphore, #tpu.memory_space<semaphore_mem>> -> memref<1x1x!tpu.dma_semaphore, #tpu.memory_space<semaphore_mem>>
    %217 = tpu.memref_squeeze %216 : memref<1x1x!tpu.dma_semaphore, #tpu.memory_space<semaphore_mem>> -> memref<!tpu.dma_semaphore, #tpu.memory_space<semaphore_mem>>
    tpu.wait_dma2 semaphore(%217 : memref<!tpu.dma_semaphore, #tpu.memory_space<semaphore_mem>>) src(%213 : memref<1x128xf32, #tpu.memory_space<any>>) dst(%215 : memref<1x128xf32, #tpu.memory_space<vmem>>)
    %c1_i32_84 = arith.constant 1 : i32
    %c0_i32_85 = arith.constant 0 : i32
    %c0_i32_86 = arith.constant 0 : i32
    %218 = tpu.memref_slice %arg2[%c0_i32_85, %c0_i32_86] : memref<256x128xf32, #tpu.memory_space<any>> -> memref<1x128xf32, #tpu.memory_space<any>>
    %c1_i32_87 = arith.constant 1 : i32
    %c0_i32_88 = arith.constant 0 : i32
    %219 = tpu.memref_slice %arg6[%9, %c1_i32_87, %c0_i32_88] : memref<2x32x128xf32, #tpu.memory_space<vmem>> -> memref<1x1x128xf32, #tpu.memory_space<vmem>>
    %220 = tpu.memref_squeeze %219 : memref<1x1x128xf32, #tpu.memory_space<vmem>> -> memref<1x128xf32, #tpu.memory_space<vmem>>
    %221 = tpu.memref_slice %arg8[%9, %c1_i32_84] : memref<2x32x!tpu.dma_semaphore, #tpu.memory_space<semaphore_mem>> -> memref<1x1x!tpu.dma_semaphore, #tpu.memory_space<semaphore_mem>>
    %222 = tpu.memref_squeeze %221 : memref<1x1x!tpu.dma_semaphore, #tpu.memory_space<semaphore_mem>> -> memref<!tpu.dma_semaphore, #tpu.memory_space<semaphore_mem>>
    tpu.wait_dma2 semaphore(%222 : memref<!tpu.dma_semaphore, #tpu.memory_space<semaphore_mem>>) src(%218 : memref<1x128xf32, #tpu.memory_space<any>>) dst(%220 : memref<1x128xf32, #tpu.memory_space<vmem>>)
    %c2_i32_89 = arith.constant 2 : i32
    %c0_i32_90 = arith.constant 0 : i32
    %c0_i32_91 = arith.constant 0 : i32
    %223 = tpu.memref_slice %arg2[%c0_i32_90, %c0_i32_91] : memref<256x128xf32, #tpu.memory_space<any>> -> memref<1x128xf32, #tpu.memory_space<any>>
    %c2_i32_92 = arith.constant 2 : i32
    %c0_i32_93 = arith.constant 0 : i32
    %224 = tpu.memref_slice %arg6[%9, %c2_i32_92, %c0_i32_93] : memref<2x32x128xf32, #tpu.memory_space<vmem>> -> memref<1x1x128xf32, #tpu.memory_space<vmem>>
    %225 = tpu.memref_squeeze %224 : memref<1x1x128xf32, #tpu.memory_space<vmem>> -> memref<1x128xf32, #tpu.memory_space<vmem>>
    %226 = tpu.memref_slice %arg8[%9, %c2_i32_89] : memref<2x32x!tpu.dma_semaphore, #tpu.memory_space<semaphore_mem>> -> memref<1x1x!tpu.dma_semaphore, #tpu.memory_space<semaphore_mem>>
    %227 = tpu.memref_squeeze %226 : memref<1x1x!tpu.dma_semaphore, #tpu.memory_space<semaphore_mem>> -> memref<!tpu.dma_semaphore, #tpu.memory_space<semaphore_mem>>
    tpu.wait_dma2 semaphore(%227 : memref<!tpu.dma_semaphore, #tpu.memory_space<semaphore_mem>>) src(%223 : memref<1x128xf32, #tpu.memory_space<any>>) dst(%225 : memref<1x128xf32, #tpu.memory_space<vmem>>)
    %c3_i32_94 = arith.constant 3 : i32
    %c0_i32_95 = arith.constant 0 : i32
    %c0_i32_96 = arith.constant 0 : i32
    %228 = tpu.memref_slice %arg2[%c0_i32_95, %c0_i32_96] : memref<256x128xf32, #tpu.memory_space<any>> -> memref<1x128xf32, #tpu.memory_space<any>>
    %c3_i32_97 = arith.constant 3 : i32
    %c0_i32_98 = arith.constant 0 : i32
    %229 = tpu.memref_slice %arg6[%9, %c3_i32_97, %c0_i32_98] : memref<2x32x128xf32, #tpu.memory_space<vmem>> -> memref<1x1x128xf32, #tpu.memory_space<vmem>>
    %230 = tpu.memref_squeeze %229 : memref<1x1x128xf32, #tpu.memory_space<vmem>> -> memref<1x128xf32, #tpu.memory_space<vmem>>
    %231 = tpu.memref_slice %arg8[%9, %c3_i32_94] : memref<2x32x!tpu.dma_semaphore, #tpu.memory_space<semaphore_mem>> -> memref<1x1x!tpu.dma_semaphore, #tpu.memory_space<semaphore_mem>>
    %232 = tpu.memref_squeeze %231 : memref<1x1x!tpu.dma_semaphore, #tpu.memory_space<semaphore_mem>> -> memref<!tpu.dma_semaphore, #tpu.memory_space<semaphore_mem>>
    tpu.wait_dma2 semaphore(%232 : memref<!tpu.dma_semaphore, #tpu.memory_space<semaphore_mem>>) src(%228 : memref<1x128xf32, #tpu.memory_space<any>>) dst(%230 : memref<1x128xf32, #tpu.memory_space<vmem>>)
    %c4_i32_99 = arith.constant 4 : i32
    %c0_i32_100 = arith.constant 0 : i32
    %c0_i32_101 = arith.constant 0 : i32
    %233 = tpu.memref_slice %arg2[%c0_i32_100, %c0_i32_101] : memref<256x128xf32, #tpu.memory_space<any>> -> memref<1x128xf32, #tpu.memory_space<any>>
    %c4_i32_102 = arith.constant 4 : i32
    %c0_i32_103 = arith.constant 0 : i32
    %234 = tpu.memref_slice %arg6[%9, %c4_i32_102, %c0_i32_103] : memref<2x32x128xf32, #tpu.memory_space<vmem>> -> memref<1x1x128xf32, #tpu.memory_space<vmem>>
    %235 = tpu.memref_squeeze %234 : memref<1x1x128xf32, #tpu.memory_space<vmem>> -> memref<1x128xf32, #tpu.memory_space<vmem>>
    %236 = tpu.memref_slice %arg8[%9, %c4_i32_99] : memref<2x32x!tpu.dma_semaphore, #tpu.memory_space<semaphore_mem>> -> memref<1x1x!tpu.dma_semaphore, #tpu.memory_space<semaphore_mem>>
    %237 = tpu.memref_squeeze %236 : memref<1x1x!tpu.dma_semaphore, #tpu.memory_space<semaphore_mem>> -> memref<!tpu.dma_semaphore, #tpu.memory_space<semaphore_mem>>
    tpu.wait_dma2 semaphore(%237 : memref<!tpu.dma_semaphore, #tpu.memory_space<semaphore_mem>>) src(%233 : memref<1x128xf32, #tpu.memory_space<any>>) dst(%235 : memref<1x128xf32, #tpu.memory_space<vmem>>)
    %c5_i32_104 = arith.constant 5 : i32
    %c0_i32_105 = arith.constant 0 : i32
    %c0_i32_106 = arith.constant 0 : i32
    %238 = tpu.memref_slice %arg2[%c0_i32_105, %c0_i32_106] : memref<256x128xf32, #tpu.memory_space<any>> -> memref<1x128xf32, #tpu.memory_space<any>>
    %c5_i32_107 = arith.constant 5 : i32
    %c0_i32_108 = arith.constant 0 : i32
    %239 = tpu.memref_slice %arg6[%9, %c5_i32_107, %c0_i32_108] : memref<2x32x128xf32, #tpu.memory_space<vmem>> -> memref<1x1x128xf32, #tpu.memory_space<vmem>>
    %240 = tpu.memref_squeeze %239 : memref<1x1x128xf32, #tpu.memory_space<vmem>> -> memref<1x128xf32, #tpu.memory_space<vmem>>
    %241 = tpu.memref_slice %arg8[%9, %c5_i32_104] : memref<2x32x!tpu.dma_semaphore, #tpu.memory_space<semaphore_mem>> -> memref<1x1x!tpu.dma_semaphore, #tpu.memory_space<semaphore_mem>>
    %242 = tpu.memref_squeeze %241 : memref<1x1x!tpu.dma_semaphore, #tpu.memory_space<semaphore_mem>> -> memref<!tpu.dma_semaphore, #tpu.memory_space<semaphore_mem>>
    tpu.wait_dma2 semaphore(%242 : memref<!tpu.dma_semaphore, #tpu.memory_space<semaphore_mem>>) src(%238 : memref<1x128xf32, #tpu.memory_space<any>>) dst(%240 : memref<1x128xf32, #tpu.memory_space<vmem>>)
    %c6_i32_109 = arith.constant 6 : i32
    %c0_i32_110 = arith.constant 0 : i32
    %c0_i32_111 = arith.constant 0 : i32
    %243 = tpu.memref_slice %arg2[%c0_i32_110, %c0_i32_111] : memref<256x128xf32, #tpu.memory_space<any>> -> memref<1x128xf32, #tpu.memory_space<any>>
    %c6_i32_112 = arith.constant 6 : i32
    %c0_i32_113 = arith.constant 0 : i32
    %244 = tpu.memref_slice %arg6[%9, %c6_i32_112, %c0_i32_113] : memref<2x32x128xf32, #tpu.memory_space<vmem>> -> memref<1x1x128xf32, #tpu.memory_space<vmem>>
    %245 = tpu.memref_squeeze %244 : memref<1x1x128xf32, #tpu.memory_space<vmem>> -> memref<1x128xf32, #tpu.memory_space<vmem>>
    %246 = tpu.memref_slice %arg8[%9, %c6_i32_109] : memref<2x32x!tpu.dma_semaphore, #tpu.memory_space<semaphore_mem>> -> memref<1x1x!tpu.dma_semaphore, #tpu.memory_space<semaphore_mem>>
    %247 = tpu.memref_squeeze %246 : memref<1x1x!tpu.dma_semaphore, #tpu.memory_space<semaphore_mem>> -> memref<!tpu.dma_semaphore, #tpu.memory_space<semaphore_mem>>
    tpu.wait_dma2 semaphore(%247 : memref<!tpu.dma_semaphore, #tpu.memory_space<semaphore_mem>>) src(%243 : memref<1x128xf32, #tpu.memory_space<any>>) dst(%245 : memref<1x128xf32, #tpu.memory_space<vmem>>)
    %c7_i32_114 = arith.constant 7 : i32
    %c0_i32_115 = arith.constant 0 : i32
    %c0_i32_116 = arith.constant 0 : i32
    %248 = tpu.memref_slice %arg2[%c0_i32_115, %c0_i32_116] : memref<256x128xf32, #tpu.memory_space<any>> -> memref<1x128xf32, #tpu.memory_space<any>>
    %c7_i32_117 = arith.constant 7 : i32
    %c0_i32_118 = arith.constant 0 : i32
    %249 = tpu.memref_slice %arg6[%9, %c7_i32_117, %c0_i32_118] : memref<2x32x128xf32, #tpu.memory_space<vmem>> -> memref<1x1x128xf32, #tpu.memory_space<vmem>>
    %250 = tpu.memref_squeeze %249 : memref<1x1x128xf32, #tpu.memory_space<vmem>> -> memref<1x128xf32, #tpu.memory_space<vmem>>
    %251 = tpu.memref_slice %arg8[%9, %c7_i32_114] : memref<2x32x!tpu.dma_semaphore, #tpu.memory_space<semaphore_mem>> -> memref<1x1x!tpu.dma_semaphore, #tpu.memory_space<semaphore_mem>>
    %252 = tpu.memref_squeeze %251 : memref<1x1x!tpu.dma_semaphore, #tpu.memory_space<semaphore_mem>> -> memref<!tpu.dma_semaphore, #tpu.memory_space<semaphore_mem>>
    tpu.wait_dma2 semaphore(%252 : memref<!tpu.dma_semaphore, #tpu.memory_space<semaphore_mem>>) src(%248 : memref<1x128xf32, #tpu.memory_space<any>>) dst(%250 : memref<1x128xf32, #tpu.memory_space<vmem>>)
    %c8_i32_119 = arith.constant 8 : i32
    %c0_i32_120 = arith.constant 0 : i32
    %c0_i32_121 = arith.constant 0 : i32
    %253 = tpu.memref_slice %arg2[%c0_i32_120, %c0_i32_121] : memref<256x128xf32, #tpu.memory_space<any>> -> memref<1x128xf32, #tpu.memory_space<any>>
    %c8_i32_122 = arith.constant 8 : i32
    %c0_i32_123 = arith.constant 0 : i32
    %254 = tpu.memref_slice %arg6[%9, %c8_i32_122, %c0_i32_123] : memref<2x32x128xf32, #tpu.memory_space<vmem>> -> memref<1x1x128xf32, #tpu.memory_space<vmem>>
    %255 = tpu.memref_squeeze %254 : memref<1x1x128xf32, #tpu.memory_space<vmem>> -> memref<1x128xf32, #tpu.memory_space<vmem>>
    %256 = tpu.memref_slice %arg8[%9, %c8_i32_119] : memref<2x32x!tpu.dma_semaphore, #tpu.memory_space<semaphore_mem>> -> memref<1x1x!tpu.dma_semaphore, #tpu.memory_space<semaphore_mem>>
    %257 = tpu.memref_squeeze %256 : memref<1x1x!tpu.dma_semaphore, #tpu.memory_space<semaphore_mem>> -> memref<!tpu.dma_semaphore, #tpu.memory_space<semaphore_mem>>
    tpu.wait_dma2 semaphore(%257 : memref<!tpu.dma_semaphore, #tpu.memory_space<semaphore_mem>>) src(%253 : memref<1x128xf32, #tpu.memory_space<any>>) dst(%255 : memref<1x128xf32, #tpu.memory_space<vmem>>)
    %c9_i32_124 = arith.constant 9 : i32
    %c0_i32_125 = arith.constant 0 : i32
    %c0_i32_126 = arith.constant 0 : i32
    %258 = tpu.memref_slice %arg2[%c0_i32_125, %c0_i32_126] : memref<256x128xf32, #tpu.memory_space<any>> -> memref<1x128xf32, #tpu.memory_space<any>>
    %c9_i32_127 = arith.constant 9 : i32
    %c0_i32_128 = arith.constant 0 : i32
    %259 = tpu.memref_slice %arg6[%9, %c9_i32_127, %c0_i32_128] : memref<2x32x128xf32, #tpu.memory_space<vmem>> -> memref<1x1x128xf32, #tpu.memory_space<vmem>>
    %260 = tpu.memref_squeeze %259 : memref<1x1x128xf32, #tpu.memory_space<vmem>> -> memref<1x128xf32, #tpu.memory_space<vmem>>
    %261 = tpu.memref_slice %arg8[%9, %c9_i32_124] : memref<2x32x!tpu.dma_semaphore, #tpu.memory_space<semaphore_mem>> -> memref<1x1x!tpu.dma_semaphore, #tpu.memory_space<semaphore_mem>>
    %262 = tpu.memref_squeeze %261 : memref<1x1x!tpu.dma_semaphore, #tpu.memory_space<semaphore_mem>> -> memref<!tpu.dma_semaphore, #tpu.memory_space<semaphore_mem>>
    tpu.wait_dma2 semaphore(%262 : memref<!tpu.dma_semaphore, #tpu.memory_space<semaphore_mem>>) src(%258 : memref<1x128xf32, #tpu.memory_space<any>>) dst(%260 : memref<1x128xf32, #tpu.memory_space<vmem>>)
    %c10_i32_129 = arith.constant 10 : i32
    %c0_i32_130 = arith.constant 0 : i32
    %c0_i32_131 = arith.constant 0 : i32
    %263 = tpu.memref_slice %arg2[%c0_i32_130, %c0_i32_131] : memref<256x128xf32, #tpu.memory_space<any>> -> memref<1x128xf32, #tpu.memory_space<any>>
    %c10_i32_132 = arith.constant 10 : i32
    %c0_i32_133 = arith.constant 0 : i32
    %264 = tpu.memref_slice %arg6[%9, %c10_i32_132, %c0_i32_133] : memref<2x32x128xf32, #tpu.memory_space<vmem>> -> memref<1x1x128xf32, #tpu.memory_space<vmem>>
    %265 = tpu.memref_squeeze %264 : memref<1x1x128xf32, #tpu.memory_space<vmem>> -> memref<1x128xf32, #tpu.memory_space<vmem>>
    %266 = tpu.memref_slice %arg8[%9, %c10_i32_129] : memref<2x32x!tpu.dma_semaphore, #tpu.memory_space<semaphore_mem>> -> memref<1x1x!tpu.dma_semaphore, #tpu.memory_space<semaphore_mem>>
    %267 = tpu.memref_squeeze %266 : memref<1x1x!tpu.dma_semaphore, #tpu.memory_space<semaphore_mem>> -> memref<!tpu.dma_semaphore, #tpu.memory_space<semaphore_mem>>
    tpu.wait_dma2 semaphore(%267 : memref<!tpu.dma_semaphore, #tpu.memory_space<semaphore_mem>>) src(%263 : memref<1x128xf32, #tpu.memory_space<any>>) dst(%265 : memref<1x128xf32, #tpu.memory_space<vmem>>)
    %c11_i32_134 = arith.constant 11 : i32
    %c0_i32_135 = arith.constant 0 : i32
    %c0_i32_136 = arith.constant 0 : i32
    %268 = tpu.memref_slice %arg2[%c0_i32_135, %c0_i32_136] : memref<256x128xf32, #tpu.memory_space<any>> -> memref<1x128xf32, #tpu.memory_space<any>>
    %c11_i32_137 = arith.constant 11 : i32
    %c0_i32_138 = arith.constant 0 : i32
    %269 = tpu.memref_slice %arg6[%9, %c11_i32_137, %c0_i32_138] : memref<2x32x128xf32, #tpu.memory_space<vmem>> -> memref<1x1x128xf32, #tpu.memory_space<vmem>>
    %270 = tpu.memref_squeeze %269 : memref<1x1x128xf32, #tpu.memory_space<vmem>> -> memref<1x128xf32, #tpu.memory_space<vmem>>
    %271 = tpu.memref_slice %arg8[%9, %c11_i32_134] : memref<2x32x!tpu.dma_semaphore, #tpu.memory_space<semaphore_mem>> -> memref<1x1x!tpu.dma_semaphore, #tpu.memory_space<semaphore_mem>>
    %272 = tpu.memref_squeeze %271 : memref<1x1x!tpu.dma_semaphore, #tpu.memory_space<semaphore_mem>> -> memref<!tpu.dma_semaphore, #tpu.memory_space<semaphore_mem>>
    tpu.wait_dma2 semaphore(%272 : memref<!tpu.dma_semaphore, #tpu.memory_space<semaphore_mem>>) src(%268 : memref<1x128xf32, #tpu.memory_space<any>>) dst(%270 : memref<1x128xf32, #tpu.memory_space<vmem>>)
    %c12_i32_139 = arith.constant 12 : i32
    %c0_i32_140 = arith.constant 0 : i32
    %c0_i32_141 = arith.constant 0 : i32
    %273 = tpu.memref_slice %arg2[%c0_i32_140, %c0_i32_141] : memref<256x128xf32, #tpu.memory_space<any>> -> memref<1x128xf32, #tpu.memory_space<any>>
    %c12_i32_142 = arith.constant 12 : i32
    %c0_i32_143 = arith.constant 0 : i32
    %274 = tpu.memref_slice %arg6[%9, %c12_i32_142, %c0_i32_143] : memref<2x32x128xf32, #tpu.memory_space<vmem>> -> memref<1x1x128xf32, #tpu.memory_space<vmem>>
    %275 = tpu.memref_squeeze %274 : memref<1x1x128xf32, #tpu.memory_space<vmem>> -> memref<1x128xf32, #tpu.memory_space<vmem>>
    %276 = tpu.memref_slice %arg8[%9, %c12_i32_139] : memref<2x32x!tpu.dma_semaphore, #tpu.memory_space<semaphore_mem>> -> memref<1x1x!tpu.dma_semaphore, #tpu.memory_space<semaphore_mem>>
    %277 = tpu.memref_squeeze %276 : memref<1x1x!tpu.dma_semaphore, #tpu.memory_space<semaphore_mem>> -> memref<!tpu.dma_semaphore, #tpu.memory_space<semaphore_mem>>
    tpu.wait_dma2 semaphore(%277 : memref<!tpu.dma_semaphore, #tpu.memory_space<semaphore_mem>>) src(%273 : memref<1x128xf32, #tpu.memory_space<any>>) dst(%275 : memref<1x128xf32, #tpu.memory_space<vmem>>)
    %c13_i32_144 = arith.constant 13 : i32
    %c0_i32_145 = arith.constant 0 : i32
    %c0_i32_146 = arith.constant 0 : i32
    %278 = tpu.memref_slice %arg2[%c0_i32_145, %c0_i32_146] : memref<256x128xf32, #tpu.memory_space<any>> -> memref<1x128xf32, #tpu.memory_space<any>>
    %c13_i32_147 = arith.constant 13 : i32
    %c0_i32_148 = arith.constant 0 : i32
    %279 = tpu.memref_slice %arg6[%9, %c13_i32_147, %c0_i32_148] : memref<2x32x128xf32, #tpu.memory_space<vmem>> -> memref<1x1x128xf32, #tpu.memory_space<vmem>>
    %280 = tpu.memref_squeeze %279 : memref<1x1x128xf32, #tpu.memory_space<vmem>> -> memref<1x128xf32, #tpu.memory_space<vmem>>
    %281 = tpu.memref_slice %arg8[%9, %c13_i32_144] : memref<2x32x!tpu.dma_semaphore, #tpu.memory_space<semaphore_mem>> -> memref<1x1x!tpu.dma_semaphore, #tpu.memory_space<semaphore_mem>>
    %282 = tpu.memref_squeeze %281 : memref<1x1x!tpu.dma_semaphore, #tpu.memory_space<semaphore_mem>> -> memref<!tpu.dma_semaphore, #tpu.memory_space<semaphore_mem>>
    tpu.wait_dma2 semaphore(%282 : memref<!tpu.dma_semaphore, #tpu.memory_space<semaphore_mem>>) src(%278 : memref<1x128xf32, #tpu.memory_space<any>>) dst(%280 : memref<1x128xf32, #tpu.memory_space<vmem>>)
    %c14_i32_149 = arith.constant 14 : i32
    %c0_i32_150 = arith.constant 0 : i32
    %c0_i32_151 = arith.constant 0 : i32
    %283 = tpu.memref_slice %arg2[%c0_i32_150, %c0_i32_151] : memref<256x128xf32, #tpu.memory_space<any>> -> memref<1x128xf32, #tpu.memory_space<any>>
    %c14_i32_152 = arith.constant 14 : i32
    %c0_i32_153 = arith.constant 0 : i32
    %284 = tpu.memref_slice %arg6[%9, %c14_i32_152, %c0_i32_153] : memref<2x32x128xf32, #tpu.memory_space<vmem>> -> memref<1x1x128xf32, #tpu.memory_space<vmem>>
    %285 = tpu.memref_squeeze %284 : memref<1x1x128xf32, #tpu.memory_space<vmem>> -> memref<1x128xf32, #tpu.memory_space<vmem>>
    %286 = tpu.memref_slice %arg8[%9, %c14_i32_149] : memref<2x32x!tpu.dma_semaphore, #tpu.memory_space<semaphore_mem>> -> memref<1x1x!tpu.dma_semaphore, #tpu.memory_space<semaphore_mem>>
    %287 = tpu.memref_squeeze %286 : memref<1x1x!tpu.dma_semaphore, #tpu.memory_space<semaphore_mem>> -> memref<!tpu.dma_semaphore, #tpu.memory_space<semaphore_mem>>
    tpu.wait_dma2 semaphore(%287 : memref<!tpu.dma_semaphore, #tpu.memory_space<semaphore_mem>>) src(%283 : memref<1x128xf32, #tpu.memory_space<any>>) dst(%285 : memref<1x128xf32, #tpu.memory_space<vmem>>)
    %c15_i32_154 = arith.constant 15 : i32
    %c0_i32_155 = arith.constant 0 : i32
    %c0_i32_156 = arith.constant 0 : i32
    %288 = tpu.memref_slice %arg2[%c0_i32_155, %c0_i32_156] : memref<256x128xf32, #tpu.memory_space<any>> -> memref<1x128xf32, #tpu.memory_space<any>>
    %c15_i32_157 = arith.constant 15 : i32
    %c0_i32_158 = arith.constant 0 : i32
    %289 = tpu.memref_slice %arg6[%9, %c15_i32_157, %c0_i32_158] : memref<2x32x128xf32, #tpu.memory_space<vmem>> -> memref<1x1x128xf32, #tpu.memory_space<vmem>>
    %290 = tpu.memref_squeeze %289 : memref<1x1x128xf32, #tpu.memory_space<vmem>> -> memref<1x128xf32, #tpu.memory_space<vmem>>
    %291 = tpu.memref_slice %arg8[%9, %c15_i32_154] : memref<2x32x!tpu.dma_semaphore, #tpu.memory_space<semaphore_mem>> -> memref<1x1x!tpu.dma_semaphore, #tpu.memory_space<semaphore_mem>>
    %292 = tpu.memref_squeeze %291 : memref<1x1x!tpu.dma_semaphore, #tpu.memory_space<semaphore_mem>> -> memref<!tpu.dma_semaphore, #tpu.memory_space<semaphore_mem>>
    tpu.wait_dma2 semaphore(%292 : memref<!tpu.dma_semaphore, #tpu.memory_space<semaphore_mem>>) src(%288 : memref<1x128xf32, #tpu.memory_space<any>>) dst(%290 : memref<1x128xf32, #tpu.memory_space<vmem>>)
    %c16_i32_159 = arith.constant 16 : i32
    %c0_i32_160 = arith.constant 0 : i32
    %c0_i32_161 = arith.constant 0 : i32
    %293 = tpu.memref_slice %arg2[%c0_i32_160, %c0_i32_161] : memref<256x128xf32, #tpu.memory_space<any>> -> memref<1x128xf32, #tpu.memory_space<any>>
    %c16_i32_162 = arith.constant 16 : i32
    %c0_i32_163 = arith.constant 0 : i32
    %294 = tpu.memref_slice %arg6[%9, %c16_i32_162, %c0_i32_163] : memref<2x32x128xf32, #tpu.memory_space<vmem>> -> memref<1x1x128xf32, #tpu.memory_space<vmem>>
    %295 = tpu.memref_squeeze %294 : memref<1x1x128xf32, #tpu.memory_space<vmem>> -> memref<1x128xf32, #tpu.memory_space<vmem>>
    %296 = tpu.memref_slice %arg8[%9, %c16_i32_159] : memref<2x32x!tpu.dma_semaphore, #tpu.memory_space<semaphore_mem>> -> memref<1x1x!tpu.dma_semaphore, #tpu.memory_space<semaphore_mem>>
    %297 = tpu.memref_squeeze %296 : memref<1x1x!tpu.dma_semaphore, #tpu.memory_space<semaphore_mem>> -> memref<!tpu.dma_semaphore, #tpu.memory_space<semaphore_mem>>
    tpu.wait_dma2 semaphore(%297 : memref<!tpu.dma_semaphore, #tpu.memory_space<semaphore_mem>>) src(%293 : memref<1x128xf32, #tpu.memory_space<any>>) dst(%295 : memref<1x128xf32, #tpu.memory_space<vmem>>)
    %c17_i32_164 = arith.constant 17 : i32
    %c0_i32_165 = arith.constant 0 : i32
    %c0_i32_166 = arith.constant 0 : i32
    %298 = tpu.memref_slice %arg2[%c0_i32_165, %c0_i32_166] : memref<256x128xf32, #tpu.memory_space<any>> -> memref<1x128xf32, #tpu.memory_space<any>>
    %c17_i32_167 = arith.constant 17 : i32
    %c0_i32_168 = arith.constant 0 : i32
    %299 = tpu.memref_slice %arg6[%9, %c17_i32_167, %c0_i32_168] : memref<2x32x128xf32, #tpu.memory_space<vmem>> -> memref<1x1x128xf32, #tpu.memory_space<vmem>>
    %300 = tpu.memref_squeeze %299 : memref<1x1x128xf32, #tpu.memory_space<vmem>> -> memref<1x128xf32, #tpu.memory_space<vmem>>
    %301 = tpu.memref_slice %arg8[%9, %c17_i32_164] : memref<2x32x!tpu.dma_semaphore, #tpu.memory_space<semaphore_mem>> -> memref<1x1x!tpu.dma_semaphore, #tpu.memory_space<semaphore_mem>>
    %302 = tpu.memref_squeeze %301 : memref<1x1x!tpu.dma_semaphore, #tpu.memory_space<semaphore_mem>> -> memref<!tpu.dma_semaphore, #tpu.memory_space<semaphore_mem>>
    tpu.wait_dma2 semaphore(%302 : memref<!tpu.dma_semaphore, #tpu.memory_space<semaphore_mem>>) src(%298 : memref<1x128xf32, #tpu.memory_space<any>>) dst(%300 : memref<1x128xf32, #tpu.memory_space<vmem>>)
    %c18_i32_169 = arith.constant 18 : i32
    %c0_i32_170 = arith.constant 0 : i32
    %c0_i32_171 = arith.constant 0 : i32
    %303 = tpu.memref_slice %arg2[%c0_i32_170, %c0_i32_171] : memref<256x128xf32, #tpu.memory_space<any>> -> memref<1x128xf32, #tpu.memory_space<any>>
    %c18_i32_172 = arith.constant 18 : i32
    %c0_i32_173 = arith.constant 0 : i32
    %304 = tpu.memref_slice %arg6[%9, %c18_i32_172, %c0_i32_173] : memref<2x32x128xf32, #tpu.memory_space<vmem>> -> memref<1x1x128xf32, #tpu.memory_space<vmem>>
    %305 = tpu.memref_squeeze %304 : memref<1x1x128xf32, #tpu.memory_space<vmem>> -> memref<1x128xf32, #tpu.memory_space<vmem>>
    %306 = tpu.memref_slice %arg8[%9, %c18_i32_169] : memref<2x32x!tpu.dma_semaphore, #tpu.memory_space<semaphore_mem>> -> memref<1x1x!tpu.dma_semaphore, #tpu.memory_space<semaphore_mem>>
    %307 = tpu.memref_squeeze %306 : memref<1x1x!tpu.dma_semaphore, #tpu.memory_space<semaphore_mem>> -> memref<!tpu.dma_semaphore, #tpu.memory_space<semaphore_mem>>
    tpu.wait_dma2 semaphore(%307 : memref<!tpu.dma_semaphore, #tpu.memory_space<semaphore_mem>>) src(%303 : memref<1x128xf32, #tpu.memory_space<any>>) dst(%305 : memref<1x128xf32, #tpu.memory_space<vmem>>)
    %c19_i32_174 = arith.constant 19 : i32
    %c0_i32_175 = arith.constant 0 : i32
    %c0_i32_176 = arith.constant 0 : i32
    %308 = tpu.memref_slice %arg2[%c0_i32_175, %c0_i32_176] : memref<256x128xf32, #tpu.memory_space<any>> -> memref<1x128xf32, #tpu.memory_space<any>>
    %c19_i32_177 = arith.constant 19 : i32
    %c0_i32_178 = arith.constant 0 : i32
    %309 = tpu.memref_slice %arg6[%9, %c19_i32_177, %c0_i32_178] : memref<2x32x128xf32, #tpu.memory_space<vmem>> -> memref<1x1x128xf32, #tpu.memory_space<vmem>>
    %310 = tpu.memref_squeeze %309 : memref<1x1x128xf32, #tpu.memory_space<vmem>> -> memref<1x128xf32, #tpu.memory_space<vmem>>
    %311 = tpu.memref_slice %arg8[%9, %c19_i32_174] : memref<2x32x!tpu.dma_semaphore, #tpu.memory_space<semaphore_mem>> -> memref<1x1x!tpu.dma_semaphore, #tpu.memory_space<semaphore_mem>>
    %312 = tpu.memref_squeeze %311 : memref<1x1x!tpu.dma_semaphore, #tpu.memory_space<semaphore_mem>> -> memref<!tpu.dma_semaphore, #tpu.memory_space<semaphore_mem>>
    tpu.wait_dma2 semaphore(%312 : memref<!tpu.dma_semaphore, #tpu.memory_space<semaphore_mem>>) src(%308 : memref<1x128xf32, #tpu.memory_space<any>>) dst(%310 : memref<1x128xf32, #tpu.memory_space<vmem>>)
    %c20_i32_179 = arith.constant 20 : i32
    %c0_i32_180 = arith.constant 0 : i32
    %c0_i32_181 = arith.constant 0 : i32
    %313 = tpu.memref_slice %arg2[%c0_i32_180, %c0_i32_181] : memref<256x128xf32, #tpu.memory_space<any>> -> memref<1x128xf32, #tpu.memory_space<any>>
    %c20_i32_182 = arith.constant 20 : i32
    %c0_i32_183 = arith.constant 0 : i32
    %314 = tpu.memref_slice %arg6[%9, %c20_i32_182, %c0_i32_183] : memref<2x32x128xf32, #tpu.memory_space<vmem>> -> memref<1x1x128xf32, #tpu.memory_space<vmem>>
    %315 = tpu.memref_squeeze %314 : memref<1x1x128xf32, #tpu.memory_space<vmem>> -> memref<1x128xf32, #tpu.memory_space<vmem>>
    %316 = tpu.memref_slice %arg8[%9, %c20_i32_179] : memref<2x32x!tpu.dma_semaphore, #tpu.memory_space<semaphore_mem>> -> memref<1x1x!tpu.dma_semaphore, #tpu.memory_space<semaphore_mem>>
    %317 = tpu.memref_squeeze %316 : memref<1x1x!tpu.dma_semaphore, #tpu.memory_space<semaphore_mem>> -> memref<!tpu.dma_semaphore, #tpu.memory_space<semaphore_mem>>
    tpu.wait_dma2 semaphore(%317 : memref<!tpu.dma_semaphore, #tpu.memory_space<semaphore_mem>>) src(%313 : memref<1x128xf32, #tpu.memory_space<any>>) dst(%315 : memref<1x128xf32, #tpu.memory_space<vmem>>)
    %c21_i32_184 = arith.constant 21 : i32
    %c0_i32_185 = arith.constant 0 : i32
    %c0_i32_186 = arith.constant 0 : i32
    %318 = tpu.memref_slice %arg2[%c0_i32_185, %c0_i32_186] : memref<256x128xf32, #tpu.memory_space<any>> -> memref<1x128xf32, #tpu.memory_space<any>>
    %c21_i32_187 = arith.constant 21 : i32
    %c0_i32_188 = arith.constant 0 : i32
    %319 = tpu.memref_slice %arg6[%9, %c21_i32_187, %c0_i32_188] : memref<2x32x128xf32, #tpu.memory_space<vmem>> -> memref<1x1x128xf32, #tpu.memory_space<vmem>>
    %320 = tpu.memref_squeeze %319 : memref<1x1x128xf32, #tpu.memory_space<vmem>> -> memref<1x128xf32, #tpu.memory_space<vmem>>
    %321 = tpu.memref_slice %arg8[%9, %c21_i32_184] : memref<2x32x!tpu.dma_semaphore, #tpu.memory_space<semaphore_mem>> -> memref<1x1x!tpu.dma_semaphore, #tpu.memory_space<semaphore_mem>>
    %322 = tpu.memref_squeeze %321 : memref<1x1x!tpu.dma_semaphore, #tpu.memory_space<semaphore_mem>> -> memref<!tpu.dma_semaphore, #tpu.memory_space<semaphore_mem>>
    tpu.wait_dma2 semaphore(%322 : memref<!tpu.dma_semaphore, #tpu.memory_space<semaphore_mem>>) src(%318 : memref<1x128xf32, #tpu.memory_space<any>>) dst(%320 : memref<1x128xf32, #tpu.memory_space<vmem>>)
    %c22_i32_189 = arith.constant 22 : i32
    %c0_i32_190 = arith.constant 0 : i32
    %c0_i32_191 = arith.constant 0 : i32
    %323 = tpu.memref_slice %arg2[%c0_i32_190, %c0_i32_191] : memref<256x128xf32, #tpu.memory_space<any>> -> memref<1x128xf32, #tpu.memory_space<any>>
    %c22_i32_192 = arith.constant 22 : i32
    %c0_i32_193 = arith.constant 0 : i32
    %324 = tpu.memref_slice %arg6[%9, %c22_i32_192, %c0_i32_193] : memref<2x32x128xf32, #tpu.memory_space<vmem>> -> memref<1x1x128xf32, #tpu.memory_space<vmem>>
    %325 = tpu.memref_squeeze %324 : memref<1x1x128xf32, #tpu.memory_space<vmem>> -> memref<1x128xf32, #tpu.memory_space<vmem>>
    %326 = tpu.memref_slice %arg8[%9, %c22_i32_189] : memref<2x32x!tpu.dma_semaphore, #tpu.memory_space<semaphore_mem>> -> memref<1x1x!tpu.dma_semaphore, #tpu.memory_space<semaphore_mem>>
    %327 = tpu.memref_squeeze %326 : memref<1x1x!tpu.dma_semaphore, #tpu.memory_space<semaphore_mem>> -> memref<!tpu.dma_semaphore, #tpu.memory_space<semaphore_mem>>
    tpu.wait_dma2 semaphore(%327 : memref<!tpu.dma_semaphore, #tpu.memory_space<semaphore_mem>>) src(%323 : memref<1x128xf32, #tpu.memory_space<any>>) dst(%325 : memref<1x128xf32, #tpu.memory_space<vmem>>)
    %c23_i32_194 = arith.constant 23 : i32
    %c0_i32_195 = arith.constant 0 : i32
    %c0_i32_196 = arith.constant 0 : i32
    %328 = tpu.memref_slice %arg2[%c0_i32_195, %c0_i32_196] : memref<256x128xf32, #tpu.memory_space<any>> -> memref<1x128xf32, #tpu.memory_space<any>>
    %c23_i32_197 = arith.constant 23 : i32
    %c0_i32_198 = arith.constant 0 : i32
    %329 = tpu.memref_slice %arg6[%9, %c23_i32_197, %c0_i32_198] : memref<2x32x128xf32, #tpu.memory_space<vmem>> -> memref<1x1x128xf32, #tpu.memory_space<vmem>>
    %330 = tpu.memref_squeeze %329 : memref<1x1x128xf32, #tpu.memory_space<vmem>> -> memref<1x128xf32, #tpu.memory_space<vmem>>
    %331 = tpu.memref_slice %arg8[%9, %c23_i32_194] : memref<2x32x!tpu.dma_semaphore, #tpu.memory_space<semaphore_mem>> -> memref<1x1x!tpu.dma_semaphore, #tpu.memory_space<semaphore_mem>>
    %332 = tpu.memref_squeeze %331 : memref<1x1x!tpu.dma_semaphore, #tpu.memory_space<semaphore_mem>> -> memref<!tpu.dma_semaphore, #tpu.memory_space<semaphore_mem>>
    tpu.wait_dma2 semaphore(%332 : memref<!tpu.dma_semaphore, #tpu.memory_space<semaphore_mem>>) src(%328 : memref<1x128xf32, #tpu.memory_space<any>>) dst(%330 : memref<1x128xf32, #tpu.memory_space<vmem>>)
    %c24_i32_199 = arith.constant 24 : i32
    %c0_i32_200 = arith.constant 0 : i32
    %c0_i32_201 = arith.constant 0 : i32
    %333 = tpu.memref_slice %arg2[%c0_i32_200, %c0_i32_201] : memref<256x128xf32, #tpu.memory_space<any>> -> memref<1x128xf32, #tpu.memory_space<any>>
    %c24_i32_202 = arith.constant 24 : i32
    %c0_i32_203 = arith.constant 0 : i32
    %334 = tpu.memref_slice %arg6[%9, %c24_i32_202, %c0_i32_203] : memref<2x32x128xf32, #tpu.memory_space<vmem>> -> memref<1x1x128xf32, #tpu.memory_space<vmem>>
    %335 = tpu.memref_squeeze %334 : memref<1x1x128xf32, #tpu.memory_space<vmem>> -> memref<1x128xf32, #tpu.memory_space<vmem>>
    %336 = tpu.memref_slice %arg8[%9, %c24_i32_199] : memref<2x32x!tpu.dma_semaphore, #tpu.memory_space<semaphore_mem>> -> memref<1x1x!tpu.dma_semaphore, #tpu.memory_space<semaphore_mem>>
    %337 = tpu.memref_squeeze %336 : memref<1x1x!tpu.dma_semaphore, #tpu.memory_space<semaphore_mem>> -> memref<!tpu.dma_semaphore, #tpu.memory_space<semaphore_mem>>
    tpu.wait_dma2 semaphore(%337 : memref<!tpu.dma_semaphore, #tpu.memory_space<semaphore_mem>>) src(%333 : memref<1x128xf32, #tpu.memory_space<any>>) dst(%335 : memref<1x128xf32, #tpu.memory_space<vmem>>)
    %c25_i32_204 = arith.constant 25 : i32
    %c0_i32_205 = arith.constant 0 : i32
    %c0_i32_206 = arith.constant 0 : i32
    %338 = tpu.memref_slice %arg2[%c0_i32_205, %c0_i32_206] : memref<256x128xf32, #tpu.memory_space<any>> -> memref<1x128xf32, #tpu.memory_space<any>>
    %c25_i32_207 = arith.constant 25 : i32
    %c0_i32_208 = arith.constant 0 : i32
    %339 = tpu.memref_slice %arg6[%9, %c25_i32_207, %c0_i32_208] : memref<2x32x128xf32, #tpu.memory_space<vmem>> -> memref<1x1x128xf32, #tpu.memory_space<vmem>>
    %340 = tpu.memref_squeeze %339 : memref<1x1x128xf32, #tpu.memory_space<vmem>> -> memref<1x128xf32, #tpu.memory_space<vmem>>
    %341 = tpu.memref_slice %arg8[%9, %c25_i32_204] : memref<2x32x!tpu.dma_semaphore, #tpu.memory_space<semaphore_mem>> -> memref<1x1x!tpu.dma_semaphore, #tpu.memory_space<semaphore_mem>>
    %342 = tpu.memref_squeeze %341 : memref<1x1x!tpu.dma_semaphore, #tpu.memory_space<semaphore_mem>> -> memref<!tpu.dma_semaphore, #tpu.memory_space<semaphore_mem>>
    tpu.wait_dma2 semaphore(%342 : memref<!tpu.dma_semaphore, #tpu.memory_space<semaphore_mem>>) src(%338 : memref<1x128xf32, #tpu.memory_space<any>>) dst(%340 : memref<1x128xf32, #tpu.memory_space<vmem>>)
    %c26_i32_209 = arith.constant 26 : i32
    %c0_i32_210 = arith.constant 0 : i32
    %c0_i32_211 = arith.constant 0 : i32
    %343 = tpu.memref_slice %arg2[%c0_i32_210, %c0_i32_211] : memref<256x128xf32, #tpu.memory_space<any>> -> memref<1x128xf32, #tpu.memory_space<any>>
    %c26_i32_212 = arith.constant 26 : i32
    %c0_i32_213 = arith.constant 0 : i32
    %344 = tpu.memref_slice %arg6[%9, %c26_i32_212, %c0_i32_213] : memref<2x32x128xf32, #tpu.memory_space<vmem>> -> memref<1x1x128xf32, #tpu.memory_space<vmem>>
    %345 = tpu.memref_squeeze %344 : memref<1x1x128xf32, #tpu.memory_space<vmem>> -> memref<1x128xf32, #tpu.memory_space<vmem>>
    %346 = tpu.memref_slice %arg8[%9, %c26_i32_209] : memref<2x32x!tpu.dma_semaphore, #tpu.memory_space<semaphore_mem>> -> memref<1x1x!tpu.dma_semaphore, #tpu.memory_space<semaphore_mem>>
    %347 = tpu.memref_squeeze %346 : memref<1x1x!tpu.dma_semaphore, #tpu.memory_space<semaphore_mem>> -> memref<!tpu.dma_semaphore, #tpu.memory_space<semaphore_mem>>
    tpu.wait_dma2 semaphore(%347 : memref<!tpu.dma_semaphore, #tpu.memory_space<semaphore_mem>>) src(%343 : memref<1x128xf32, #tpu.memory_space<any>>) dst(%345 : memref<1x128xf32, #tpu.memory_space<vmem>>)
    %c27_i32_214 = arith.constant 27 : i32
    %c0_i32_215 = arith.constant 0 : i32
    %c0_i32_216 = arith.constant 0 : i32
    %348 = tpu.memref_slice %arg2[%c0_i32_215, %c0_i32_216] : memref<256x128xf32, #tpu.memory_space<any>> -> memref<1x128xf32, #tpu.memory_space<any>>
    %c27_i32_217 = arith.constant 27 : i32
    %c0_i32_218 = arith.constant 0 : i32
    %349 = tpu.memref_slice %arg6[%9, %c27_i32_217, %c0_i32_218] : memref<2x32x128xf32, #tpu.memory_space<vmem>> -> memref<1x1x128xf32, #tpu.memory_space<vmem>>
    %350 = tpu.memref_squeeze %349 : memref<1x1x128xf32, #tpu.memory_space<vmem>> -> memref<1x128xf32, #tpu.memory_space<vmem>>
    %351 = tpu.memref_slice %arg8[%9, %c27_i32_214] : memref<2x32x!tpu.dma_semaphore, #tpu.memory_space<semaphore_mem>> -> memref<1x1x!tpu.dma_semaphore, #tpu.memory_space<semaphore_mem>>
    %352 = tpu.memref_squeeze %351 : memref<1x1x!tpu.dma_semaphore, #tpu.memory_space<semaphore_mem>> -> memref<!tpu.dma_semaphore, #tpu.memory_space<semaphore_mem>>
    tpu.wait_dma2 semaphore(%352 : memref<!tpu.dma_semaphore, #tpu.memory_space<semaphore_mem>>) src(%348 : memref<1x128xf32, #tpu.memory_space<any>>) dst(%350 : memref<1x128xf32, #tpu.memory_space<vmem>>)
    %c28_i32_219 = arith.constant 28 : i32
    %c0_i32_220 = arith.constant 0 : i32
    %c0_i32_221 = arith.constant 0 : i32
    %353 = tpu.memref_slice %arg2[%c0_i32_220, %c0_i32_221] : memref<256x128xf32, #tpu.memory_space<any>> -> memref<1x128xf32, #tpu.memory_space<any>>
    %c28_i32_222 = arith.constant 28 : i32
    %c0_i32_223 = arith.constant 0 : i32
    %354 = tpu.memref_slice %arg6[%9, %c28_i32_222, %c0_i32_223] : memref<2x32x128xf32, #tpu.memory_space<vmem>> -> memref<1x1x128xf32, #tpu.memory_space<vmem>>
    %355 = tpu.memref_squeeze %354 : memref<1x1x128xf32, #tpu.memory_space<vmem>> -> memref<1x128xf32, #tpu.memory_space<vmem>>
    %356 = tpu.memref_slice %arg8[%9, %c28_i32_219] : memref<2x32x!tpu.dma_semaphore, #tpu.memory_space<semaphore_mem>> -> memref<1x1x!tpu.dma_semaphore, #tpu.memory_space<semaphore_mem>>
    %357 = tpu.memref_squeeze %356 : memref<1x1x!tpu.dma_semaphore, #tpu.memory_space<semaphore_mem>> -> memref<!tpu.dma_semaphore, #tpu.memory_space<semaphore_mem>>
    tpu.wait_dma2 semaphore(%357 : memref<!tpu.dma_semaphore, #tpu.memory_space<semaphore_mem>>) src(%353 : memref<1x128xf32, #tpu.memory_space<any>>) dst(%355 : memref<1x128xf32, #tpu.memory_space<vmem>>)
    %c29_i32_224 = arith.constant 29 : i32
    %c0_i32_225 = arith.constant 0 : i32
    %c0_i32_226 = arith.constant 0 : i32
    %358 = tpu.memref_slice %arg2[%c0_i32_225, %c0_i32_226] : memref<256x128xf32, #tpu.memory_space<any>> -> memref<1x128xf32, #tpu.memory_space<any>>
    %c29_i32_227 = arith.constant 29 : i32
    %c0_i32_228 = arith.constant 0 : i32
    %359 = tpu.memref_slice %arg6[%9, %c29_i32_227, %c0_i32_228] : memref<2x32x128xf32, #tpu.memory_space<vmem>> -> memref<1x1x128xf32, #tpu.memory_space<vmem>>
    %360 = tpu.memref_squeeze %359 : memref<1x1x128xf32, #tpu.memory_space<vmem>> -> memref<1x128xf32, #tpu.memory_space<vmem>>
    %361 = tpu.memref_slice %arg8[%9, %c29_i32_224] : memref<2x32x!tpu.dma_semaphore, #tpu.memory_space<semaphore_mem>> -> memref<1x1x!tpu.dma_semaphore, #tpu.memory_space<semaphore_mem>>
    %362 = tpu.memref_squeeze %361 : memref<1x1x!tpu.dma_semaphore, #tpu.memory_space<semaphore_mem>> -> memref<!tpu.dma_semaphore, #tpu.memory_space<semaphore_mem>>
    tpu.wait_dma2 semaphore(%362 : memref<!tpu.dma_semaphore, #tpu.memory_space<semaphore_mem>>) src(%358 : memref<1x128xf32, #tpu.memory_space<any>>) dst(%360 : memref<1x128xf32, #tpu.memory_space<vmem>>)
    %c30_i32_229 = arith.constant 30 : i32
    %c0_i32_230 = arith.constant 0 : i32
    %c0_i32_231 = arith.constant 0 : i32
    %363 = tpu.memref_slice %arg2[%c0_i32_230, %c0_i32_231] : memref<256x128xf32, #tpu.memory_space<any>> -> memref<1x128xf32, #tpu.memory_space<any>>
    %c30_i32_232 = arith.constant 30 : i32
    %c0_i32_233 = arith.constant 0 : i32
    %364 = tpu.memref_slice %arg6[%9, %c30_i32_232, %c0_i32_233] : memref<2x32x128xf32, #tpu.memory_space<vmem>> -> memref<1x1x128xf32, #tpu.memory_space<vmem>>
    %365 = tpu.memref_squeeze %364 : memref<1x1x128xf32, #tpu.memory_space<vmem>> -> memref<1x128xf32, #tpu.memory_space<vmem>>
    %366 = tpu.memref_slice %arg8[%9, %c30_i32_229] : memref<2x32x!tpu.dma_semaphore, #tpu.memory_space<semaphore_mem>> -> memref<1x1x!tpu.dma_semaphore, #tpu.memory_space<semaphore_mem>>
    %367 = tpu.memref_squeeze %366 : memref<1x1x!tpu.dma_semaphore, #tpu.memory_space<semaphore_mem>> -> memref<!tpu.dma_semaphore, #tpu.memory_space<semaphore_mem>>
    tpu.wait_dma2 semaphore(%367 : memref<!tpu.dma_semaphore, #tpu.memory_space<semaphore_mem>>) src(%363 : memref<1x128xf32, #tpu.memory_space<any>>) dst(%365 : memref<1x128xf32, #tpu.memory_space<vmem>>)
    %c31_i32_234 = arith.constant 31 : i32
    %c0_i32_235 = arith.constant 0 : i32
    %c0_i32_236 = arith.constant 0 : i32
    %368 = tpu.memref_slice %arg2[%c0_i32_235, %c0_i32_236] : memref<256x128xf32, #tpu.memory_space<any>> -> memref<1x128xf32, #tpu.memory_space<any>>
    %c31_i32_237 = arith.constant 31 : i32
    %c0_i32_238 = arith.constant 0 : i32
    %369 = tpu.memref_slice %arg6[%9, %c31_i32_237, %c0_i32_238] : memref<2x32x128xf32, #tpu.memory_space<vmem>> -> memref<1x1x128xf32, #tpu.memory_space<vmem>>
    %370 = tpu.memref_squeeze %369 : memref<1x1x128xf32, #tpu.memory_space<vmem>> -> memref<1x128xf32, #tpu.memory_space<vmem>>
    %371 = tpu.memref_slice %arg8[%9, %c31_i32_234] : memref<2x32x!tpu.dma_semaphore, #tpu.memory_space<semaphore_mem>> -> memref<1x1x!tpu.dma_semaphore, #tpu.memory_space<semaphore_mem>>
    %372 = tpu.memref_squeeze %371 : memref<1x1x!tpu.dma_semaphore, #tpu.memory_space<semaphore_mem>> -> memref<!tpu.dma_semaphore, #tpu.memory_space<semaphore_mem>>
    tpu.wait_dma2 semaphore(%372 : memref<!tpu.dma_semaphore, #tpu.memory_space<semaphore_mem>>) src(%368 : memref<1x128xf32, #tpu.memory_space<any>>) dst(%370 : memref<1x128xf32, #tpu.memory_space<vmem>>)
    %373 = arith.index_cast %9 : i32 to index
    %c0_239 = arith.constant 0 : index
    %c0_240 = arith.constant 0 : index
    %374 = vector.load %arg6[%373, %c0_239, %c0_240] : memref<2x32x128xf32, #tpu.memory_space<vmem>>, vector<1x32x128xf32>
    %375 = vector.shape_cast %374 : vector<1x32x128xf32> to vector<32x128xf32>
    %376 = arith.addf %375, %212 : vector<32x128xf32>
    %c0_241 = arith.constant 0 : index
    %c0_242 = arith.constant 0 : index
    %377 = vector.load %arg5[%c0_241, %c0_242] : memref<32x128xf32, #tpu.memory_space<vmem>>, vector<32x128xf32>
    tpu.vector_store %arg5[%c0_241, %c0_242], %376 {strides = array<i32>} : memref<32x128xf32, #tpu.memory_space<vmem>>, vector<32x128xf32>,
    return
  }
  func.func @transform_1(%arg0: i32, %arg1: memref<64xi32, #tpu.memory_space<smem>>) -> (i32, i32) {
    %c0_i32 = arith.constant 0 : i32
    %c0_i32_0 = arith.constant 0 : i32
    %c0_i32_1 = arith.constant 0 : i32
    return %c0_i32, %c0_i32_0 : i32, i32
  }
  func.func @transform_2(%arg0: i32, %arg1: memref<64xi32, #tpu.memory_space<smem>>) -> (i32, i32) {
    %c0_i32 = arith.constant 0 : i32
    %c0_i32_0 = arith.constant 0 : i32
    %c0_i32_1 = arith.constant 0 : i32
    return %c0_i32, %c0_i32_0 : i32, i32
  }
  func.func @transform_3(%arg0: i32, %arg1: memref<64xi32, #tpu.memory_space<smem>>) -> (i32, i32) {
    %c0_i32 = arith.constant 0 : i32
    %c0_i32_0 = arith.constant 0 : i32
    return %arg0, %c0_i32 : i32, i32
  }
}

</mosaic_0001>

<bundles_post_ra>
// kernel: tpu_custom_call.1
= control target key start
LH: loop header
LB: loop body
LE: loop exit
PB: predicated region body
PF: predicated region fallthrough
CT: control target
= control target key end

     0   :  { %s6554_s0 = inlined_call_operand.vmem [shape: s32[64], index: 0, kind: input, shape index: {}]   ;;  %s6555_s1 = inlined_call_operand.vmem [shape: f32[256,128], index: 1, kind: input, shape index: {}]   ;;  %s6556_s2 = inlined_call_operand.vmem [shape: f32[256,8], index: 2, kind: input, shape index: {}]   ;;  %s6557_s3 = inlined_call_operand.vmem [shape: f32[8,128], index: 3, kind: input, shape index: {}]   ;;  %s6558_s4 = inlined_call_operand.hbm [shape: f32[64,128], index: 4, kind: output, shape index: {}]  }
   0x1   :  { %6561 = sst [smem:[#allocation109_spill]] %s6555_s1  ;;  %s9_s17 = sshll.u32 %s6554_s0, 4  ;;  %s10_s17 = int_to_ptr.vmem [resolvable:$true] %s9_s17 }
   0x2   :  { %6562 = sst [smem:[#allocation110_spill]] %s6557_s3  ;;  %s5749_s18 = scalar_lea.vmem %s10_s17, 16 }
   0x3   :  { %p5750_p0 = scmp.ne.s32.totalorder %s10_s17, %s5749_s18  ;;  %p5754_p1 = scmp.lt.s32.totalorder %s10_s17, %s10_s17 }
   0x4   :  { %p5755_p2 = scmp.lt.s32.totalorder %s5749_s18, %s5749_s18 }
   0x6   :  { %p5756_p3 = por %p5755_p2, %p5754_p1 }
   0x8   :  { %p5757_p4 = pnand %p5756_p3, %p5750_p0 }
   0xa   :  { %5760 = shalt.err (!%p5757_p4)  }
   0xb   :  { %s5889_s19 = smov [#allocation6]  }
   0xc   :  { %12 = dma.vmem_to_smem %s10_s17, 16, %s5889_s19, [#allocation5] }
   0xd   :  { %5803 = dma.done.wait [#allocation5], 16 }
   0xe   :  { %5804 = vsyncadd [#allocation5], 4294967280 }
   0xf   :  { %14 = sfence }
  0x10   :  { %15 = vsyncpa [#allocation8], 0 }
  0x11   :  { %17 = vsyncpa [#allocation8 + $0x1], 0  ;;  %s5921_s20 = smov 0   ;;  %s5923_s21 = smov 0  }
  0x12   :  { %s5925_s0 = smov 0   ;;  %s5927_s22 = smov 0  }
  0x13 LB: > { %6563 = sst [smem:[#allocation107_spill]] %s5883_s0  ;;  %s5942_s23 = sadd.s32 4294967295, %s5887_s22   ;;  %s5887_s22 = sphi %s5927_s22, %s6575_s22   ;;  %s5883_s0 = sphi %s5925_s0, %s6572_s0   ;;  %s5879_s21 = sphi %s5923_s21, %s6574_s21   ;;  %s5875_s20 = sphi %s5921_s20, %s6573_s20  }
  0x14   : > { %s5417_s24 = sadd.s32 4294967294, %s5887_s22   ;;  %s5946_s25 = sadd.s32 1, %s5887_s22  }
  0x15   : > { %s72_s26 = sadd.s32 1, %s5883_s0  ;;  %s69_s27 = ssub.s32 %s5887_s22, %s5946_s25 }
  0x16   : > { %p82_p5 = scmp.ne.s32.totalorder %s5883_s0, %s5879_s21  ;;  %p70_p6 = scmp.eq.s32.totalorder %s69_s27, 0 }
  0x17   : > { %p83_p7 = scmp.eq.s32.totalorder %s5942_s23, 1  ;;  %p88_p8 = scmp.ne.s32.totalorder %s5879_s21, %s5875_s20 }
  0x18   : > { %p89_p9 = scmp.eq.s32.totalorder %s5417_s24, 1  ;;  %p5419_p12 = scmp.ge.s32.totalorder %s5887_s22, 1 }
  0x19   : > { %s5957_s28 = scalar_select %p70_p6, %s5883_s0, %s72_s26  }
  0x1a   : > { %p5959_p10 = por %p83_p7, %p82_p5  ;;  %p5963_p11 = por %p89_p9, %p88_p8 }
  0x1b   : > { %6564 = sst [smem:[#allocation108_spill]] %s5957_s28  ;;  %p113_p13 = scmp.lt.s32.totalorder %s5887_s22, 3 }
  0x1d   : > { %p114_p0 = pnand %p5419_p12, %p113_p13 }
  0x1e   : > { %s6559_s5 = sand.u32 (!%p114_p0), 1, %s5879_s21   ;;  %p131_p1 = scmp.lt.s32.totalorder (!%p114_p0), %s5942_s23, 0 }
  0x1f   : > { %117 = sbr.rel (%p114_p0) target bundleno = 999 (0x3e7), region = 28  ;;  %s5420_s6 = sshll.u32 (!%p114_p0), %s6559_s5, 5 }
  0x20   : > { %s132_s7 = ssub.s32 (!%p114_p0), 0, %s5942_s23  ;;  %s5977_s12 = scalar_lea.vmem (!%p114_p0), [#allocation7], %s5420_s6 }
  0x21   : > { %s5421_s8 = smin.u32 (!%p114_p0), %s5942_s23, %s132_s7  ;;  %p5424_p3 = scmp.ne.s32.totalorder (!%p114_p0), %s5942_s23, 0 }
  0x22   : > { %s134_s9 = sand.u32 (!%p114_p0), 1, %s5421_s8  }
  0x23   : > { %s135_s10 = ssub.s32 (!%p114_p0), 0, %s134_s9 }
  0x24   : > { %s6577_s10 = smov (!%p131_p1, %s135_s10), %s134_s9  ;;  %146 = sbr.rel (%p5424_p3) target bundleno = 328 (0x148), region = 32 }
  0x25   : > { %p5423_p2 = scmp.lt.s32.totalorder %s6577_s10, 0  ;;  %s141_s11 = sadd.s32 2, %s6577_s10 }
  0x26   : > { %s147_s13 = sld [smem:[#allocation6]] (!%p5424_p3) }
  0x27   : > { %s6579_s11 = smov (!%p5423_p2, %s141_s11), %s6577_s10  ;;  %s6567_s1 = sld [smem:[#allocation109_spill]] (!%p5424_p3) }
  0x2d   : > { %s148_s16 = scalar_lea.vmem %s6567_s1, %s147_s13 }
  0x2e   : > { %v167_v0 = vld [vmem:[%s148_s16] sm:$0x1] }
  0x2f   : > { %168 = vst [vmem:[#allocation2] sm:$0x1] %v167_v0 }
  0x30   : > { %194 = vsyncadd [#allocation4], 16  ;;  %s5425_s17 = sld [smem:[#allocation6 + $0x1]] }
  0x36   : > { %s196_s24 = scalar_lea.vmem %s6567_s1, %s5425_s17 }
  0x37   : > { %v217_v1 = vld [vmem:[%s196_s24] sm:$0x1] }
  0x38   : > { %218 = vst [vmem:[#allocation2 + $0x1] sm:$0x1] %v217_v1 }
  0x39   : > { %244 = vsyncadd [#allocation4 + $0x1], 16  ;;  %s5426_s26 = sld [smem:[#allocation6 + $0x2]] }
  0x3f   : > { %s246_s7 = scalar_lea.vmem %s6567_s1, %s5426_s26 }
  0x40   : > { %v267_v2 = vld [vmem:[%s246_s7] sm:$0x1] }
  0x41   : > { %268 = vst [vmem:[#allocation2 + $0x2] sm:$0x1] %v267_v2 }
  0x42   : > { %294 = vsyncadd [#allocation4 + $0x2], 16  ;;  %s5427_s8 = sld [smem:[#allocation6 + $0x3]] }
  0x48   : > { %s296_s13 = scalar_lea.vmem %s6567_s1, %s5427_s8 }
  0x49   : > { %v317_v3 = vld [vmem:[%s296_s13] sm:$0x1] }
  0x4a   : > { %318 = vst [vmem:[#allocation2 + $0x3] sm:$0x1] %v317_v3 }
  0x4b   : > { %344 = vsyncadd [#allocation4 + $0x3], 16  ;;  %s5428_s14 = sld [smem:[#allocation6 + $0x4]] }
  0x51   : > { %s346_s17 = scalar_lea.vmem %s6567_s1, %s5428_s14 }
  0x52   : > { %v367_v4 = vld [vmem:[%s346_s17] sm:$0x1] }
  0x53   : > { %368 = vst [vmem:[#allocation2 + $0x4] sm:$0x1] %v367_v4 }
  0x54   : > { %394 = vsyncadd [#allocation4 + $0x4], 16  ;;  %s5429_s18 = sld [smem:[#allocation6 + $0x5]] }
  0x5a   : > { %s396_s26 = scalar_lea.vmem %s6567_s1, %s5429_s18 }
  0x5b   : > { %v417_v5 = vld [vmem:[%s396_s26] sm:$0x1] }
  0x5c   : > { %418 = vst [vmem:[#allocation2 + $0x5] sm:$0x1] %v417_v5 }
  0x5d   : > { %444 = vsyncadd [#allocation4 + $0x5], 16  ;;  %s5430_s27 = sld [smem:[#allocation6 + $0x6]] }
  0x63   : > { %s446_s8 = scalar_lea.vmem %s6567_s1, %s5430_s27 }
  0x64   : > { %v467_v6 = vld [vmem:[%s446_s8] sm:$0x1] }
  0x65   : > { %468 = vst [vmem:[#allocation2 + $0x6] sm:$0x1] %v467_v6 }
  0x66   : > { %494 = vsyncadd [#allocation4 + $0x6], 16  ;;  %s5431_s9 = sld [smem:[#allocation6 + $0x7]] }
  0x6c   : > { %s496_s14 = scalar_lea.vmem %s6567_s1, %s5431_s9 }
  0x6d   : > { %v517_v7 = vld [vmem:[%s496_s14] sm:$0x1] }
  0x6e   : > { %518 = vst [vmem:[#allocation2 + $0x7] sm:$0x1] %v517_v7 }
  0x6f   : > { %544 = vsyncadd [#allocation4 + $0x7], 16  ;;  %s5432_s15 = sld [smem:[#allocation6 + $0x8]] }
  0x75   : > { %s546_s18 = scalar_lea.vmem %s6567_s1, %s5432_s15 }
  0x76   : > { %v567_v8 = vld [vmem:[%s546_s18] sm:$0x1] }
  0x77   : > { %568 = vst [vmem:[#allocation2 + $0x8] sm:$0x1] %v567_v8 }
  0x78   : > { %594 = vsyncadd [#allocation4 + $0x8], 16  ;;  %s5433_s19 = sld [smem:[#allocation6 + $0x9]] }
  0x7e   : > { %s596_s27 = scalar_lea.vmem %s6567_s1, %s5433_s19 }
  0x7f   : > { %v617_v9 = vld [vmem:[%s596_s27] sm:$0x1] }
  0x80   : > { %618 = vst [vmem:[#allocation2 + $0x9] sm:$0x1] %v617_v9 }
  0x81   : > { %644 = vsyncadd [#allocation4 + $0x9], 16  ;;  %s5434_s6 = sld [smem:[#allocation6 + $0xa]] }
  0x87   : > { %s646_s9 = scalar_lea.vmem %s6567_s1, %s5434_s6 }
  0x88   : > { %v667_v10 = vld [vmem:[%s646_s9] sm:$0x1] }
  0x89   : > { %668 = vst [vmem:[#allocation2 + $0xa] sm:$0x1] %v667_v10 }
  0x8a   : > { %694 = vsyncadd [#allocation4 + $0xa], 16  ;;  %s5435_s10 = sld [smem:[#allocation6 + $0xb]] }
  0x90   : > { %s696_s15 = scalar_lea.vmem %s6567_s1, %s5435_s10 }
  0x91   : > { %v717_v11 = vld [vmem:[%s696_s15] sm:$0x1] }
  0x92   : > { %718 = vst [vmem:[#allocation2 + $0xb] sm:$0x1] %v717_v11 }
  0x93   : > { %744 = vsyncadd [#allocation4 + $0xb], 16  ;;  %s5436_s16 = sld [smem:[#allocation6 + $0xc]] }
  0x99   : > { %s746_s19 = scalar_lea.vmem %s6567_s1, %s5436_s16 }
  0x9a   : > { %v767_v12 = vld [vmem:[%s746_s19] sm:$0x1] }
  0x9b   : > { %768 = vst [vmem:[#allocation2 + $0xc] sm:$0x1] %v767_v12 }
  0x9c   : > { %794 = vsyncadd [#allocation4 + $0xc], 16  ;;  %s5437_s24 = sld [smem:[#allocation6 + $0xd]] }
  0xa2   : > { %s796_s6 = scalar_lea.vmem %s6567_s1, %s5437_s24 }
  0xa3   : > { %v817_v13 = vld [vmem:[%s796_s6] sm:$0x1] }
  0xa4   : > { %818 = vst [vmem:[#allocation2 + $0xd] sm:$0x1] %v817_v13 }
  0xa5   : > { %844 = vsyncadd [#allocation4 + $0xd], 16  ;;  %s5438_s7 = sld [smem:[#allocation6 + $0xe]] }
  0xab   : > { %s846_s10 = scalar_lea.vmem %s6567_s1, %s5438_s7 }
  0xac   : > { %v867_v14 = vld [vmem:[%s846_s10] sm:$0x1] }
  0xad   : > { %868 = vst [vmem:[#allocation2 + $0xe] sm:$0x1] %v867_v14 }
  0xae   : > { %894 = vsyncadd [#allocation4 + $0xe], 16  ;;  %s5439_s13 = sld [smem:[#allocation6 + $0xf]] }
  0xb4   : > { %s896_s16 = scalar_lea.vmem %s6567_s1, %s5439_s13 }
  0xb5   : > { %v917_v15 = vld [vmem:[%s896_s16] sm:$0x1] }
  0xb6   : > { %918 = vst [vmem:[#allocation2 + $0xf] sm:$0x1] %v917_v15 }
  0xb7   : > { %944 = vsyncadd [#allocation4 + $0xf], 16  ;;  %s5440_s17 = sld [smem:[#allocation6 + $0x10]] }
  0xbd   : > { %s946_s24 = scalar_lea.vmem %s6567_s1, %s5440_s17 }
  0xbe   : > { %v967_v16 = vld [vmem:[%s946_s24] sm:$0x1] }
  0xbf   : > { %968 = vst [vmem:[#allocation2 + $0x10] sm:$0x1] %v967_v16 }
  0xc0   : > { %994 = vsyncadd [#allocation4 + $0x10], 16  ;;  %s5441_s26 = sld [smem:[#allocation6 + $0x11]] }
  0xc6   : > { %s996_s7 = scalar_lea.vmem %s6567_s1, %s5441_s26 }
  0xc7   : > { %v1017_v17 = vld [vmem:[%s996_s7] sm:$0x1] }
  0xc8   : > { %1018 = vst [vmem:[#allocation2 + $0x11] sm:$0x1] %v1017_v17 }
  0xc9   : > { %1044 = vsyncadd [#allocation4 + $0x11], 16  ;;  %s5442_s8 = sld [smem:[#allocation6 + $0x12]] }
  0xcf   : > { %s1046_s13 = scalar_lea.vmem %s6567_s1, %s5442_s8 }
  0xd0   : > { %v1067_v18 = vld [vmem:[%s1046_s13] sm:$0x1] }
  0xd1   : > { %1068 = vst [vmem:[#allocation2 + $0x12] sm:$0x1] %v1067_v18 }
  0xd2   : > { %1094 = vsyncadd [#allocation4 + $0x12], 16  ;;  %s5443_s14 = sld [smem:[#allocation6 + $0x13]] }
  0xd8   : > { %s1096_s17 = scalar_lea.vmem %s6567_s1, %s5443_s14 }
  0xd9   : > { %v1117_v19 = vld [vmem:[%s1096_s17] sm:$0x1] }
  0xda   : > { %1118 = vst [vmem:[#allocation2 + $0x13] sm:$0x1] %v1117_v19 }
  0xdb   : > { %1144 = vsyncadd [#allocation4 + $0x13], 16  ;;  %s5444_s18 = sld [smem:[#allocation6 + $0x14]] }
  0xe1   : > { %s1146_s26 = scalar_lea.vmem %s6567_s1, %s5444_s18 }
  0xe2   : > { %v1167_v20 = vld [vmem:[%s1146_s26] sm:$0x1] }
  0xe3   : > { %1168 = vst [vmem:[#allocation2 + $0x14] sm:$0x1] %v1167_v20 }
  0xe4   : > { %1194 = vsyncadd [#allocation4 + $0x14], 16  ;;  %s5445_s27 = sld [smem:[#allocation6 + $0x15]] }
  0xea   : > { %s1196_s8 = scalar_lea.vmem %s6567_s1, %s5445_s27 }
  0xeb   : > { %v1217_v21 = vld [vmem:[%s1196_s8] sm:$0x1] }
  0xec   : > { %1218 = vst [vmem:[#allocation2 + $0x15] sm:$0x1] %v1217_v21 }
  0xed   : > { %1244 = vsyncadd [#allocation4 + $0x15], 16  ;;  %s5446_s9 = sld [smem:[#allocation6 + $0x16]] }
  0xf3   : > { %s1246_s14 = scalar_lea.vmem %s6567_s1, %s5446_s9 }
  0xf4   : > { %v1267_v22 = vld [vmem:[%s1246_s14] sm:$0x1] }
  0xf5   : > { %1268 = vst [vmem:[#allocation2 + $0x16] sm:$0x1] %v1267_v22 }
  0xf6   : > { %1294 = vsyncadd [#allocation4 + $0x16], 16  ;;  %s5447_s15 = sld [smem:[#allocation6 + $0x17]] }
  0xfc   : > { %s1296_s18 = scalar_lea.vmem %s6567_s1, %s5447_s15 }
  0xfd   : > { %v1317_v23 = vld [vmem:[%s1296_s18] sm:$0x1] }
  0xfe   : > { %1318 = vst [vmem:[#allocation2 + $0x17] sm:$0x1] %v1317_v23 }
  0xff   : > { %1344 = vsyncadd [#allocation4 + $0x17], 16  ;;  %s5448_s19 = sld [smem:[#allocation6 + $0x18]] }
 0x105   : > { %s1346_s27 = scalar_lea.vmem %s6567_s1, %s5448_s19 }
 0x106   : > { %v1367_v24 = vld [vmem:[%s1346_s27] sm:$0x1] }
 0x107   : > { %1368 = vst [vmem:[#allocation2 + $0x18] sm:$0x1] %v1367_v24 }
 0x108   : > { %1394 = vsyncadd [#allocation4 + $0x18], 16  ;;  %s5449_s6 = sld [smem:[#allocation6 + $0x19]] }
 0x10e   : > { %s1396_s9 = scalar_lea.vmem %s6567_s1, %s5449_s6 }
 0x10f   : > { %v1417_v25 = vld [vmem:[%s1396_s9] sm:$0x1] }
 0x110   : > { %1418 = vst [vmem:[#allocation2 + $0x19] sm:$0x1] %v1417_v25 }
 0x111   : > { %1444 = vsyncadd [#allocation4 + $0x19], 16  ;;  %s5450_s10 = sld [smem:[#allocation6 + $0x1a]] }
 0x117   : > { %s1446_s15 = scalar_lea.vmem %s6567_s1, %s5450_s10 }
 0x118   : > { %v1467_v26 = vld [vmem:[%s1446_s15] sm:$0x1] }
 0x119   : > { %1468 = vst [vmem:[#allocation2 + $0x1a] sm:$0x1] %v1467_v26 }
 0x11a   : > { %1494 = vsyncadd [#allocation4 + $0x1a], 16  ;;  %s5451_s16 = sld [smem:[#allocation6 + $0x1b]] }
 0x120   : > { %s1496_s19 = scalar_lea.vmem %s6567_s1, %s5451_s16 }
 0x121   : > { %v1517_v27 = vld [vmem:[%s1496_s19] sm:$0x1] }
 0x122   : > { %1518 = vst [vmem:[#allocation2 + $0x1b] sm:$0x1] %v1517_v27 }
 0x123   : > { %1544 = vsyncadd [#allocation4 + $0x1b], 16  ;;  %s5452_s24 = sld [smem:[#allocation6 + $0x1c]] }
 0x129   : > { %s1546_s6 = scalar_lea.vmem %s6567_s1, %s5452_s24 }
 0x12a   : > { %v1567_v28 = vld [vmem:[%s1546_s6] sm:$0x1] }
 0x12b   : > { %1568 = vst [vmem:[#allocation2 + $0x1c] sm:$0x1] %v1567_v28 }
 0x12c   : > { %1594 = vsyncadd [#allocation4 + $0x1c], 16  ;;  %s5453_s7 = sld [smem:[#allocation6 + $0x1d]] }
 0x132   : > { %s1596_s10 = scalar_lea.vmem %s6567_s1, %s5453_s7 }
 0x133   : > { %v1617_v29 = vld [vmem:[%s1596_s10] sm:$0x1] }
 0x134   : > { %1618 = vst [vmem:[#allocation2 + $0x1d] sm:$0x1] %v1617_v29 }
 0x135   : > { %1644 = vsyncadd [#allocation4 + $0x1d], 16  ;;  %s5454_s13 = sld [smem:[#allocation6 + $0x1e]] }
 0x13b   : > { %s1646_s16 = scalar_lea.vmem %s6567_s1, %s5454_s13 }
 0x13c   : > { %v1667_v30 = vld [vmem:[%s1646_s16] sm:$0x1] }
 0x13d   : > { %1668 = vst [vmem:[#allocation2 + $0x1e] sm:$0x1] %v1667_v30 }
 0x13e   : > { %1694 = vsyncadd [#allocation4 + $0x1e], 16  ;;  %s5455_s17 = sld [smem:[#allocation6 + $0x1f]] }
 0x144   : > { %s1696_s24 = scalar_lea.vmem %s6567_s1, %s5455_s17 }
 0x145   : > { %v1717_v31 = vld [vmem:[%s1696_s24] sm:$0x1] }
 0x146   : > { %1718 = vst [vmem:[#allocation2 + $0x1f] sm:$0x1] %v1717_v31 }
 0x147   : > { %1744 = vsyncadd [#allocation4 + $0x1f], 16 }
 0x148 PF: > { %s1745_s26 = sadd.s32 1, %s5942_s23 }
 0x149   : > { %p5456_p4 = scmp.ge.s32.totalorder %s1745_s26, 2 }
 0x14a   : > { %s1750_s27 = ssub.s32 (!%p5456_p4), 1, %s6579_s11  ;;  %s5689_s6 = sshll.u32 (!%p5456_p4), %s5942_s23, 5 }
 0x14b   : > { %1749 = sbr.rel (%p5456_p4) target bundleno = 653 (0x28d), region = 996  ;;  %s6079_s7 = sadd.s32 (!%p5456_p4), 32, %s5689_s6 }
 0x14c   : > { %s5458_s8 = sshll.u32 (!%p5456_p4), %s1750_s27, 5  ;;  %s1752_s9 = sld [smem:[#allocation6 + %s6079_s7]] (!%p5456_p4) }
 0x14d   : > { %s6568_s1 = sld [smem:[#allocation109_spill]] (!%p5456_p4)  ;;  %s6085_s15 = scalar_lea.vmem (!%p5456_p4), [#allocation2], %s5458_s8 }
 0x14e   : > { %s6088_s16 = scalar_lea.sflag (!%p5456_p4), [#allocation4], %s5458_s8 }
 0x153   : > { %s1753_s14 = scalar_lea.vmem %s6568_s1, %s1752_s9 }
 0x154   : > { %v1775_v32 = vld [vmem:[%s1753_s14] sm:$0x1] }
 0x155   : > { %1776 = vst [vmem:[%s6085_s15] sm:$0x1] %v1775_v32 }
 0x156   : > { %1802 = vsyncadd %s6088_s16, 16  ;;  %s1803_s17 = sadd.s32 1, %s6079_s7  ;;  %s4449_s18 = scalar_lea.sflag %s6088_s16, 1 [#allocation4] }
 0x157   : > { %s1804_s19 = sld [smem:[#allocation6 + %s1803_s17]] }
 0x15d   : > { %s1805_s27 = scalar_lea.vmem %s6568_s1, %s1804_s19 }
 0x15e   : > { %v1827_v33 = vld [vmem:[%s1805_s27] sm:$0x1] }
 0x15f   : > { %5462 = vst [vmem:[%s6085_s15 + $0x1] sm:$0x1] %v1827_v33 }
 0x160   : > { %1854 = vsyncadd %s4449_s18, 16  ;;  %s1855_s6 = sadd.s32 2, %s6079_s7  ;;  %s4459_s8 = scalar_lea.sflag %s6088_s16, 2 [#allocation4] }
 0x161   : > { %s1856_s9 = sld [smem:[#allocation6 + %s1855_s6]] }
 0x167   : > { %s1857_s14 = scalar_lea.vmem %s6568_s1, %s1856_s9 }
 0x168   : > { %v1879_v34 = vld [vmem:[%s1857_s14] sm:$0x1] }
 0x169   : > { %5466 = vst [vmem:[%s6085_s15 + $0x2] sm:$0x1] %v1879_v34 }
 0x16a   : > { %1906 = vsyncadd %s4459_s8, 16  ;;  %s1907_s17 = sadd.s32 3, %s6079_s7  ;;  %s4469_s19 = scalar_lea.sflag %s6088_s16, 3 [#allocation4] }
 0x16b   : > { %s1908_s24 = sld [smem:[#allocation6 + %s1907_s17]] }
 0x171   : > { %s1909_s27 = scalar_lea.vmem %s6568_s1, %s1908_s24 }
 0x172   : > { %v1931_v35 = vld [vmem:[%s1909_s27] sm:$0x1] }
 0x173   : > { %5470 = vst [vmem:[%s6085_s15 + $0x3] sm:$0x1] %v1931_v35 }
 0x174   : > { %1958 = vsyncadd %s4469_s19, 16  ;;  %s1959_s6 = sadd.s32 4, %s6079_s7  ;;  %s4479_s9 = scalar_lea.sflag %s6088_s16, 4 [#allocation4] }
 0x175   : > { %s1960_s10 = sld [smem:[#allocation6 + %s1959_s6]] }
 0x17b   : > { %s1961_s14 = scalar_lea.vmem %s6568_s1, %s1960_s10 }
 0x17c   : > { %v1983_v36 = vld [vmem:[%s1961_s14] sm:$0x1] }
 0x17d   : > { %5474 = vst [vmem:[%s6085_s15 + $0x4] sm:$0x1] %v1983_v36 }
 0x17e   : > { %2010 = vsyncadd %s4479_s9, 16  ;;  %s2011_s17 = sadd.s32 5, %s6079_s7  ;;  %s4489_s24 = scalar_lea.sflag %s6088_s16, 5 [#allocation4] }
 0x17f   : > { %s2012_s18 = sld [smem:[#allocation6 + %s2011_s17]] }
 0x185   : > { %s2013_s27 = scalar_lea.vmem %s6568_s1, %s2012_s18 }
 0x186   : > { %v2035_v37 = vld [vmem:[%s2013_s27] sm:$0x1] }
 0x187   : > { %5478 = vst [vmem:[%s6085_s15 + $0x5] sm:$0x1] %v2035_v37 }
 0x188   : > { %2062 = vsyncadd %s4489_s24, 16  ;;  %s2063_s6 = sadd.s32 6, %s6079_s7  ;;  %s4499_s10 = scalar_lea.sflag %s6088_s16, 6 [#allocation4] }
 0x189   : > { %s2064_s8 = sld [smem:[#allocation6 + %s2063_s6]] }
 0x18f   : > { %s2065_s14 = scalar_lea.vmem %s6568_s1, %s2064_s8 }
 0x190   : > { %v2087_v38 = vld [vmem:[%s2065_s14] sm:$0x1] }
 0x191   : > { %5482 = vst [vmem:[%s6085_s15 + $0x6] sm:$0x1] %v2087_v38 }
 0x192   : > { %2114 = vsyncadd %s4499_s10, 16  ;;  %s2115_s17 = sadd.s32 7, %s6079_s7  ;;  %s4509_s18 = scalar_lea.sflag %s6088_s16, 7 [#allocation4] }
 0x193   : > { %s2116_s19 = sld [smem:[#allocation6 + %s2115_s17]] }
 0x199   : > { %s2117_s27 = scalar_lea.vmem %s6568_s1, %s2116_s19 }
 0x19a   : > { %v2139_v39 = vld [vmem:[%s2117_s27] sm:$0x1] }
 0x19b   : > { %5486 = vst [vmem:[%s6085_s15 + $0x7] sm:$0x1] %v2139_v39 }
 0x19c   : > { %2166 = vsyncadd %s4509_s18, 16  ;;  %s2167_s6 = sadd.s32 8, %s6079_s7  ;;  %s4519_s8 = scalar_lea.sflag %s6088_s16, 8 [#allocation4] }
 0x19d   : > { %s2168_s9 = sld [smem:[#allocation6 + %s2167_s6]] }
 0x1a3   : > { %s2169_s14 = scalar_lea.vmem %s6568_s1, %s2168_s9 }
 0x1a4   : > { %v2191_v40 = vld [vmem:[%s2169_s14] sm:$0x1] }
 0x1a5   : > { %5490 = vst [vmem:[%s6085_s15 + $0x8] sm:$0x1] %v2191_v40 }
 0x1a6   : > { %2218 = vsyncadd %s4519_s8, 16  ;;  %s2219_s17 = sadd.s32 9, %s6079_s7  ;;  %s4529_s19 = scalar_lea.sflag %s6088_s16, 9 [#allocation4] }
 0x1a7   : > { %s2220_s24 = sld [smem:[#allocation6 + %s2219_s17]] }
 0x1ad   : > { %s2221_s27 = scalar_lea.vmem %s6568_s1, %s2220_s24 }
 0x1ae   : > { %v2243_v41 = vld [vmem:[%s2221_s27] sm:$0x1] }
 0x1af   : > { %5494 = vst [vmem:[%s6085_s15 + $0x9] sm:$0x1] %v2243_v41 }
 0x1b0   : > { %2270 = vsyncadd %s4529_s19, 16  ;;  %s2271_s6 = sadd.s32 10, %s6079_s7  ;;  %s4539_s9 = scalar_lea.sflag %s6088_s16, 10 [#allocation4] }
 0x1b1   : > { %s2272_s10 = sld [smem:[#allocation6 + %s2271_s6]] }
 0x1b7   : > { %s2273_s14 = scalar_lea.vmem %s6568_s1, %s2272_s10 }
 0x1b8   : > { %v2295_v42 = vld [vmem:[%s2273_s14] sm:$0x1] }
 0x1b9   : > { %5498 = vst [vmem:[%s6085_s15 + $0xa] sm:$0x1] %v2295_v42 }
 0x1ba   : > { %2322 = vsyncadd %s4539_s9, 16  ;;  %s2323_s17 = sadd.s32 11, %s6079_s7  ;;  %s4549_s24 = scalar_lea.sflag %s6088_s16, 11 [#allocation4] }
 0x1bb   : > { %s2324_s18 = sld [smem:[#allocation6 + %s2323_s17]] }
 0x1c1   : > { %s2325_s27 = scalar_lea.vmem %s6568_s1, %s2324_s18 }
 0x1c2   : > { %v2347_v43 = vld [vmem:[%s2325_s27] sm:$0x1] }
 0x1c3   : > { %5502 = vst [vmem:[%s6085_s15 + $0xb] sm:$0x1] %v2347_v43 }
 0x1c4   : > { %2374 = vsyncadd %s4549_s24, 16  ;;  %s2375_s6 = sadd.s32 12, %s6079_s7  ;;  %s4559_s10 = scalar_lea.sflag %s6088_s16, 12 [#allocation4] }
 0x1c5   : > { %s2376_s8 = sld [smem:[#allocation6 + %s2375_s6]] }
 0x1cb   : > { %s2377_s14 = scalar_lea.vmem %s6568_s1, %s2376_s8 }
 0x1cc   : > { %v2399_v44 = vld [vmem:[%s2377_s14] sm:$0x1] }
 0x1cd   : > { %5506 = vst [vmem:[%s6085_s15 + $0xc] sm:$0x1] %v2399_v44 }
 0x1ce   : > { %2426 = vsyncadd %s4559_s10, 16  ;;  %s2427_s17 = sadd.s32 13, %s6079_s7  ;;  %s4569_s18 = scalar_lea.sflag %s6088_s16, 13 [#allocation4] }
 0x1cf   : > { %s2428_s19 = sld [smem:[#allocation6 + %s2427_s17]] }
 0x1d5   : > { %s2429_s27 = scalar_lea.vmem %s6568_s1, %s2428_s19 }
 0x1d6   : > { %v2451_v45 = vld [vmem:[%s2429_s27] sm:$0x1] }
 0x1d7   : > { %5510 = vst [vmem:[%s6085_s15 + $0xd] sm:$0x1] %v2451_v45 }
 0x1d8   : > { %2478 = vsyncadd %s4569_s18, 16  ;;  %s2479_s6 = sadd.s32 14, %s6079_s7  ;;  %s4579_s8 = scalar_lea.sflag %s6088_s16, 14 [#allocation4] }
 0x1d9   : > { %s2480_s9 = sld [smem:[#allocation6 + %s2479_s6]] }
 0x1df   : > { %s2481_s14 = scalar_lea.vmem %s6568_s1, %s2480_s9 }
 0x1e0   : > { %v2503_v46 = vld [vmem:[%s2481_s14] sm:$0x1] }
 0x1e1   : > { %5514 = vst [vmem:[%s6085_s15 + $0xe] sm:$0x1] %v2503_v46 }
 0x1e2   : > { %2530 = vsyncadd %s4579_s8, 16  ;;  %s2531_s17 = sadd.s32 15, %s6079_s7  ;;  %s4589_s19 = scalar_lea.sflag %s6088_s16, 15 [#allocation4] }
 0x1e3   : > { %s2532_s24 = sld [smem:[#allocation6 + %s2531_s17]] }
 0x1e9   : > { %s2533_s27 = scalar_lea.vmem %s6568_s1, %s2532_s24 }
 0x1ea   : > { %v2555_v47 = vld [vmem:[%s2533_s27] sm:$0x1] }
 0x1eb   : > { %5518 = vst [vmem:[%s6085_s15 + $0xf] sm:$0x1] %v2555_v47 }
 0x1ec   : > { %2582 = vsyncadd %s4589_s19, 16  ;;  %s2583_s6 = sadd.s32 16, %s6079_s7  ;;  %s4599_s9 = scalar_lea.sflag %s6088_s16, 16 [#allocation4] }
 0x1ed   : > { %s2584_s10 = sld [smem:[#allocation6 + %s2583_s6]] }
 0x1f3   : > { %s2585_s14 = scalar_lea.vmem %s6568_s1, %s2584_s10 }
 0x1f4   : > { %v2607_v48 = vld [vmem:[%s2585_s14] sm:$0x1] }
 0x1f5   : > { %5522 = vst [vmem:[%s6085_s15 + $0x10] sm:$0x1] %v2607_v48 }
 0x1f6   : > { %2634 = vsyncadd %s4599_s9, 16  ;;  %s2635_s17 = sadd.s32 17, %s6079_s7  ;;  %s4609_s24 = scalar_lea.sflag %s6088_s16, 17 [#allocation4] }
 0x1f7   : > { %s2636_s18 = sld [smem:[#allocation6 + %s2635_s17]] }
 0x1fd   : > { %s2637_s27 = scalar_lea.vmem %s6568_s1, %s2636_s18 }
 0x1fe   : > { %v2659_v49 = vld [vmem:[%s2637_s27] sm:$0x1] }
 0x1ff   : > { %5526 = vst [vmem:[%s6085_s15 + $0x11] sm:$0x1] %v2659_v49 }
 0x200   : > { %2686 = vsyncadd %s4609_s24, 16  ;;  %s2687_s6 = sadd.s32 18, %s6079_s7  ;;  %s4619_s10 = scalar_lea.sflag %s6088_s16, 18 [#allocation4] }
 0x201   : > { %s2688_s8 = sld [smem:[#allocation6 + %s2687_s6]] }
 0x207   : > { %s2689_s14 = scalar_lea.vmem %s6568_s1, %s2688_s8 }
 0x208   : > { %v2711_v50 = vld [vmem:[%s2689_s14] sm:$0x1] }
 0x209   : > { %5530 = vst [vmem:[%s6085_s15 + $0x12] sm:$0x1] %v2711_v50 }
 0x20a   : > { %2738 = vsyncadd %s4619_s10, 16  ;;  %s2739_s17 = sadd.s32 19, %s6079_s7  ;;  %s4629_s18 = scalar_lea.sflag %s6088_s16, 19 [#allocation4] }
 0x20b   : > { %s2740_s19 = sld [smem:[#allocation6 + %s2739_s17]] }
 0x211   : > { %s2741_s27 = scalar_lea.vmem %s6568_s1, %s2740_s19 }
 0x212   : > { %v2763_v51 = vld [vmem:[%s2741_s27] sm:$0x1] }
 0x213   : > { %5534 = vst [vmem:[%s6085_s15 + $0x13] sm:$0x1] %v2763_v51 }
 0x214   : > { %2790 = vsyncadd %s4629_s18, 16  ;;  %s2791_s6 = sadd.s32 20, %s6079_s7  ;;  %s4639_s8 = scalar_lea.sflag %s6088_s16, 20 [#allocation4] }
 0x215   : > { %s2792_s9 = sld [smem:[#allocation6 + %s2791_s6]] }
 0x21b   : > { %s2793_s14 = scalar_lea.vmem %s6568_s1, %s2792_s9 }
 0x21c   : > { %v2815_v52 = vld [vmem:[%s2793_s14] sm:$0x1] }
 0x21d   : > { %5538 = vst [vmem:[%s6085_s15 + $0x14] sm:$0x1] %v2815_v52 }
 0x21e   : > { %2842 = vsyncadd %s4639_s8, 16  ;;  %s2843_s17 = sadd.s32 21, %s6079_s7  ;;  %s4649_s19 = scalar_lea.sflag %s6088_s16, 21 [#allocation4] }
 0x21f   : > { %s2844_s24 = sld [smem:[#allocation6 + %s2843_s17]] }
 0x225   : > { %s2845_s27 = scalar_lea.vmem %s6568_s1, %s2844_s24 }
 0x226   : > { %v2867_v53 = vld [vmem:[%s2845_s27] sm:$0x1] }
 0x227   : > { %5542 = vst [vmem:[%s6085_s15 + $0x15] sm:$0x1] %v2867_v53 }
 0x228   : > { %2894 = vsyncadd %s4649_s19, 16  ;;  %s2895_s6 = sadd.s32 22, %s6079_s7  ;;  %s4659_s9 = scalar_lea.sflag %s6088_s16, 22 [#allocation4] }
 0x229   : > { %s2896_s10 = sld [smem:[#allocation6 + %s2895_s6]] }
 0x22f   : > { %s2897_s14 = scalar_lea.vmem %s6568_s1, %s2896_s10 }
 0x230   : > { %v2919_v54 = vld [vmem:[%s2897_s14] sm:$0x1] }
 0x231   : > { %5546 = vst [vmem:[%s6085_s15 + $0x16] sm:$0x1] %v2919_v54 }
 0x232   : > { %2946 = vsyncadd %s4659_s9, 16  ;;  %s2947_s17 = sadd.s32 23, %s6079_s7  ;;  %s4669_s24 = scalar_lea.sflag %s6088_s16, 23 [#allocation4] }
 0x233   : > { %s2948_s18 = sld [smem:[#allocation6 + %s2947_s17]] }
 0x239   : > { %s2949_s27 = scalar_lea.vmem %s6568_s1, %s2948_s18 }
 0x23a   : > { %v2971_v55 = vld [vmem:[%s2949_s27] sm:$0x1] }
 0x23b   : > { %5550 = vst [vmem:[%s6085_s15 + $0x17] sm:$0x1] %v2971_v55 }
 0x23c   : > { %2998 = vsyncadd %s4669_s24, 16  ;;  %s2999_s6 = sadd.s32 24, %s6079_s7  ;;  %s4679_s10 = scalar_lea.sflag %s6088_s16, 24 [#allocation4] }
 0x23d   : > { %s3000_s8 = sld [smem:[#allocation6 + %s2999_s6]] }
 0x243   : > { %s3001_s14 = scalar_lea.vmem %s6568_s1, %s3000_s8 }
 0x244   : > { %v3023_v56 = vld [vmem:[%s3001_s14] sm:$0x1] }
 0x245   : > { %5554 = vst [vmem:[%s6085_s15 + $0x18] sm:$0x1] %v3023_v56 }
 0x246   : > { %3050 = vsyncadd %s4679_s10, 16  ;;  %s3051_s17 = sadd.s32 25, %s6079_s7  ;;  %s4689_s18 = scalar_lea.sflag %s6088_s16, 25 [#allocation4] }
 0x247   : > { %s3052_s19 = sld [smem:[#allocation6 + %s3051_s17]] }
 0x24d   : > { %s3053_s27 = scalar_lea.vmem %s6568_s1, %s3052_s19 }
 0x24e   : > { %v3075_v57 = vld [vmem:[%s3053_s27] sm:$0x1] }
 0x24f   : > { %5558 = vst [vmem:[%s6085_s15 + $0x19] sm:$0x1] %v3075_v57 }
 0x250   : > { %3102 = vsyncadd %s4689_s18, 16  ;;  %s3103_s6 = sadd.s32 26, %s6079_s7  ;;  %s4699_s8 = scalar_lea.sflag %s6088_s16, 26 [#allocation4] }
 0x251   : > { %s3104_s9 = sld [smem:[#allocation6 + %s3103_s6]] }
 0x257   : > { %s3105_s14 = scalar_lea.vmem %s6568_s1, %s3104_s9 }
 0x258   : > { %v3127_v58 = vld [vmem:[%s3105_s14] sm:$0x1] }
 0x259   : > { %5562 = vst [vmem:[%s6085_s15 + $0x1a] sm:$0x1] %v3127_v58 }
 0x25a   : > { %3154 = vsyncadd %s4699_s8, 16  ;;  %s3155_s17 = sadd.s32 27, %s6079_s7  ;;  %s4709_s19 = scalar_lea.sflag %s6088_s16, 27 [#allocation4] }
 0x25b   : > { %s3156_s24 = sld [smem:[#allocation6 + %s3155_s17]] }
 0x261   : > { %s3157_s27 = scalar_lea.vmem %s6568_s1, %s3156_s24 }
 0x262   : > { %v3179_v59 = vld [vmem:[%s3157_s27] sm:$0x1] }
 0x263   : > { %5566 = vst [vmem:[%s6085_s15 + $0x1b] sm:$0x1] %v3179_v59 }
 0x264   : > { %3206 = vsyncadd %s4709_s19, 16  ;;  %s3207_s6 = sadd.s32 28, %s6079_s7  ;;  %s4719_s9 = scalar_lea.sflag %s6088_s16, 28 [#allocation4] }
 0x265   : > { %s3208_s10 = sld [smem:[#allocation6 + %s3207_s6]] }
 0x26b   : > { %s3209_s14 = scalar_lea.vmem %s6568_s1, %s3208_s10 }
 0x26c   : > { %v3231_v60 = vld [vmem:[%s3209_s14] sm:$0x1] }
 0x26d   : > { %5570 = vst [vmem:[%s6085_s15 + $0x1c] sm:$0x1] %v3231_v60 }
 0x26e   : > { %3258 = vsyncadd %s4719_s9, 16  ;;  %s3259_s17 = sadd.s32 29, %s6079_s7  ;;  %s4729_s24 = scalar_lea.sflag %s6088_s16, 29 [#allocation4] }
 0x26f   : > { %s3260_s18 = sld [smem:[#allocation6 + %s3259_s17]] }
 0x275   : > { %s3261_s27 = scalar_lea.vmem %s6568_s1, %s3260_s18 }
 0x276   : > { %v3283_v61 = vld [vmem:[%s3261_s27] sm:$0x1] }
 0x277   : > { %5574 = vst [vmem:[%s6085_s15 + $0x1d] sm:$0x1] %v3283_v61 }
 0x278   : > { %3310 = vsyncadd %s4729_s24, 16  ;;  %s3311_s6 = sadd.s32 30, %s6079_s7  ;;  %s4739_s10 = scalar_lea.sflag %s6088_s16, 30 [#allocation4] }
 0x279   : > { %s3312_s8 = sld [smem:[#allocation6 + %s3311_s6]] }
 0x27f   : > { %s3313_s14 = scalar_lea.vmem %s6568_s1, %s3312_s8 }
 0x280   : > { %v3335_v62 = vld [vmem:[%s3313_s14] sm:$0x1] }
 0x281   : > { %5578 = vst [vmem:[%s6085_s15 + $0x1e] sm:$0x1] %v3335_v62 }
 0x282   : > { %3362 = vsyncadd %s4739_s10, 16  ;;  %s3363_s17 = sadd.s32 31, %s6079_s7  ;;  %s4749_s18 = scalar_lea.sflag %s6088_s16, 31 [#allocation4] }
 0x283   : > { %s3364_s19 = sld [smem:[#allocation6 + %s3363_s17]] }
 0x289   : > { %s3365_s27 = scalar_lea.vmem %s6568_s1, %s3364_s19 }
 0x28a   : > { %v3387_v63 = vld [vmem:[%s3365_s27] sm:$0x1] }
 0x28b   : > { %5582 = vst [vmem:[%s6085_s15 + $0x1f] sm:$0x1] %v3387_v63 }
 0x28c   : > { %3414 = vsyncadd %s4749_s18, 16 }
 0x28d PF: > { %s6569_s3 = sld [smem:[#allocation110_spill]]  ;;  %s6281_s10 = sshll.u32 %s5942_s23, 5  ;;  %vm3419_vm0 = vcmask 57344   ;;  %vm3581_vm1 = vcmask 64512  }
 0x28e   : > { %s3416_s7 = sld [smem:[#allocation6 + %s6281_s10]]  ;;  %s3421_s15 = sadd.s32 1, %s6281_s10 }
 0x28f   : > { %s3422_s16 = sld [smem:[#allocation6 + %s3421_s15]]  ;;  %s3426_s8 = sadd.s32 2, %s6281_s10 }
 0x290   : > { %s3427_s13 = sld [smem:[#allocation6 + %s3426_s8]]  ;;  %s3431_s14 = sadd.s32 3, %s6281_s10 }
 0x291   : > { %s3432_s17 = sld [smem:[#allocation6 + %s3431_s14]]  ;;  %s3436_s18 = sadd.s32 4, %s6281_s10 }
 0x292   : > { %s3437_s19 = sld [smem:[#allocation6 + %s3436_s18]]  ;;  %s3441_s24 = sadd.s32 5, %s6281_s10 }
 0x293   : > { %v3580_v0 = vld [vmem:[%s6569_s3] sm:$0xff]  ;;  %s3442_s26 = sld [smem:[#allocation6 + %s3441_s24]]  ;;  %s3446_s27 = sadd.s32 6, %s6281_s10 }
 0x294   : > { %5697 = vmatprep.subr.mxu0 %v3580_v0  ;;  %5705 = vmatprep.subr.mxu1 %v3580_v0  ;;  %s3417_s5 = scalar_lea.vmem %s6556_s2, %s3416_s7  ;;  %s3447_s1 = sld [smem:[#allocation6 + %s3446_s27]] }
 0x295   : > { %5698 = vmatpush3.msra.mxu0 %v3580_v0  ;;  %5706 = vmatpush3.msra.mxu1 %v3580_v0  ;;  %v3418_v1 = vld [vmem:[%s3417_s5] sm:$0x1]  ;;  %s3423_s15 = scalar_lea.vmem %s6556_s2, %s3422_s16  ;;  %s3451_s8 = sadd.s32 7, %s6281_s10 }
 0x296   : > { %3420 = vst.msk [vmem:[#allocation3] sm:$0x1] %vm3419_vm0, %v3418_v1  ;;  %v3424_v2 = vld [vmem:[%s3423_s15] sm:$0x1]  ;;  %s3428_s24 = scalar_lea.vmem %s6556_s2, %s3427_s13  ;;  %s3452_s0 = sld [smem:[#allocation6 + %s3451_s8]] }
 0x297   : > { %3425 = vst.msk [vmem:[#allocation3 + $0x1] sm:$0x1] %vm3419_vm0, %v3424_v2  ;;  %v3429_v3 = vld [vmem:[%s3428_s24] sm:$0x1]  ;;  %s3433_s5 = scalar_lea.vmem %s6556_s2, %s3432_s17  ;;  %s3496_s3 = sadd.s32 16, %s6281_s10 }
 0x298   : > { %3430 = vst.msk [vmem:[#allocation3 + $0x2] sm:$0x1] %vm3419_vm0, %v3429_v3  ;;  %v3434_v4 = vld [vmem:[%s3433_s5] sm:$0x1]  ;;  %s3438_s6 = scalar_lea.vmem %s6556_s2, %s3437_s19  ;;  %s3497_s9 = sld [smem:[#allocation6 + %s3496_s3]] }
 0x299   : > { %3435 = vst.msk [vmem:[#allocation3 + $0x3] sm:$0x1] %vm3419_vm0, %v3434_v4  ;;  %v3439_v5 = vld [vmem:[%s3438_s6] sm:$0x1]  ;;  %s3443_s8 = scalar_lea.vmem %s6556_s2, %s3442_s26  ;;  %s3501_s17 = sadd.s32 17, %s6281_s10 }
 0x29a   : > { %3440 = vst.msk [vmem:[#allocation3 + $0x4] sm:$0x1] %vm3419_vm0, %v3439_v5  ;;  %v3444_v6 = vld [vmem:[%s3443_s8] sm:$0x1]  ;;  %s3448_s24 = scalar_lea.vmem %s6556_s2, %s3447_s1  ;;  %s3502_s7 = sld [smem:[#allocation6 + %s3501_s17]] }
 0x29b   : > { %3445 = vst.msk [vmem:[#allocation3 + $0x5] sm:$0x1] %vm3419_vm0, %v3444_v6  ;;  %v3449_v7 = vld [vmem:[%s3448_s24] sm:$0x1]  ;;  %s3506_s19 = sadd.s32 18, %s6281_s10  ;;  %s3511_s27 = sadd.s32 19, %s6281_s10 }
 0x29c   : > { %3450 = vst.msk [vmem:[#allocation3 + $0x6] sm:$0x1] %vm3419_vm0, %v3449_v7  ;;  %s3453_s3 = scalar_lea.vmem %s6556_s2, %s3452_s0  ;;  %s3507_s28 = sld [smem:[#allocation6 + %s3506_s19]] }
 0x29d   : > { %v3454_v8 = vld [vmem:[%s3453_s3] sm:$0x1]  ;;  %s3512_s16 = sld [smem:[#allocation6 + %s3511_s27]]  ;;  %s3516_s6 = sadd.s32 20, %s6281_s10 }
 0x29e   : > { %3455 = vst.msk [vmem:[#allocation3 + $0x7] sm:$0x1] %vm3419_vm0, %v3454_v8  ;;  %s3498_s15 = scalar_lea.vmem %s6556_s2, %s3497_s9  ;;  %s3517_s8 = sld [smem:[#allocation6 + %s3516_s6]] }
 0x29f   : > { %v3499_v9 = vld [vmem:[%s3498_s15] sm:$0x1]  ;;  %s3521_s17 = sadd.s32 21, %s6281_s10  ;;  %s3526_s14 = sadd.s32 22, %s6281_s10 }
 0x2a0   : > { %3500 = vst.msk [vmem:[#allocation3 + $0x10] sm:$0x1] %vm3419_vm0, %v3499_v9  ;;  %s3503_s24 = scalar_lea.vmem %s6556_s2, %s3502_s7  ;;  %s3522_s19 = sld [smem:[#allocation6 + %s3521_s17]] }
 0x2a1   : > { %v3504_v10 = vld [vmem:[%s3503_s24] sm:$0x1]  ;;  %s3527_s27 = sld [smem:[#allocation6 + %s3526_s14]]  ;;  %s3531_s5 = sadd.s32 23, %s6281_s10 }
 0x2a2   : > { %3505 = vst.msk [vmem:[#allocation3 + $0x11] sm:$0x1] %vm3419_vm0, %v3504_v10  ;;  %s3508_s3 = scalar_lea.vmem %s6556_s2, %s3507_s28  ;;  %s3532_s6 = sld [smem:[#allocation6 + %s3531_s5]] }
 0x2a3   : > { %v3509_v11 = vld [vmem:[%s3508_s3] sm:$0x1]  ;;  %s3513_s15 = scalar_lea.vmem %s6556_s2, %s3512_s16  ;;  %s3456_s7 = sadd.s32 8, %s6281_s10 }
 0x2a4   : > { %3510 = vst.msk [vmem:[#allocation3 + $0x12] sm:$0x1] %vm3419_vm0, %v3509_v11  ;;  %v3514_v12 = vld [vmem:[%s3513_s15] sm:$0x1]  ;;  %s3518_s18 = scalar_lea.vmem %s6556_s2, %s3517_s8  ;;  %s3457_s0 = sld [smem:[#allocation6 + %s3456_s7]] }
 0x2a5   : > { %v3576_v13 = vld [vmem:[#allocation3] sm:$0xff]  ;;  %3515 = vst.msk [vmem:[#allocation3 + $0x13] sm:$0x1] %vm3419_vm0, %v3514_v12  ;;  %s3461_s28 = sadd.s32 9, %s6281_s10  ;;  %s3466_s24 = sadd.s32 10, %s6281_s10 }
 0x2a6   : > { %v3519_v14 = vld [vmem:[%s3518_s18] sm:$0x1]  ;;  %5699 = vmatprep.mubr.msk.f32.mxu0 %vm3581_vm1, %v3576_v13  ;;  %s3523_s9 = scalar_lea.vmem %s6556_s2, %s3522_s19  ;;  %s3462_s26 = sld [smem:[#allocation6 + %s3461_s28]] }
 0x2a7   : > { %3520 = vst.msk [vmem:[#allocation3 + $0x14] sm:$0x1] %vm3419_vm0, %v3519_v14  ;;  %v3524_v15 = vld [vmem:[%s3523_s9] sm:$0x1]  ;;  %s3528_s1 = scalar_lea.vmem %s6556_s2, %s3527_s27  ;;  %s3467_s13 = sld [smem:[#allocation6 + %s3466_s24]] }
 0x2a8   : > { %3525 = vst.msk [vmem:[#allocation3 + $0x15] sm:$0x1] %vm3419_vm0, %v3524_v15  ;;  %v3529_v16 = vld [vmem:[%s3528_s1] sm:$0x1]  ;;  %s3533_s17 = scalar_lea.vmem %s6556_s2, %s3532_s6  ;;  %s3471_s14 = sadd.s32 11, %s6281_s10 }
 0x2a9   : > { %3530 = vst.msk [vmem:[#allocation3 + $0x16] sm:$0x1] %vm3419_vm0, %v3529_v16  ;;  %v3534_v17 = vld [vmem:[%s3533_s17] sm:$0x1]  ;;  %s3472_s19 = sld [smem:[#allocation6 + %s3471_s14]]  ;;  %s3476_s18 = sadd.s32 12, %s6281_s10 }
 0x2aa   : > { %3535 = vst.msk [vmem:[#allocation3 + $0x17] sm:$0x1] %vm3419_vm0, %v3534_v17  ;;  %s3458_s24 = scalar_lea.vmem %s6556_s2, %s3457_s0  ;;  %s3477_s16 = sld [smem:[#allocation6 + %s3476_s18]] }
 0x2ab   : > { %v3459_v18 = vld [vmem:[%s3458_s24] sm:$0x1]  ;;  %s3481_s5 = sadd.s32 13, %s6281_s10  ;;  %s3486_s9 = sadd.s32 14, %s6281_s10 }
 0x2ac   : > { %3460 = vst.msk [vmem:[#allocation3 + $0x8] sm:$0x1] %vm3419_vm0, %v3459_v18  ;;  %s3463_s3 = scalar_lea.vmem %s6556_s2, %s3462_s26  ;;  %s3482_s1 = sld [smem:[#allocation6 + %s3481_s5]] }
 0x2ad   : > { %v3464_v19 = vld [vmem:[%s3463_s3] sm:$0x1]  ;;  %s3468_s17 = scalar_lea.vmem %s6556_s2, %s3467_s13  ;;  %s3487_s14 = sld [smem:[#allocation6 + %s3486_s9]] }
 0x2ae   : > { %3465 = vst.msk [vmem:[#allocation3 + $0x9] sm:$0x1] %vm3419_vm0, %v3464_v19  ;;  %v3469_v20 = vld [vmem:[%s3468_s17] sm:$0x1]  ;;  %s3491_s0 = sadd.s32 15, %s6281_s10  ;;  %s3536_s18 = sadd.s32 24, %s6281_s10 }
 0x2af   : > { %3470 = vst.msk [vmem:[#allocation3 + $0xa] sm:$0x1] %vm3419_vm0, %v3469_v20  ;;  %s3473_s26 = scalar_lea.vmem %s6556_s2, %s3472_s19  ;;  %s3492_s24 = sld [smem:[#allocation6 + %s3491_s0]] }
 0x2b0   : > { %v3474_v21 = vld [vmem:[%s3473_s26] sm:$0x1]  ;;  %s3478_s8 = scalar_lea.vmem %s6556_s2, %s3477_s16  ;;  %s3537_s13 = sld [smem:[#allocation6 + %s3536_s18]] }
 0x2b1   : > { %v3578_v22 = vld [vmem:[#allocation3 + $0x10] sm:$0xff]  ;;  %3475 = vst.msk [vmem:[#allocation3 + $0xb] sm:$0x1] %vm3419_vm0, %v3474_v21  ;;  %v3479_v23 = vld [vmem:[%s3478_s8] sm:$0x1]  ;;  %s3541_s9 = sadd.s32 25, %s6281_s10 }
 0x2b2   : > { %s3546_s3 = sadd.s32 26, %s6281_s10  ;;  %5702 = vmatprep.mubr.msk.f32.mxu1 %vm3581_vm1, %v3578_v22  ;;  %3480 = vst.msk [vmem:[#allocation3 + $0xc] sm:$0x1] %vm3419_vm0, %v3479_v23  ;;  %s3483_s7 = scalar_lea.vmem %s6556_s2, %s3482_s1 }
 0x2b3   : > { %s3542_s17 = sld [smem:[#allocation6 + %s3541_s9]]  ;;  %v3484_v24 = vld [vmem:[%s3483_s7] sm:$0x1]  ;;  %s3488_s18 = scalar_lea.vmem %s6556_s2, %s3487_s14 }
 0x2b4   : > { %s3547_s28 = sld [smem:[#allocation6 + %s3546_s3]]  ;;  %3485 = vst.msk [vmem:[#allocation3 + $0xd] sm:$0x1] %vm3419_vm0, %v3484_v24  ;;  %v3489_v25 = vld [vmem:[%s3488_s18] sm:$0x1]  ;;  %s3551_s27 = sadd.s32 27, %s6281_s10 }
 0x2b5   : > { %s3556_s26 = sadd.s32 28, %s6281_s10  ;;  %3490 = vst.msk [vmem:[#allocation3 + $0xe] sm:$0x1] %vm3419_vm0, %v3489_v25  ;;  %s3493_s1 = scalar_lea.vmem %s6556_s2, %s3492_s24 }
 0x2b6   : > { %s3552_s8 = sld [smem:[#allocation6 + %s3551_s27]]  ;;  %v3494_v26 = vld [vmem:[%s3493_s1] sm:$0x1]  ;;  %s3538_s15 = scalar_lea.vmem %s6556_s2, %s3537_s13 }
 0x2b7   : > { %s3557_s14 = sld [smem:[#allocation6 + %s3556_s26]]  ;;  %3495 = vst.msk [vmem:[#allocation3 + $0xf] sm:$0x1] %vm3419_vm0, %v3494_v26  ;;  %v3539_v27 = vld [vmem:[%s3538_s15] sm:$0x1]  ;;  %s3561_s3 = sadd.s32 29, %s6281_s10 }
 0x2b8   : > { %s3566_s7 = sadd.s32 30, %s6281_s10  ;;  %3540 = vst.msk [vmem:[#allocation3 + $0x18] sm:$0x1] %vm3419_vm0, %v3539_v27  ;;  %s3562_s24 = sld [smem:[#allocation6 + %s3561_s3]] }
 0x2b9   : > { %s3543_s18 = scalar_lea.vmem %s6556_s2, %s3542_s17  ;;  %s3567_s1 = sld [smem:[#allocation6 + %s3566_s7]] }
 0x2ba   : > { %v3544_v28 = vld [vmem:[%s3543_s18] sm:$0x1]  ;;  %s3548_s6 = scalar_lea.vmem %s6556_s2, %s3547_s28  ;;  %s3571_s13 = sadd.s32 31, %s6281_s10 }
 0x2bb   : > { %3545 = vst.msk [vmem:[#allocation3 + $0x19] sm:$0x1] %vm3419_vm0, %v3544_v28  ;;  %v3549_v29 = vld [vmem:[%s3548_s6] sm:$0x1]  ;;  %s3572_s15 = sld [smem:[#allocation6 + %s3571_s13]] }
 0x2bc   : > { %3550 = vst.msk [vmem:[#allocation3 + $0x1a] sm:$0x1] %vm3419_vm0, %v3549_v29  ;;  %s3553_s19 = scalar_lea.vmem %s6556_s2, %s3552_s8 }
 0x2bd   : > { %v3554_v30 = vld [vmem:[%s3553_s19] sm:$0x1]  ;;  %s3558_s16 = scalar_lea.vmem %s6556_s2, %s3557_s14 }
 0x2be   : > { %3555 = vst.msk [vmem:[#allocation3 + $0x1b] sm:$0x1] %vm3419_vm0, %v3554_v30  ;;  %v3559_v31 = vld [vmem:[%s3558_s16] sm:$0x1]  ;;  %v3577_v32 = vld [vmem:[#allocation3 + $0x8] sm:$0xff]  ;;  %s3563_s7 = scalar_lea.vmem %s6556_s2, %s3562_s24  ;;  %s5588_s24 = sshll.u32 %s6579_s11, 5 }
 0x2bf   : > { %3560 = vst.msk [vmem:[#allocation3 + $0x1c] sm:$0x1] %vm3419_vm0, %v3559_v31  ;;  %5700 = vmatmul.mubr.msk.f32.vlgmr.msra.gmra.mxu0 %vm3581_vm1, %v3577_v32  ;;  %v3564_v33 = vld [vmem:[%s3563_s7] sm:$0x1]  ;;  %s3568_s18 = scalar_lea.vmem %s6556_s2, %s3567_s1  ;;  %s6458_s6 = scalar_lea.sflag [#allocation4], %s5588_s24 }
 0x2c0   : > { %3565 = vst.msk [vmem:[#allocation3 + $0x1d] sm:$0x1] %vm3419_vm0, %v3564_v33  ;;  %v3569_v34 = vld [vmem:[%s3568_s18] sm:$0x1] }
 0x2c1   : > { %3570 = vst.msk [vmem:[#allocation3 + $0x1e] sm:$0x1] %vm3419_vm0, %v3569_v34  ;;  %s3573_s5 = scalar_lea.vmem %s6556_s2, %s3572_s15 }
 0x2c2   : > { %v3574_v35 = vld [vmem:[%s3573_s5] sm:$0x1] }
 0x2c3   : > { %3575 = vst.msk [vmem:[#allocation3 + $0x1f] sm:$0x1] %vm3419_vm0, %v3574_v35 }
 0x2ca   : > { %v3579_v36 = vld [vmem:[#allocation3 + $0x18] sm:$0xff] }
 0x2cb   : > { %5703 = vmatmul.mubr.msk.f32.vlgmr.msra.gmra.mxu1 %vm3581_vm1, %v3579_v36 }
 0x37f   : > { %v6448_v37 = vpop.f32.mrf.mxu0 }
 0x381   : > { %v6450_v38 = vpop.f32.mrf.mxu0 }
 0x38b   : > { %v6452_v39 = vpop.f32.mrf.mxu1 }
 0x38d   : > { %v6454_v40 = vpop.f32.mrf.mxu1 }
 0x38e   : > { %5805 = dma.done.wait %s6458_s6, 16 }
 0x38f   : > { %5806 = vsyncadd %s6458_s6, 4294967280  ;;  %s4789_s1 = scalar_lea.sflag %s6458_s6, 1 [#allocation4] }
 0x390   : > { %5807 = dma.done.wait %s4789_s1, 16 }
 0x391   : > { %5808 = vsyncadd %s4789_s1, 4294967280  ;;  %s4792_s13 = scalar_lea.sflag %s6458_s6, 2 [#allocation4] }
 0x392   : > { %5809 = dma.done.wait %s4792_s13, 16 }
 0x393   : > { %5810 = vsyncadd %s4792_s13, 4294967280  ;;  %s4795_s26 = scalar_lea.sflag %s6458_s6, 3 [#allocation4] }
 0x394   : > { %5811 = dma.done.wait %s4795_s26, 16 }
 0x395   : > { %5812 = vsyncadd %s4795_s26, 4294967280  ;;  %s4798_s9 = scalar_lea.sflag %s6458_s6, 4 [#allocation4] }
 0x396   : > { %5813 = dma.done.wait %s4798_s9, 16 }
 0x397   : > { %5814 = vsyncadd %s4798_s9, 4294967280  ;;  %s4801_s19 = scalar_lea.sflag %s6458_s6, 5 [#allocation4] }
 0x398   : > { %5815 = dma.done.wait %s4801_s19, 16 }
 0x399   : > { %5816 = vsyncadd %s4801_s19, 4294967280  ;;  %s4804_s15 = scalar_lea.sflag %s6458_s6, 6 [#allocation4] }
 0x39a   : > { %5817 = dma.done.wait %s4804_s15, 16 }
 0x39b   : > { %5818 = vsyncadd %s4804_s15, 4294967280  ;;  %s4807_s17 = scalar_lea.sflag %s6458_s6, 7 [#allocation4] }
 0x39c   : > { %5819 = dma.done.wait %s4807_s17, 16 }
 0x39d   : > { %5820 = vsyncadd %s4807_s17, 4294967280  ;;  %s4810_s3 = scalar_lea.sflag %s6458_s6, 8 [#allocation4] }
 0x39e   : > { %5821 = dma.done.wait %s4810_s3, 16 }
 0x39f   : > { %5822 = vsyncadd %s4810_s3, 4294967280  ;;  %s4813_s16 = scalar_lea.sflag %s6458_s6, 9 [#allocation4] }
 0x3a0   : > { %5823 = dma.done.wait %s4813_s16, 16 }
 0x3a1   : > { %5824 = vsyncadd %s4813_s16, 4294967280  ;;  %s4816_s10 = scalar_lea.sflag %s6458_s6, 10 [#allocation4] }
 0x3a2   : > { %5825 = dma.done.wait %s4816_s10, 16 }
 0x3a3   : > { %5826 = vsyncadd %s4816_s10, 4294967280  ;;  %s4819_s28 = scalar_lea.sflag %s6458_s6, 11 [#allocation4] }
 0x3a4   : > { %5827 = dma.done.wait %s4819_s28, 16 }
 0x3a5   : > { %5828 = vsyncadd %s4819_s28, 4294967280  ;;  %s4822_s7 = scalar_lea.sflag %s6458_s6, 12 [#allocation4] }
 0x3a6   : > { %5829 = dma.done.wait %s4822_s7, 16 }
 0x3a7   : > { %5830 = vsyncadd %s4822_s7, 4294967280  ;;  %s4825_s8 = scalar_lea.sflag %s6458_s6, 13 [#allocation4] }
 0x3a8   : > { %5831 = dma.done.wait %s4825_s8, 16 }
 0x3a9   : > { %5832 = vsyncadd %s4825_s8, 4294967280  ;;  %s4828_s0 = scalar_lea.sflag %s6458_s6, 14 [#allocation4] }
 0x3aa   : > { %5833 = dma.done.wait %s4828_s0, 16 }
 0x3ab   : > { %5834 = vsyncadd %s4828_s0, 4294967280  ;;  %s4831_s18 = scalar_lea.sflag %s6458_s6, 15 [#allocation4] }
 0x3ac   : > { %5835 = dma.done.wait %s4831_s18, 16 }
 0x3ad   : > { %5836 = vsyncadd %s4831_s18, 4294967280  ;;  %s4834_s14 = scalar_lea.sflag %s6458_s6, 16 [#allocation4] }
 0x3ae   : > { %5837 = dma.done.wait %s4834_s14, 16 }
 0x3af   : > { %5838 = vsyncadd %s4834_s14, 4294967280  ;;  %s4837_s27 = scalar_lea.sflag %s6458_s6, 17 [#allocation4] }
 0x3b0   : > { %5839 = dma.done.wait %s4837_s27, 16 }
 0x3b1   : > { %5840 = vsyncadd %s4837_s27, 4294967280  ;;  %s4840_s5 = scalar_lea.sflag %s6458_s6, 18 [#allocation4] }
 0x3b2   : > { %5841 = dma.done.wait %s4840_s5, 16 }
 0x3b3   : > { %5842 = vsyncadd %s4840_s5, 4294967280  ;;  %s4843_s1 = scalar_lea.sflag %s6458_s6, 19 [#allocation4] }
 0x3b4   : > { %5843 = dma.done.wait %s4843_s1, 16 }
 0x3b5   : > { %5844 = vsyncadd %s4843_s1, 4294967280  ;;  %s4846_s13 = scalar_lea.sflag %s6458_s6, 20 [#allocation4] }
 0x3b6   : > { %5845 = dma.done.wait %s4846_s13, 16 }
 0x3b7   : > { %5846 = vsyncadd %s4846_s13, 4294967280  ;;  %s4849_s26 = scalar_lea.sflag %s6458_s6, 21 [#allocation4] }
 0x3b8   : > { %5847 = dma.done.wait %s4849_s26, 16 }
 0x3b9   : > { %5848 = vsyncadd %s4849_s26, 4294967280  ;;  %s4852_s9 = scalar_lea.sflag %s6458_s6, 22 [#allocation4] }
 0x3ba   : > { %5849 = dma.done.wait %s4852_s9, 16 }
 0x3bb   : > { %5850 = vsyncadd %s4852_s9, 4294967280  ;;  %s4855_s19 = scalar_lea.sflag %s6458_s6, 23 [#allocation4] }
 0x3bc   : > { %5851 = dma.done.wait %s4855_s19, 16 }
 0x3bd   : > { %5852 = vsyncadd %s4855_s19, 4294967280  ;;  %s4858_s15 = scalar_lea.sflag %s6458_s6, 24 [#allocation4] }
 0x3be   : > { %5853 = dma.done.wait %s4858_s15, 16 }
 0x3bf   : > { %5854 = vsyncadd %s4858_s15, 4294967280  ;;  %s4861_s17 = scalar_lea.sflag %s6458_s6, 25 [#allocation4] }
 0x3c0   : > { %5855 = dma.done.wait %s4861_s17, 16 }
 0x3c1   : > { %5856 = vsyncadd %s4861_s17, 4294967280  ;;  %s4864_s3 = scalar_lea.sflag %s6458_s6, 26 [#allocation4] }
 0x3c2   : > { %5857 = dma.done.wait %s4864_s3, 16 }
 0x3c3   : > { %5858 = vsyncadd %s4864_s3, 4294967280  ;;  %s4867_s16 = scalar_lea.sflag %s6458_s6, 27 [#allocation4] }
 0x3c4   : > { %5859 = dma.done.wait %s4867_s16, 16 }
 0x3c5   : > { %5860 = vsyncadd %s4867_s16, 4294967280  ;;  %s4870_s10 = scalar_lea.sflag %s6458_s6, 28 [#allocation4] }
 0x3c6   : > { %5861 = dma.done.wait %s4870_s10, 16 }
 0x3c7   : > { %5862 = vsyncadd %s4870_s10, 4294967280  ;;  %s4873_s28 = scalar_lea.sflag %s6458_s6, 29 [#allocation4] }
 0x3c8   : > { %5863 = dma.done.wait %s4873_s28, 16 }
 0x3c9   : > { %5864 = vsyncadd %s4873_s28, 4294967280  ;;  %s4876_s7 = scalar_lea.sflag %s6458_s6, 30 [#allocation4] }
 0x3ca   : > { %5865 = dma.done.wait %s4876_s7, 16 }
 0x3cb   : > { %5866 = vsyncadd %s4876_s7, 4294967280  ;;  %s4879_s8 = scalar_lea.sflag %s6458_s6, 31 [#allocation4] }
 0x3cc   : > { %5867 = dma.done.wait %s4879_s8, 16 }
 0x3cd   : > { %5868 = vsyncadd %s4879_s8, 4294967280  ;;  %s5691_s0 = sshll.u32 %s5942_s23, 9  ;;  %s3835_s18 = sshll.u32 %s5977_s12, 4  ;;  %s6505_s18 = int_to_ptr.vmem [resolvable:$true] %s3835_s18 }
 0x3ce   : > { %s3808_s14 = scalar_lea.vmem [#allocation2], %s5588_s24  ;;  %s6503_s23 = scalar_lea.hbm %s6558_s4, %s5691_s0 }
 0x3cf   : > { %v3809_v41 = vld [vmem:[%s3808_s14] sm:$0xff]  ;;  %v3810_v42 = vld [vmem:[%s3808_s14 + $0x8] sm:$0xff]  ;;  %v3811_v43 = vld [vmem:[%s3808_s14 + $0x10] sm:$0xff]  ;;  %s6570_s11 = sand.u32 1, %s5879_s21   ;;  %s5761_s5 = scalar_lea.vmem %s6505_s18, 512 }
 0x3d0   : > { %v3813_v44 = vadd.f32 %v3809_v41, %v6450_v38  ;;  %v3814_v45 = vadd.f32 %v6448_v37, %v3810_v42  ;;  %v3815_v46 = vadd.f32 %v3811_v43, %v6454_v40  ;;  %v3812_v47 = vld [vmem:[%s3808_s14 + $0x18] sm:$0xff]  ;;  %s6514_s24 = scalar_lea.sflag [#allocation8], %s6570_s11  ;;  %p5762_p5 = scmp.ne.s32.totalorder %s6505_s18, %s5761_s5 }
 0x3d1   : > { %v3816_v48 = vadd.f32 %v6452_v39, %v3812_v47  ;;  %s5890_s1 = smov [#allocation7]  }
 0x3d2   : > { %3817 = vst [vmem:[%s5977_s12] sm:$0xff] %v3813_v44  ;;  %3818 = vst [vmem:[%s5977_s12 + $0x8] sm:$0xff] %v3814_v45  ;;  %p5763_p6 = pnand %p5762_p5, %p5959_p10  ;;  %s5765_s13 = sshll.u32 %s5890_s1, 4  ;;  %s5766_s13 = int_to_ptr.vmem [resolvable:$false] %s5765_s13 }
 0x3d3   : > { %3819 = vst [vmem:[%s5977_s12 + $0x10] sm:$0xff] %v3815_v46  ;;  %3820 = vst [vmem:[%s5977_s12 + $0x18] sm:$0xff] %v3816_v48  ;;  %s5767_s26 = scalar_lea.vmem %s5766_s13, 1024  ;;  %p5768_p8 = scmp.lt.s32.totalorder %s6505_s18, %s5766_s13 }
 0x3d4   : > { %p5764_p7 = pneg %p5763_p6  ;;  %p5769_p9 = scmp.lt.s32.totalorder %s5767_s26, %s5761_s5 }
 0x3d6   : > { %p5770_p12 = por %p5769_p9, %p5768_p8 }
 0x3d8   : > { %p5771_p13 = pnand %p5770_p12, %p5764_p7 }
 0x3da   : > { %5774 = shalt.err (!%p5771_p13)
}
 0x3db   : > { %s5775_s12 = scalar_lea.hbm %s6503_s23, 512  ;;  %s5779_s15 = scalar_lea.hbm %s6558_s4, 1024 }
 0x3dc   : > { %p5776_p0 = scmp.ne.s32.totalorder %s6503_s23, %s5775_s12  ;;  %p5780_p3 = scmp.lt.s32.totalorder %s6503_s23, %s6558_s4 }
 0x3dd   : > { %p5781_p4 = scmp.lt.s32.totalorder %s5779_s15, %s5775_s12 }
 0x3de   : > { %p5777_p1 = pnand %p5776_p0, %p5959_p10 }
 0x3df   : > { %p5782_p5 = por %p5781_p4, %p5780_p3 }
 0x3e0   : > { %p5778_p2 = pneg %p5777_p1 }
 0x3e2   : > { %p5783_p6 = pnand %p5782_p5, %p5778_p2 }
 0x3e4   : > { %5786 = shalt.err (!%p5783_p6)
}
 0x3e5   : > { %s5891_s16 = smov 128   ;;  %s5892_s10 = smov 8  }
 0x3e6   : > { %5707 = dma.vmem_to_hbm [thread:$0]  (%p5959_p10), %s6505_s18, 512, %s6503_s23, %s6514_s24, %s5891_s16, %s5891_s16, %s5892_s10  }
 0x3e7 PF: > { %p5713_p7 = scmp.ge.s32.totalorder %s5887_s22, 2  ;;  %s3850_s28 = sand.u32 1, %s5875_s20  }
 0x3e8   : > { %s3851_s7 = scalar_lea.sflag [#allocation8], %s3850_s28 }
 0x3e9   : > { %p5710_p8 = pnand %p5713_p7, %p5963_p11 }
 0x3eb   : > { %p5711_p9 = pneg %p5710_p8 }
 0x3ed   : > { %5870 = dma.done.wait (%p5711_p9), %s3851_s7, 512  }
 0x3ee   : > { %5872 = vsyncadd (%p5711_p9), %s3851_s7, 4294966784  ;;  %s6571_s8 = sld [smem:[#allocation107_spill]]  ;;  %p20_p12 = scmp.ge.s32.totalorder %s5946_s25, 4  }
 0x3ef   : > { %s6572_s0 = sld [smem:[#allocation108_spill]]  ;;  %s6573_s20 = smov %s5879_s21 }
 0x3f0   : > { %s6575_s22 = smov %s5946_s25  ;;  %22 = sbr.rel (!%p20_p12) target bundleno = 19 (0x13), region = 2946 }
 0x3f4   : > { %s6574_s21 = smov %s6571_s8 }
 0x3f5   :  { %3856 = vsyncpa [#allocation8], 1 }
 0x3f6   :  { %3858 = vsyncpa [#allocation8 + $0x1], 1 }
 0x3f7   :  { %3859 = vsyncmov [#allocation4] }
 0x3fa   :  { %s3860_s22 = vpop.sfrf %3859 }
 0x3fb   :  { %p5625_p10 = scmp.ne.s32.totalorder %s3860_s22, 0 }
 0x3fd   :  { %3864 = shalt.err (%p5625_p10)  }
 0x3fe   :  { %3866 = vsyncmov [#allocation4 + $0x1] }
 0x401   :  { %s3867_s29 = vpop.sfrf %3866 }
 0x402   :  { %p5626_p11 = scmp.ne.s32.totalorder %s3867_s29, 0 }
 0x404   :  { %3871 = shalt.err (%p5626_p11)  }
 0x405   :  { %3873 = vsyncmov [#allocation4 + $0x2] }
 0x408   :  { %s3874_s30 = vpop.sfrf %3873 }
 0x409   :  { %p5627_p13 = scmp.ne.s32.totalorder %s3874_s30, 0 }
 0x40b   :  { %3878 = shalt.err (%p5627_p13)  }
 0x40c   :  { %3880 = vsyncmov [#allocation4 + $0x3] }
 0x40f   :  { %s3881_s18 = vpop.sfrf %3880 }
 0x410   :  { %p5628_p0 = scmp.ne.s32.totalorder %s3881_s18, 0 }
 0x412   :  { %3885 = shalt.err (%p5628_p0)  }
 0x413   :  { %3887 = vsyncmov [#allocation4 + $0x4] }
 0x416   :  { %s3888_s25 = vpop.sfrf %3887 }
 0x417   :  { %p5629_p1 = scmp.ne.s32.totalorder %s3888_s25, 0 }
 0x419   :  { %3892 = shalt.err (%p5629_p1)  }
 0x41a   :  { %3894 = vsyncmov [#allocation4 + $0x5] }
 0x41d   :  { %s3895_s2 = vpop.sfrf %3894 }
 0x41e   :  { %p5630_p2 = scmp.ne.s32.totalorder %s3895_s2, 0 }
 0x420   :  { %3899 = shalt.err (%p5630_p2)  }
 0x421   :  { %3901 = vsyncmov [#allocation4 + $0x6] }
 0x424   :  { %s3902_s4 = vpop.sfrf %3901 }
 0x425   :  { %p5631_p3 = scmp.ne.s32.totalorder %s3902_s4, 0 }
 0x427   :  { %3906 = shalt.err (%p5631_p3)  }
 0x428   :  { %3908 = vsyncmov [#allocation4 + $0x7] }
 0x42b   :  { %s3909_s20 = vpop.sfrf %3908 }
 0x42c   :  { %p5632_p4 = scmp.ne.s32.totalorder %s3909_s20, 0 }
 0x42e   :  { %3913 = shalt.err (%p5632_p4)  }
 0x42f   :  { %3915 = vsyncmov [#allocation4 + $0x8] }
 0x432   :  { %s3916_s21 = vpop.sfrf %3915 }
 0x433   :  { %p5633_p5 = scmp.ne.s32.totalorder %s3916_s21, 0 }
 0x435   :  { %3920 = shalt.err (%p5633_p5)  }
 0x436   :  { %3922 = vsyncmov [#allocation4 + $0x9] }
 0x439   :  { %s3923_s0 = vpop.sfrf %3922 }
 0x43a   :  { %p5634_p6 = scmp.ne.s32.totalorder %s3923_s0, 0 }
 0x43c   :  { %3927 = shalt.err (%p5634_p6)  }
 0x43d   :  { %3929 = vsyncmov [#allocation4 + $0xa] }
 0x440   :  { %s3930_s14 = vpop.sfrf %3929 }
 0x441   :  { %p5635_p7 = scmp.ne.s32.totalorder %s3930_s14, 0 }
 0x443   :  { %3934 = shalt.err (%p5635_p7)  }
 0x444   :  { %3936 = vsyncmov [#allocation4 + $0xb] }
 0x447   :  { %s3937_s6 = vpop.sfrf %3936 }
 0x448   :  { %p5636_p8 = scmp.ne.s32.totalorder %s3937_s6, 0 }
 0x44a   :  { %3941 = shalt.err (%p5636_p8)  }
 0x44b   :  { %3943 = vsyncmov [#allocation4 + $0xc] }
 0x44e   :  { %s3944_s27 = vpop.sfrf %3943 }
 0x44f   :  { %p5637_p9 = scmp.ne.s32.totalorder %s3944_s27, 0 }
 0x451   :  { %3948 = shalt.err (%p5637_p9)  }
 0x452   :  { %3950 = vsyncmov [#allocation4 + $0xd] }
 0x455   :  { %s3951_s23 = vpop.sfrf %3950 }
 0x456   :  { %p5638_p12 = scmp.ne.s32.totalorder %s3951_s23, 0 }
 0x458   :  { %3955 = shalt.err (%p5638_p12)  }
 0x459   :  { %3957 = vsyncmov [#allocation4 + $0xe] }
 0x45c   :  { %s3958_s11 = vpop.sfrf %3957 }
 0x45d   :  { %p5639_p10 = scmp.ne.s32.totalorder %s3958_s11, 0 }
 0x45f   :  { %3962 = shalt.err (%p5639_p10)  }
 0x460   :  { %3964 = vsyncmov [#allocation4 + $0xf] }
 0x463   :  { %s3965_s24 = vpop.sfrf %3964 }
 0x464   :  { %p5640_p11 = scmp.ne.s32.totalorder %s3965_s24, 0 }
 0x466   :  { %3969 = shalt.err (%p5640_p11)  }
 0x467   :  { %3971 = vsyncmov [#allocation4 + $0x10] }
 0x46a   :  { %s3972_s5 = vpop.sfrf %3971 }
 0x46b   :  { %p5641_p13 = scmp.ne.s32.totalorder %s3972_s5, 0 }
 0x46d   :  { %3976 = shalt.err (%p5641_p13)  }
 0x46e   :  { %3978 = vsyncmov [#allocation4 + $0x11] }
 0x471   :  { %s3979_s1 = vpop.sfrf %3978 }
 0x472   :  { %p5642_p0 = scmp.ne.s32.totalorder %s3979_s1, 0 }
 0x474   :  { %3983 = shalt.err (%p5642_p0)  }
 0x475   :  { %3985 = vsyncmov [#allocation4 + $0x12] }
 0x478   :  { %s3986_s13 = vpop.sfrf %3985 }
 0x479   :  { %p5643_p1 = scmp.ne.s32.totalorder %s3986_s13, 0 }
 0x47b   :  { %3990 = shalt.err (%p5643_p1)  }
 0x47c   :  { %3992 = vsyncmov [#allocation4 + $0x13] }
 0x47f   :  { %s3993_s26 = vpop.sfrf %3992 }
 0x480   :  { %p5644_p2 = scmp.ne.s32.totalorder %s3993_s26, 0 }
 0x482   :  { %3997 = shalt.err (%p5644_p2)  }
 0x483   :  { %3999 = vsyncmov [#allocation4 + $0x14] }
 0x486   :  { %s4000_s12 = vpop.sfrf %3999 }
 0x487   :  { %p5645_p3 = scmp.ne.s32.totalorder %s4000_s12, 0 }
 0x489   :  { %4004 = shalt.err (%p5645_p3)  }
 0x48a   :  { %4006 = vsyncmov [#allocation4 + $0x15] }
 0x48d   :  { %s4007_s9 = vpop.sfrf %4006 }
 0x48e   :  { %p5646_p4 = scmp.ne.s32.totalorder %s4007_s9, 0 }
 0x490   :  { %4011 = shalt.err (%p5646_p4)  }
 0x491   :  { %4013 = vsyncmov [#allocation4 + $0x16] }
 0x494   :  { %s4014_s19 = vpop.sfrf %4013 }
 0x495   :  { %p5647_p5 = scmp.ne.s32.totalorder %s4014_s19, 0 }
 0x497   :  { %4018 = shalt.err (%p5647_p5)  }
 0x498   :  { %4020 = vsyncmov [#allocation4 + $0x17] }
 0x49b   :  { %s4021_s15 = vpop.sfrf %4020 }
 0x49c   :  { %p5648_p6 = scmp.ne.s32.totalorder %s4021_s15, 0 }
 0x49e   :  { %4025 = shalt.err (%p5648_p6)  }
 0x49f   :  { %4027 = vsyncmov [#allocation4 + $0x18] }
 0x4a2   :  { %s4028_s17 = vpop.sfrf %4027 }
 0x4a3   :  { %p5649_p7 = scmp.ne.s32.totalorder %s4028_s17, 0 }
 0x4a5   :  { %4032 = shalt.err (%p5649_p7)  }
 0x4a6   :  { %4034 = vsyncmov [#allocation4 + $0x19] }
 0x4a9   :  { %s4035_s3 = vpop.sfrf %4034 }
 0x4aa   :  { %p5650_p8 = scmp.ne.s32.totalorder %s4035_s3, 0 }
 0x4ac   :  { %4039 = shalt.err (%p5650_p8)  }
 0x4ad   :  { %4041 = vsyncmov [#allocation4 + $0x1a] }
 0x4b0   :  { %s4042_s16 = vpop.sfrf %4041 }
 0x4b1   :  { %p5651_p9 = scmp.ne.s32.totalorder %s4042_s16, 0 }
 0x4b3   :  { %4046 = shalt.err (%p5651_p9)  }
 0x4b4   :  { %4048 = vsyncmov [#allocation4 + $0x1b] }
 0x4b7   :  { %s4049_s10 = vpop.sfrf %4048 }
 0x4b8   :  { %p5652_p12 = scmp.ne.s32.totalorder %s4049_s10, 0 }
 0x4ba   :  { %4053 = shalt.err (%p5652_p12)  }
 0x4bb   :  { %4055 = vsyncmov [#allocation4 + $0x1c] }
 0x4be   :  { %s4056_s28 = vpop.sfrf %4055 }
 0x4bf   :  { %p5653_p10 = scmp.ne.s32.totalorder %s4056_s28, 0 }
 0x4c1   :  { %4060 = shalt.err (%p5653_p10)  }
 0x4c2   :  { %4062 = vsyncmov [#allocation4 + $0x1d] }
 0x4c5   :  { %s4063_s7 = vpop.sfrf %4062 }
 0x4c6   :  { %p5654_p11 = scmp.ne.s32.totalorder %s4063_s7, 0 }
 0x4c8   :  { %4067 = shalt.err (%p5654_p11)  }
 0x4c9   :  { %4069 = vsyncmov [#allocation4 + $0x1e] }
 0x4cc   :  { %s4070_s8 = vpop.sfrf %4069 }
 0x4cd   :  { %p5655_p13 = scmp.ne.s32.totalorder %s4070_s8, 0 }
 0x4cf   :  { %4074 = shalt.err (%p5655_p13)  }
 0x4d0   :  { %4076 = vsyncmov [#allocation4 + $0x1f] }
 0x4d3   :  { %s4077_s22 = vpop.sfrf %4076 }
 0x4d4   :  { %p5656_p0 = scmp.ne.s32.totalorder %s4077_s22, 0 }
 0x4d6   :  { %4081 = shalt.err (%p5656_p0)  }
 0x4d7   :  { %4083 = vsyncmov [#allocation4 + $0x20] }
 0x4da   :  { %s4084_s29 = vpop.sfrf %4083 }
 0x4db   :  { %p5657_p1 = scmp.ne.s32.totalorder %s4084_s29, 0 }
 0x4dd   :  { %4088 = shalt.err (%p5657_p1)  }
 0x4de   :  { %4090 = vsyncmov [#allocation4 + $0x21] }
 0x4e1   :  { %s4091_s30 = vpop.sfrf %4090 }
 0x4e2   :  { %p5658_p2 = scmp.ne.s32.totalorder %s4091_s30, 0 }
 0x4e4   :  { %4095 = shalt.err (%p5658_p2)  }
 0x4e5   :  { %4097 = vsyncmov [#allocation4 + $0x22] }
 0x4e8   :  { %s4098_s18 = vpop.sfrf %4097 }
 0x4e9   :  { %p5659_p3 = scmp.ne.s32.totalorder %s4098_s18, 0 }
 0x4eb   :  { %4102 = shalt.err (%p5659_p3)  }
 0x4ec   :  { %4104 = vsyncmov [#allocation4 + $0x23] }
 0x4ef   :  { %s4105_s25 = vpop.sfrf %4104 }
 0x4f0   :  { %p5660_p4 = scmp.ne.s32.totalorder %s4105_s25, 0 }
 0x4f2   :  { %4109 = shalt.err (%p5660_p4)  }
 0x4f3   :  { %4111 = vsyncmov [#allocation4 + $0x24] }
 0x4f6   :  { %s4112_s2 = vpop.sfrf %4111 }
 0x4f7   :  { %p5661_p5 = scmp.ne.s32.totalorder %s4112_s2, 0 }
 0x4f9   :  { %4116 = shalt.err (%p5661_p5)  }
 0x4fa   :  { %4118 = vsyncmov [#allocation4 + $0x25] }
 0x4fd   :  { %s4119_s4 = vpop.sfrf %4118 }
 0x4fe   :  { %p5662_p6 = scmp.ne.s32.totalorder %s4119_s4, 0 }
 0x500   :  { %4123 = shalt.err (%p5662_p6)  }
 0x501   :  { %4125 = vsyncmov [#allocation4 + $0x26] }
 0x504   :  { %s4126_s20 = vpop.sfrf %4125 }
 0x505   :  { %p5663_p7 = scmp.ne.s32.totalorder %s4126_s20, 0 }
 0x507   :  { %4130 = shalt.err (%p5663_p7)  }
 0x508   :  { %4132 = vsyncmov [#allocation4 + $0x27] }
 0x50b   :  { %s4133_s21 = vpop.sfrf %4132 }
 0x50c   :  { %p5664_p8 = scmp.ne.s32.totalorder %s4133_s21, 0 }
 0x50e   :  { %4137 = shalt.err (%p5664_p8)  }
 0x50f   :  { %4139 = vsyncmov [#allocation4 + $0x28] }
 0x512   :  { %s4140_s0 = vpop.sfrf %4139 }
 0x513   :  { %p5665_p9 = scmp.ne.s32.totalorder %s4140_s0, 0 }
 0x515   :  { %4144 = shalt.err (%p5665_p9)  }
 0x516   :  { %4146 = vsyncmov [#allocation4 + $0x29] }
 0x519   :  { %s4147_s14 = vpop.sfrf %4146 }
 0x51a   :  { %p5666_p12 = scmp.ne.s32.totalorder %s4147_s14, 0 }
 0x51c   :  { %4151 = shalt.err (%p5666_p12)  }
 0x51d   :  { %4153 = vsyncmov [#allocation4 + $0x2a] }
 0x520   :  { %s4154_s6 = vpop.sfrf %4153 }
 0x521   :  { %p5667_p10 = scmp.ne.s32.totalorder %s4154_s6, 0 }
 0x523   :  { %4158 = shalt.err (%p5667_p10)  }
 0x524   :  { %4160 = vsyncmov [#allocation4 + $0x2b] }
 0x527   :  { %s4161_s27 = vpop.sfrf %4160 }
 0x528   :  { %p5668_p11 = scmp.ne.s32.totalorder %s4161_s27, 0 }
 0x52a   :  { %4165 = shalt.err (%p5668_p11)  }
 0x52b   :  { %4167 = vsyncmov [#allocation4 + $0x2c] }
 0x52e   :  { %s4168_s23 = vpop.sfrf %4167 }
 0x52f   :  { %p5669_p13 = scmp.ne.s32.totalorder %s4168_s23, 0 }
 0x531   :  { %4172 = shalt.err (%p5669_p13)  }
 0x532   :  { %4174 = vsyncmov [#allocation4 + $0x2d] }
 0x535   :  { %s4175_s11 = vpop.sfrf %4174 }
 0x536   :  { %p5670_p0 = scmp.ne.s32.totalorder %s4175_s11, 0 }
 0x538   :  { %4179 = shalt.err (%p5670_p0)  }
 0x539   :  { %4181 = vsyncmov [#allocation4 + $0x2e] }
 0x53c   :  { %s4182_s24 = vpop.sfrf %4181 }
 0x53d   :  { %p5671_p1 = scmp.ne.s32.totalorder %s4182_s24, 0 }
 0x53f   :  { %4186 = shalt.err (%p5671_p1)  }
 0x540   :  { %4188 = vsyncmov [#allocation4 + $0x2f] }
 0x543   :  { %s4189_s5 = vpop.sfrf %4188 }
 0x544   :  { %p5672_p2 = scmp.ne.s32.totalorder %s4189_s5, 0 }
 0x546   :  { %4193 = shalt.err (%p5672_p2)  }
 0x547   :  { %4195 = vsyncmov [#allocation4 + $0x30] }
 0x54a   :  { %s4196_s1 = vpop.sfrf %4195 }
 0x54b   :  { %p5673_p3 = scmp.ne.s32.totalorder %s4196_s1, 0 }
 0x54d   :  { %4200 = shalt.err (%p5673_p3)  }
 0x54e   :  { %4202 = vsyncmov [#allocation4 + $0x31] }
 0x551   :  { %s4203_s13 = vpop.sfrf %4202 }
 0x552   :  { %p5674_p4 = scmp.ne.s32.totalorder %s4203_s13, 0 }
 0x554   :  { %4207 = shalt.err (%p5674_p4)  }
 0x555   :  { %4209 = vsyncmov [#allocation4 + $0x32] }
 0x558   :  { %s4210_s26 = vpop.sfrf %4209 }
 0x559   :  { %p5675_p5 = scmp.ne.s32.totalorder %s4210_s26, 0 }
 0x55b   :  { %4214 = shalt.err (%p5675_p5)  }
 0x55c   :  { %4216 = vsyncmov [#allocation4 + $0x33] }
 0x55f   :  { %s4217_s12 = vpop.sfrf %4216 }
 0x560   :  { %p5676_p6 = scmp.ne.s32.totalorder %s4217_s12, 0 }
 0x562   :  { %4221 = shalt.err (%p5676_p6)  }
 0x563   :  { %4223 = vsyncmov [#allocation4 + $0x34] }
 0x566   :  { %s4224_s9 = vpop.sfrf %4223 }
 0x567   :  { %p5677_p7 = scmp.ne.s32.totalorder %s4224_s9, 0 }
 0x569   :  { %4228 = shalt.err (%p5677_p7)  }
 0x56a   :  { %4230 = vsyncmov [#allocation4 + $0x35] }
 0x56d   :  { %s4231_s19 = vpop.sfrf %4230 }
 0x56e   :  { %p5678_p8 = scmp.ne.s32.totalorder %s4231_s19, 0 }
 0x570   :  { %4235 = shalt.err (%p5678_p8)  }
 0x571   :  { %4237 = vsyncmov [#allocation4 + $0x36] }
 0x574   :  { %s4238_s15 = vpop.sfrf %4237 }
 0x575   :  { %p5679_p9 = scmp.ne.s32.totalorder %s4238_s15, 0 }
 0x577   :  { %4242 = shalt.err (%p5679_p9)  }
 0x578   :  { %4244 = vsyncmov [#allocation4 + $0x37] }
 0x57b   :  { %s4245_s17 = vpop.sfrf %4244 }
 0x57c   :  { %p5680_p12 = scmp.ne.s32.totalorder %s4245_s17, 0 }
 0x57e   :  { %4249 = shalt.err (%p5680_p12)  }
 0x57f   :  { %4251 = vsyncmov [#allocation4 + $0x38] }
 0x582   :  { %s4252_s3 = vpop.sfrf %4251 }
 0x583   :  { %p5681_p10 = scmp.ne.s32.totalorder %s4252_s3, 0 }
 0x585   :  { %4256 = shalt.err (%p5681_p10)  }
 0x586   :  { %4258 = vsyncmov [#allocation4 + $0x39] }
 0x589   :  { %s4259_s16 = vpop.sfrf %4258 }
 0x58a   :  { %p5682_p11 = scmp.ne.s32.totalorder %s4259_s16, 0 }
 0x58c   :  { %4263 = shalt.err (%p5682_p11)  }
 0x58d   :  { %4265 = vsyncmov [#allocation4 + $0x3a] }
 0x590   :  { %s4266_s10 = vpop.sfrf %4265 }
 0x591   :  { %p5683_p13 = scmp.ne.s32.totalorder %s4266_s10, 0 }
 0x593   :  { %4270 = shalt.err (%p5683_p13)  }
 0x594   :  { %4272 = vsyncmov [#allocation4 + $0x3b] }
 0x597   :  { %s4273_s28 = vpop.sfrf %4272 }
 0x598   :  { %p5684_p0 = scmp.ne.s32.totalorder %s4273_s28, 0 }
 0x59a   :  { %4277 = shalt.err (%p5684_p0)  }
 0x59b   :  { %4279 = vsyncmov [#allocation4 + $0x3c] }
 0x59e   :  { %s4280_s7 = vpop.sfrf %4279 }
 0x59f   :  { %p5685_p1 = scmp.ne.s32.totalorder %s4280_s7, 0 }
 0x5a1   :  { %4284 = shalt.err (%p5685_p1)  }
 0x5a2   :  { %4286 = vsyncmov [#allocation4 + $0x3d] }
 0x5a5   :  { %s4287_s8 = vpop.sfrf %4286 }
 0x5a6   :  { %p5686_p2 = scmp.ne.s32.totalorder %s4287_s8, 0 }
 0x5a8   :  { %4291 = shalt.err (%p5686_p2)  }
 0x5a9   :  { %4293 = vsyncmov [#allocation4 + $0x3e] }
 0x5ac   :  { %s4294_s22 = vpop.sfrf %4293 }
 0x5ad   :  { %p5687_p3 = scmp.ne.s32.totalorder %s4294_s22, 0 }
 0x5af   :  { %4298 = shalt.err (%p5687_p3)  }
 0x5b0   :  { %4300 = vsyncmov [#allocation4 + $0x3f] }
 0x5b3   :  { %s4301_s29 = vpop.sfrf %4300 }
 0x5b4   :  { %p5688_p4 = scmp.ne.s32.totalorder %s4301_s29, 0 }
 0x5b6   :  { %4305 = shalt.err (%p5688_p4)  }

</bundles_post_ra>
